<compile_context>
chip_gen: v7x
topology: tpu7x:2x2x1
jax: 0.10.0
libtpu: 0.0.40
codegen_flags: <defaults>
</compile_context>

<pallas_src>
import functools

import jax
import jax.numpy as jnp
import numpy as np
from jax import lax
from jax.experimental import pallas as pl
from jax.experimental.pallas import tpu as pltpu

BN_EPS = 1e-3

CIN = 192
C0 = 96                    # branch0: 1x1 -> 96
C1A, C1 = 48, 64           # branch1: 1x1 -> 48, 5x5 -> 64
C2A, C2B, C2 = 64, 96, 96  # branch2: 1x1 -> 64, 3x3 -> 96, 3x3 -> 96
C3 = 64                    # branch3: avgpool, 1x1 -> 64
CA = C0 + C1A              # 144 : stage-1 group A (branch0 | branch1 1x1)
CB = C2A + C3              # 128 : stage-1 group B (branch2 1x1 | branch3 1x1)
COUT = C0 + C1 + C2 + C3   # 320 : concatenated output channels
GUARD = 8                  # scratch guard rows


# --------------------------------------------------------------------------
# Fused Pallas kernel (one batch element per grid step).
#
# Coordinate system: the input/output are flattened over (H, W+4) with two
# zero columns on each side ("flat padded" layout, Wp = W+4, LR = H*Wp).
# Row r of any (LR, C) tensor is image position (r // Wp, r % Wp - 2).
# A conv tap (kh, kw) of a padding-p conv is then just a contiguous slab of
# the scratch shifted by (kh-p)*Wp + (kw-p) rows; the kw shift is folded into
# the scratch layout (kw-shifted writes), so every tap-row kh is one matmul
# with K = k*Cin.
# --------------------------------------------------------------------------
def _mixed5b_kernel(x_ref, wa_ref, ba_ref, wb_ref, bb_ref,
                    w5_ref, b5_ref, w3a_ref, b3a_ref, w3b_ref, b3b_ref,
                    bp_ref, mask_ref, inv_ref,
                    o_ref,
                    ps1, ps2a, ps2b, ps3,
                    *, H, W):
    Wp = W + 4
    LR = H * Wp
    M = (H + 4) * Wp
    G = GUARD
    PAD_LEN = G + M
    BLO = G + 2 * Wp + 2              # zero band [0, BLO)
    BHI = G + (H + 2) * Wp - 2        # zero band [BHI, PAD_LEN)

    # ---- refresh the zero borders of the scratches (no cross-step state,
    #      safe under megacore/"parallel"; interior is fully rewritten) ------
    for ref, width, dt in ((ps1, 5 * C1A, jnp.bfloat16),
                           (ps2a, 3 * C2A, jnp.bfloat16),
                           (ps2b, 3 * C2B, jnp.bfloat16),
                           (ps3, C3, jnp.float32)):
        ref[pl.ds(0, BLO), :] = jnp.zeros((BLO, width), dt)
        ref[pl.ds(BHI, PAD_LEN - BHI), :] = jnp.zeros((PAD_LEN - BHI, width), dt)

    mask = mask_ref[...]              # (LR, 1) f32: 1.0 on real image columns
    xb = x_ref[0]                     # (LR, 192) bf16

    # ---- stage 1 group A: branch0 1x1 (96) | branch1 1x1 (48), one matmul --
    acc_a = jnp.dot(xb, wa_ref[...], preferred_element_type=jnp.float32)
    acc_a = acc_a + ba_ref[...]
    y0 = jnp.maximum(acc_a[:, :C0], 0.0)
    o_ref[0, :, 0:C0] = y0.astype(o_ref.dtype)          # early store, branch0

    # branch1 mid, masked to zero on the padded columns, kw-shifted into ps1
    t1 = (jnp.maximum(acc_a[:, C0:CA], 0.0) * mask).astype(jnp.bfloat16)
    for kw in range(5):
        ps1[pl.ds(G + 2 * Wp + 2 - kw, LR), pl.ds(kw * C1A, C1A)] = t1

    # ---- branch 1: 5x5 conv = 5 matmuls, K = 5*48 = 240 ---------------------
    acc1 = jnp.zeros((LR, C1), jnp.float32)
    for kh in range(5):
        patch = ps1[pl.ds(G + kh * Wp, LR), :]           # (LR, 240), contiguous
        acc1 = acc1 + jnp.dot(patch, w5_ref[kh],
                              preferred_element_type=jnp.float32)
    y1 = jnp.maximum(acc1 + b5_ref[...], 0.0)
    o_ref[0, :, C0:C0 + C1] = y1.astype(o_ref.dtype)     # early store, branch1

    # ---- stage 1 group B: branch2 1x1 (64) | branch3 1x1 (64, bias later) ---
    acc_b = jnp.dot(xb, wb_ref[...], preferred_element_type=jnp.float32)
    acc_b = acc_b + bb_ref[...]
    t2 = (jnp.maximum(acc_b[:, :C2A], 0.0) * mask).astype(jnp.bfloat16)
    for kw in range(3):
        ps2a[pl.ds(G + 2 * Wp + 1 - kw, LR), pl.ds(kw * C2A, C2A)] = t2
    # branch3 pre-pool: 1x1 conv output, no bias / no ReLU before the pool;
    # already exactly zero on padded columns because x is zero there.
    ps3[pl.ds(G + 2 * Wp, LR), :] = acc_b[:, C2A:CB]

    # ---- branch 2: 3x3 conv (K=192) then 3x3 conv (K=288) -------------------
    acc2 = jnp.zeros((LR, C2B), jnp.float32)
    for kh in range(3):
        patch = ps2a[pl.ds(G + (kh + 1) * Wp, LR), :]    # (LR, 192)
        acc2 = acc2 + jnp.dot(patch, w3a_ref[kh],
                              preferred_element_type=jnp.float32)
    t2b = (jnp.maximum(acc2 + b3a_ref[...], 0.0) * mask).astype(jnp.bfloat16)
    for kw in range(3):
        ps2b[pl.ds(G + 2 * Wp + 1 - kw, LR), pl.ds(kw * C2B, C2B)] = t2b

    acc3 = jnp.zeros((LR, C2), jnp.float32)
    for kh in range(3):
        patch = ps2b[pl.ds(G + (kh + 1) * Wp, LR), :]    # (LR, 288)
        acc3 = acc3 + jnp.dot(patch, w3b_ref[kh],
                              preferred_element_type=jnp.float32)
    y2 = jnp.maximum(acc3 + b3b_ref[...], 0.0)
    o_ref[0, :, C0 + C1:C0 + C1 + C2] = y2.astype(o_ref.dtype)

    # ---- branch 3: 3x3 avg-pool (count_include_pad=False) = 9 slab adds -----
    psum = jnp.zeros((LR, C3), jnp.float32)
    for kh in range(3):
        for kw in range(3):
            psum = psum + ps3[pl.ds(G + (kh + 1) * Wp + (kw - 1), LR), :]
    y3 = jnp.maximum(psum * inv_ref[...] + bp_ref[...], 0.0)
    o_ref[0, :, C0 + C1 + C2:COUT] = y3.astype(o_ref.dtype)


# --------------------------------------------------------------------------
# pallas_call wrapper
# --------------------------------------------------------------------------
def _mixed5b_pallas(x2d, params, mask, inv, H, W):
    N, LR, _ = x2d.shape
    Wp = W + 4
    PAD_LEN = GUARD + (H + 4) * Wp
    kern = functools.partial(_mixed5b_kernel, H=H, W=W)

    flops = int(2 * N * LR * (CIN * (CA + CB) + 5 * (5 * C1A) * C1
                              + 3 * (3 * C2A) * C2B + 3 * (3 * C2B) * C2)
                + N * LR * C3 * 12)
    weight_bytes = int((CIN * (CA + CB) + 25 * C1A * C1
                        + 9 * C2A * C2B + 9 * C2B * C2) * 2)
    bytes_accessed = int(N * LR * CIN * 2 + N * LR * COUT * 2 + weight_bytes)

    return pl.pallas_call(
        kern,
        out_shape=jax.ShapeDtypeStruct((N, LR, COUT), jnp.bfloat16),
        grid=(N,),
        in_specs=[
            pl.BlockSpec((1, LR, CIN), lambda n: (n, 0, 0)),
            pl.BlockSpec((CIN, CA), lambda n: (0, 0)),
            pl.BlockSpec((1, CA), lambda n: (0, 0)),
            pl.BlockSpec((CIN, CB), lambda n: (0, 0)),
            pl.BlockSpec((1, CB), lambda n: (0, 0)),
            pl.BlockSpec((5, 5 * C1A, C1), lambda n: (0, 0, 0)),
            pl.BlockSpec((1, C1), lambda n: (0, 0)),
            pl.BlockSpec((3, 3 * C2A, C2B), lambda n: (0, 0, 0)),
            pl.BlockSpec((1, C2B), lambda n: (0, 0)),
            pl.BlockSpec((3, 3 * C2B, C2), lambda n: (0, 0, 0)),
            pl.BlockSpec((1, C2), lambda n: (0, 0)),
            pl.BlockSpec((1, C3), lambda n: (0, 0)),
            pl.BlockSpec((LR, 1), lambda n: (0, 0)),
            pl.BlockSpec((LR, 1), lambda n: (0, 0)),
        ],
        out_specs=pl.BlockSpec((1, LR, COUT), lambda n: (n, 0, 0)),
        scratch_shapes=[
            pltpu.VMEM((PAD_LEN, 5 * C1A), jnp.bfloat16),   # branch1 mid, kw-packed
            pltpu.VMEM((PAD_LEN, 3 * C2A), jnp.bfloat16),   # branch2 mid a, kw-packed
            pltpu.VMEM((PAD_LEN, 3 * C2B), jnp.bfloat16),   # branch2 mid b, kw-packed
            pltpu.VMEM((PAD_LEN, C3), jnp.float32),         # branch3 pre-pool
        ],
        compiler_params=pltpu.CompilerParams(
            dimension_semantics=("parallel",),
            vmem_limit_bytes=32 * 1024 * 1024),
        cost_estimate=pl.CostEstimate(flops=flops, transcendentals=0,
                                      bytes_accessed=bytes_accessed),
    )(x2d, params["wa"], params["ba"], params["wb"], params["bb"],
      params["w5"], params["b5"], params["w3a"], params["b3a"],
      params["w3b"], params["b3b"], params["bp"], mask, inv)


# --------------------------------------------------------------------------
# Parameters (deterministic; BN scale folded into weights, bf16)
# --------------------------------------------------------------------------
def _basic_conv(key, cin, cout, k):
    kw_, kg, kb = jax.random.split(key, 3)
    fan_in = cin * k * k
    w = jax.random.normal(kw_, (k, k, cin, cout), jnp.float32) / np.sqrt(fan_in)
    gamma = 1.0 + 0.1 * jax.random.normal(kg, (cout,), jnp.float32)
    beta = 0.1 * jax.random.normal(kb, (cout,), jnp.float32)
    scale = gamma / np.sqrt(1.0 + BN_EPS)      # inference BN fold (mean=0, var=1)
    return (w * scale).astype(jnp.bfloat16), beta.astype(jnp.float32)


def make_mixed_5b_params(key):
    ks = jax.random.split(key, 7)
    w_b0, b_b0 = _basic_conv(ks[0], CIN, C0, 1)
    w_b1_0, b_b1_0 = _basic_conv(ks[1], CIN, C1A, 1)
    w_b1_1, b_b1_1 = _basic_conv(ks[2], C1A, C1, 5)
    w_b2_0, b_b2_0 = _basic_conv(ks[3], CIN, C2A, 1)
    w_b2_1, b_b2_1 = _basic_conv(ks[4], C2A, C2B, 3)
    w_b2_2, b_b2_2 = _basic_conv(ks[5], C2B, C2, 3)
    w_b3_1, b_b3_1 = _basic_conv(ks[6], CIN, C3, 1)

    kernel_params = {
        "wa": jnp.concatenate([w_b0.reshape(CIN, C0),
                               w_b1_0.reshape(CIN, C1A)], axis=1),
        "ba": jnp.concatenate([b_b0, b_b1_0]).reshape(1, CA),
        "wb": jnp.concatenate([w_b2_0.reshape(CIN, C2A),
                               w_b3_1.reshape(CIN, C3)], axis=1),
        "bb": jnp.concatenate([b_b2_0, jnp.zeros((C3,), jnp.float32)]).reshape(1, CB),
        # kw packed into the matmul K dimension: (kh, kw*Cin, Cout)
        "w5": w_b1_1.reshape(5, 5 * C1A, C1),
        "b5": b_b1_1.reshape(1, C1),
        "w3a": w_b2_1.reshape(3, 3 * C2A, C2B),
        "b3a": b_b2_1.reshape(1, C2B),
        "w3b": w_b2_2.reshape(3, 3 * C2B, C2),
        "b3b": b_b2_2.reshape(1, C2),
        "bp": b_b3_1.reshape(1, C3),     # branch3 bias, added after the pool
    }
    ref_params = {
        "w_b0": w_b0, "b_b0": b_b0, "w_b1_0": w_b1_0, "b_b1_0": b_b1_0,
        "w_b1_1": w_b1_1, "b_b1_1": b_b1_1, "w_b2_0": w_b2_0, "b_b2_0": b_b2_0,
        "w_b2_1": w_b2_1, "b_b2_1": b_b2_1, "w_b2_2": w_b2_2, "b_b2_2": b_b2_2,
        "w_b3_1": w_b3_1, "b_b3_1": b_b3_1,
    }
    return kernel_params, ref_params


def _make_mask_inv(H, W):
    """(LR,1) interior-column mask and per-position 1/valid_count for the
    3x3/stride-1/pad-1 avg-pool with count_include_pad=False."""
    Wp = W + 4
    mask = np.zeros((H, Wp, 1), np.float32)
    mask[:, 2:2 + W, :] = 1.0
    inv = np.zeros((H, Wp, 1), np.float32)
    for h in range(H):
        ch = min(h + 1, H - 1) - max(h - 1, 0) + 1
        for w in range(W):
            cw = min(w + 1, W - 1) - max(w - 1, 0) + 1
            inv[h, w + 2, 0] = 1.0 / float(ch * cw)
    return (jnp.asarray(mask.reshape(H * Wp, 1)),
            jnp.asarray(inv.reshape(H * Wp, 1)))


@jax.jit
def mixed_5b_forward(params, x_nchw):
    """PyTorch NCHW in/out contract; out channels = 96+64+96+64 = 320."""
    x = jnp.transpose(x_nchw, (0, 2, 3, 1))                    # NCHW -> NHWC
    N, H, W, _ = x.shape
    Wp = W + 4
    # zero-pad the width by 2 on each side -> the kernel's flat padded layout
    xp = jnp.pad(x, ((0, 0), (0, 0), (2, 2), (0, 0))).astype(jnp.bfloat16)
    x2d = xp.reshape(N, H * Wp, CIN)
    mask, inv = _make_mask_inv(H, W)                           # trace-time consts
    out = _mixed5b_pallas(x2d, params, mask, inv, H, W)        # (N, H*Wp, 320) bf16
    out = out.reshape(N, H, Wp, COUT)[:, :, 2:2 + W, :]
    return jnp.transpose(out, (0, 3, 1, 2)).astype(jnp.float32)


# --------------------------------------------------------------------------
# Pure-JAX reference (mirrors the kernel's bf16 rounding of activations)
# --------------------------------------------------------------------------
def _conv_bn_relu_ref(x, w, b, pad):
    y = lax.conv_general_dilated(
        x, w.astype(jnp.float32), window_strides=(1, 1),
        padding=[(pad, pad), (pad, pad)],
        dimension_numbers=("NHWC", "HWIO", "NHWC"))
    return jax.nn.relu(y + b)


@jax.jit
def mixed_5b_reference(p, x_nchw):
    x = jnp.transpose(x_nchw, (0, 2, 3, 1)).astype(jnp.bfloat16).astype(jnp.float32)
    r = lambda t: t.astype(jnp.bfloat16).astype(jnp.float32)

    y0 = _conv_bn_relu_ref(x, p["w_b0"], p["b_b0"], 0)
    t1 = r(_conv_bn_relu_ref(x, p["w_b1_0"], p["b_b1_0"], 0))
    y1 = _conv_bn_relu_ref(t1, p["w_b1_1"], p["b_b1_1"], 2)
    t2 = r(_conv_bn_relu_ref(x, p["w_b2_0"], p["b_b2_0"], 0))
    t2b = r(_conv_bn_relu_ref(t2, p["w_b2_1"], p["b_b2_1"], 1))
    y2 = _conv_bn_relu_ref(t2b, p["w_b2_2"], p["b_b2_2"], 1)

    win, strd = (1, 3, 3, 1), (1, 1, 1, 1)
    padcfg = [(0, 0), (1, 1), (1, 1), (0, 0)]
    s = lax.reduce_window(x, 0.0, lax.add, win, strd, padcfg)
    cnt = lax.reduce_window(jnp.ones_like(x[..., :1]), 0.0, lax.add, win, strd, padcfg)
    y3 = _conv_bn_relu_ref(s / cnt, p["w_b3_1"], p["b_b3_1"], 0)

    out = jnp.concatenate([y0, y1, y2, y3], axis=-1)
    return jnp.transpose(out, (0, 3, 1, 2))


# --------------------------------------------------------------------------
if __name__ == "__main__":
    key = jax.random.PRNGKey(0)
    kparam, kx = jax.random.split(key)

    params, ref_params = make_mixed_5b_params(kparam)
    # Mixed_5b requires 192 input channels; keep batch/spatial small.
    x = jax.random.normal(kx, (2, 192, 8, 8), jnp.float32)

    out = jax.block_until_ready(mixed_5b_forward(params, x))

    assert out.shape == (2, 320, 8, 8), out.shape
    assert bool(jnp.all(jnp.isfinite(out)))
    assert bool(jnp.all(out >= 0.0))          # every branch ends in ReLU

    ref = jax.block_until_ready(mixed_5b_reference(ref_params, x))
    np.testing.assert_allclose(np.asarray(out), np.asarray(ref),
                               rtol=5e-2, atol=5e-2)

    print("KERNEL_OK")
</pallas_src>

<mosaic_0001>
module attributes {stable_mosaic.version = 11 : i64} {
  func.func @_mixed5b_kernel(%arg0: i32, %arg1: memref<1x96x192xbf16, #tpu.memory_space<vmem>>, %arg2: memref<192x144xbf16, #tpu.memory_space<vmem>>, %arg3: memref<1x144xf32, #tpu.memory_space<vmem>>, %arg4: memref<192x128xbf16, #tpu.memory_space<vmem>>, %arg5: memref<1x128xf32, #tpu.memory_space<vmem>>, %arg6: memref<5x240x64xbf16, #tpu.memory_space<vmem>>, %arg7: memref<1x64xf32, #tpu.memory_space<vmem>>, %arg8: memref<3x192x96xbf16, #tpu.memory_space<vmem>>, %arg9: memref<1x96xf32, #tpu.memory_space<vmem>>, %arg10: memref<3x288x96xbf16, #tpu.memory_space<vmem>>, %arg11: memref<1x96xf32, #tpu.memory_space<vmem>>, %arg12: memref<1x64xf32, #tpu.memory_space<vmem>>, %arg13: memref<96x1xf32, #tpu.memory_space<vmem>>, %arg14: memref<96x1xf32, #tpu.memory_space<vmem>>, %arg15: memref<1x96x320xbf16, #tpu.memory_space<vmem>>, %arg16: memref<152x240xbf16, #tpu.memory_space<vmem>>, %arg17: memref<152x192xbf16, #tpu.memory_space<vmem>>, %arg18: memref<152x288xbf16, #tpu.memory_space<vmem>>, %arg19: memref<152x64xf32, #tpu.memory_space<vmem>>) attributes {dimension_semantics = [#tpu.dimension_semantics<parallel>], iteration_bounds = array<i64: 2>, scalar_prefetch = 0 : i64, scratch_operands = 4 : i64, tpu.core_type = #tpu.core_type<tc>, window_params = [{transform_indices = @transform_0, window_bounds = array<i64: 1, 96, 192>}, {pipeline_mode = #tpu.pipeline_mode<synchronous>, transform_indices = @transform_1, window_bounds = array<i64: 192, 144>}, {pipeline_mode = #tpu.pipeline_mode<synchronous>, transform_indices = @transform_2, window_bounds = array<i64: 1, 144>}, {pipeline_mode = #tpu.pipeline_mode<synchronous>, transform_indices = @transform_3, window_bounds = array<i64: 192, 128>}, {pipeline_mode = #tpu.pipeline_mode<synchronous>, transform_indices = @transform_4, window_bounds = array<i64: 1, 128>}, {pipeline_mode = #tpu.pipeline_mode<synchronous>, transform_indices = @transform_5, window_bounds = array<i64: 5, 240, 64>}, {pipeline_mode = #tpu.pipeline_mode<synchronous>, transform_indices = @transform_6, window_bounds = array<i64: 1, 64>}, {pipeline_mode = #tpu.pipeline_mode<synchronous>, transform_indices = @transform_7, window_bounds = array<i64: 3, 192, 96>}, {pipeline_mode = #tpu.pipeline_mode<synchronous>, transform_indices = @transform_8, window_bounds = array<i64: 1, 96>}, {pipeline_mode = #tpu.pipeline_mode<synchronous>, transform_indices = @transform_9, window_bounds = array<i64: 3, 288, 96>}, {pipeline_mode = #tpu.pipeline_mode<synchronous>, transform_indices = @transform_10, window_bounds = array<i64: 1, 96>}, {pipeline_mode = #tpu.pipeline_mode<synchronous>, transform_indices = @transform_11, window_bounds = array<i64: 1, 64>}, {pipeline_mode = #tpu.pipeline_mode<synchronous>, transform_indices = @transform_12, window_bounds = array<i64: 96, 1>}, {pipeline_mode = #tpu.pipeline_mode<synchronous>, transform_indices = @transform_13, window_bounds = array<i64: 96, 1>}, {transform_indices = @transform_14, window_bounds = array<i64: 1, 96, 320>}]} {
    %cst = arith.constant 0.000000e+00 : bf16
    %0 = vector.broadcast %cst : bf16 to vector<34x240xbf16>
    %c0 = arith.constant 0 : index
    %c0_0 = arith.constant 0 : index
    %1 = vector.load %arg16[%c0, %c0_0] : memref<152x240xbf16, #tpu.memory_space<vmem>>, vector<34x240xbf16>
    tpu.vector_store %arg16[%c0, %c0_0], %0 {strides = array<i32>} : memref<152x240xbf16, #tpu.memory_space<vmem>>, vector<34x240xbf16>,
    %cst_1 = arith.constant 0.000000e+00 : bf16
    %2 = vector.broadcast %cst_1 : bf16 to vector<26x240xbf16>
    %c126 = arith.constant 126 : index
    %c0_2 = arith.constant 0 : index
    %3 = vector.load %arg16[%c126, %c0_2] : memref<152x240xbf16, #tpu.memory_space<vmem>>, vector<26x240xbf16>
    tpu.vector_store %arg16[%c126, %c0_2], %2 {strides = array<i32>} : memref<152x240xbf16, #tpu.memory_space<vmem>>, vector<26x240xbf16>,
    %cst_3 = arith.constant 0.000000e+00 : bf16
    %4 = vector.broadcast %cst_3 : bf16 to vector<34x192xbf16>
    %c0_4 = arith.constant 0 : index
    %c0_5 = arith.constant 0 : index
    %5 = vector.load %arg17[%c0_4, %c0_5] : memref<152x192xbf16, #tpu.memory_space<vmem>>, vector<34x192xbf16>
    tpu.vector_store %arg17[%c0_4, %c0_5], %4 {strides = array<i32>} : memref<152x192xbf16, #tpu.memory_space<vmem>>, vector<34x192xbf16>,
    %cst_6 = arith.constant 0.000000e+00 : bf16
    %6 = vector.broadcast %cst_6 : bf16 to vector<26x192xbf16>
    %c126_7 = arith.constant 126 : index
    %c0_8 = arith.constant 0 : index
    %7 = vector.load %arg17[%c126_7, %c0_8] : memref<152x192xbf16, #tpu.memory_space<vmem>>, vector<26x192xbf16>
    tpu.vector_store %arg17[%c126_7, %c0_8], %6 {strides = array<i32>} : memref<152x192xbf16, #tpu.memory_space<vmem>>, vector<26x192xbf16>,
    %cst_9 = arith.constant 0.000000e+00 : bf16
    %8 = vector.broadcast %cst_9 : bf16 to vector<34x288xbf16>
    %c0_10 = arith.constant 0 : index
    %c0_11 = arith.constant 0 : index
    %9 = vector.load %arg18[%c0_10, %c0_11] : memref<152x288xbf16, #tpu.memory_space<vmem>>, vector<34x288xbf16>
    tpu.vector_store %arg18[%c0_10, %c0_11], %8 {strides = array<i32>} : memref<152x288xbf16, #tpu.memory_space<vmem>>, vector<34x288xbf16>,
    %cst_12 = arith.constant 0.000000e+00 : bf16
    %10 = vector.broadcast %cst_12 : bf16 to vector<26x288xbf16>
    %c126_13 = arith.constant 126 : index
    %c0_14 = arith.constant 0 : index
    %11 = vector.load %arg18[%c126_13, %c0_14] : memref<152x288xbf16, #tpu.memory_space<vmem>>, vector<26x288xbf16>
    tpu.vector_store %arg18[%c126_13, %c0_14], %10 {strides = array<i32>} : memref<152x288xbf16, #tpu.memory_space<vmem>>, vector<26x288xbf16>,
    %cst_15 = arith.constant 0.000000e+00 : f32
    %12 = vector.broadcast %cst_15 : f32 to vector<34x64xf32>
    %c0_16 = arith.constant 0 : index
    %c0_17 = arith.constant 0 : index
    %13 = vector.load %arg19[%c0_16, %c0_17] : memref<152x64xf32, #tpu.memory_space<vmem>>, vector<34x64xf32>
    tpu.vector_store %arg19[%c0_16, %c0_17], %12 {strides = array<i32>} : memref<152x64xf32, #tpu.memory_space<vmem>>, vector<34x64xf32>,
    %cst_18 = arith.constant 0.000000e+00 : f32
    %14 = vector.broadcast %cst_18 : f32 to vector<26x64xf32>
    %c126_19 = arith.constant 126 : index
    %c0_20 = arith.constant 0 : index
    %15 = vector.load %arg19[%c126_19, %c0_20] : memref<152x64xf32, #tpu.memory_space<vmem>>, vector<26x64xf32>
    tpu.vector_store %arg19[%c126_19, %c0_20], %14 {strides = array<i32>} : memref<152x64xf32, #tpu.memory_space<vmem>>, vector<26x64xf32>,
    %c0_21 = arith.constant 0 : index
    %c0_22 = arith.constant 0 : index
    %16 = vector.load %arg13[%c0_21, %c0_22] : memref<96x1xf32, #tpu.memory_space<vmem>>, vector<96x1xf32>
    %c0_23 = arith.constant 0 : index
    %c0_24 = arith.constant 0 : index
    %c0_25 = arith.constant 0 : index
    %17 = vector.load %arg1[%c0_23, %c0_24, %c0_25] : memref<1x96x192xbf16, #tpu.memory_space<vmem>>, vector<1x96x192xbf16>
    %18 = vector.shape_cast %17 : vector<1x96x192xbf16> to vector<96x192xbf16>
    %c0_26 = arith.constant 0 : index
    %c0_27 = arith.constant 0 : index
    %19 = vector.load %arg2[%c0_26, %c0_27] : memref<192x144xbf16, #tpu.memory_space<vmem>>, vector<192x144xbf16>
    %cst_28 = arith.constant dense<0.000000e+00> : vector<96x144xf32>
    %20 = tpu.matmul %18, %19, %cst_28 {dimension_numbers = #tpu.dot_dimension_numbers<[1], [0], [0], [1], [0, 0, 1, 1], [], []>} : vector<96x192xbf16>, vector<192x144xbf16>, vector<96x144xf32> -> vector<96x144xf32>
    %c0_29 = arith.constant 0 : index
    %c0_30 = arith.constant 0 : index
    %21 = vector.load %arg3[%c0_29, %c0_30] : memref<1x144xf32, #tpu.memory_space<vmem>>, vector<1x144xf32>
    %22 = vector.broadcast %21 : vector<1x144xf32> to vector<96x144xf32>
    %23 = arith.addf %20, %22 : vector<96x144xf32>
    %24 = vector.extract_strided_slice %23 {offsets = [0, 0], sizes = [96, 96], strides = [1, 1]} : vector<96x144xf32> to vector<96x96xf32>
    %cst_31 = arith.constant 0.000000e+00 : f32
    %25 = vector.broadcast %cst_31 : f32 to vector<96x96xf32>
    %26 = arith.maximumf %24, %25 : vector<96x96xf32>
    %27 = arith.truncf %26 : vector<96x96xf32> to vector<96x96xbf16>
    %c0_32 = arith.constant 0 : index
    %c0_33 = arith.constant 0 : index
    %c0_34 = arith.constant 0 : index
    %28 = vector.load %arg15[%c0_32, %c0_33, %c0_34] : memref<1x96x320xbf16, #tpu.memory_space<vmem>>, vector<1x96x96xbf16>
    %29 = vector.shape_cast %28 : vector<1x96x96xbf16> to vector<96x96xbf16>
    %30 = vector.shape_cast %27 : vector<96x96xbf16> to vector<1x96x96xbf16>
    tpu.vector_store %arg15[%c0_32, %c0_33, %c0_34], %30 {strides = array<i32>} : memref<1x96x320xbf16, #tpu.memory_space<vmem>>, vector<1x96x96xbf16>,
    %31 = vector.extract_strided_slice %23 {offsets = [0, 96], sizes = [96, 48], strides = [1, 1]} : vector<96x144xf32> to vector<96x48xf32>
    %cst_35 = arith.constant 0.000000e+00 : f32
    %32 = vector.broadcast %cst_35 : f32 to vector<96x48xf32>
    %33 = arith.maximumf %31, %32 : vector<96x48xf32>
    %34 = vector.broadcast %16 : vector<96x1xf32> to vector<96x48xf32>
    %35 = arith.mulf %33, %34 : vector<96x48xf32>
    %36 = arith.truncf %35 : vector<96x48xf32> to vector<96x48xbf16>
    %c34 = arith.constant 34 : index
    %c0_36 = arith.constant 0 : index
    %37 = vector.load %arg16[%c34, %c0_36] : memref<152x240xbf16, #tpu.memory_space<vmem>>, vector<96x48xbf16>
    tpu.vector_store %arg16[%c34, %c0_36], %36 {strides = array<i32>} : memref<152x240xbf16, #tpu.memory_space<vmem>>, vector<96x48xbf16>,
    %c33 = arith.constant 33 : index
    %c48 = arith.constant 48 : index
    %38 = vector.load %arg16[%c33, %c48] : memref<152x240xbf16, #tpu.memory_space<vmem>>, vector<96x48xbf16>
    tpu.vector_store %arg16[%c33, %c48], %36 {strides = array<i32>} : memref<152x240xbf16, #tpu.memory_space<vmem>>, vector<96x48xbf16>,
    %c32 = arith.constant 32 : index
    %c96 = arith.constant 96 : index
    %39 = vector.load %arg16[%c32, %c96] : memref<152x240xbf16, #tpu.memory_space<vmem>>, vector<96x48xbf16>
    tpu.vector_store %arg16[%c32, %c96], %36 {strides = array<i32>} : memref<152x240xbf16, #tpu.memory_space<vmem>>, vector<96x48xbf16>,
    %c31 = arith.constant 31 : index
    %c144 = arith.constant 144 : index
    %40 = vector.load %arg16[%c31, %c144] : memref<152x240xbf16, #tpu.memory_space<vmem>>, vector<96x48xbf16>
    tpu.vector_store %arg16[%c31, %c144], %36 {strides = array<i32>} : memref<152x240xbf16, #tpu.memory_space<vmem>>, vector<96x48xbf16>,
    %c30 = arith.constant 30 : index
    %c192 = arith.constant 192 : index
    %41 = vector.load %arg16[%c30, %c192] : memref<152x240xbf16, #tpu.memory_space<vmem>>, vector<96x48xbf16>
    tpu.vector_store %arg16[%c30, %c192], %36 {strides = array<i32>} : memref<152x240xbf16, #tpu.memory_space<vmem>>, vector<96x48xbf16>,
    %cst_37 = arith.constant 0.000000e+00 : f32
    %42 = vector.broadcast %cst_37 : f32 to vector<96x64xf32>
    %c8 = arith.constant 8 : index
    %c0_38 = arith.constant 0 : index
    %43 = vector.load %arg16[%c8, %c0_38] : memref<152x240xbf16, #tpu.memory_space<vmem>>, vector<96x240xbf16>
    %c0_39 = arith.constant 0 : index
    %c0_40 = arith.constant 0 : index
    %c0_41 = arith.constant 0 : index
    %44 = vector.load %arg6[%c0_39, %c0_40, %c0_41] : memref<5x240x64xbf16, #tpu.memory_space<vmem>>, vector<1x240x64xbf16>
    %45 = vector.shape_cast %44 : vector<1x240x64xbf16> to vector<240x64xbf16>
    %cst_42 = arith.constant dense<0.000000e+00> : vector<96x64xf32>
    %46 = tpu.matmul %43, %45, %cst_42 {dimension_numbers = #tpu.dot_dimension_numbers<[1], [0], [0], [1], [0, 0, 1, 1], [], []>} : vector<96x240xbf16>, vector<240x64xbf16>, vector<96x64xf32> -> vector<96x64xf32>
    %47 = arith.addf %42, %46 : vector<96x64xf32>
    %c20 = arith.constant 20 : index
    %c0_43 = arith.constant 0 : index
    %48 = vector.load %arg16[%c20, %c0_43] : memref<152x240xbf16, #tpu.memory_space<vmem>>, vector<96x240xbf16>
    %c1 = arith.constant 1 : index
    %c0_44 = arith.constant 0 : index
    %c0_45 = arith.constant 0 : index
    %49 = vector.load %arg6[%c1, %c0_44, %c0_45] : memref<5x240x64xbf16, #tpu.memory_space<vmem>>, vector<1x240x64xbf16>
    %50 = vector.shape_cast %49 : vector<1x240x64xbf16> to vector<240x64xbf16>
    %cst_46 = arith.constant dense<0.000000e+00> : vector<96x64xf32>
    %51 = tpu.matmul %48, %50, %cst_46 {dimension_numbers = #tpu.dot_dimension_numbers<[1], [0], [0], [1], [0, 0, 1, 1], [], []>} : vector<96x240xbf16>, vector<240x64xbf16>, vector<96x64xf32> -> vector<96x64xf32>
    %52 = arith.addf %47, %51 : vector<96x64xf32>
    %c32_47 = arith.constant 32 : index
    %c0_48 = arith.constant 0 : index
    %53 = vector.load %arg16[%c32_47, %c0_48] : memref<152x240xbf16, #tpu.memory_space<vmem>>, vector<96x240xbf16>
    %c2 = arith.constant 2 : index
    %c0_49 = arith.constant 0 : index
    %c0_50 = arith.constant 0 : index
    %54 = vector.load %arg6[%c2, %c0_49, %c0_50] : memref<5x240x64xbf16, #tpu.memory_space<vmem>>, vector<1x240x64xbf16>
    %55 = vector.shape_cast %54 : vector<1x240x64xbf16> to vector<240x64xbf16>
    %cst_51 = arith.constant dense<0.000000e+00> : vector<96x64xf32>
    %56 = tpu.matmul %53, %55, %cst_51 {dimension_numbers = #tpu.dot_dimension_numbers<[1], [0], [0], [1], [0, 0, 1, 1], [], []>} : vector<96x240xbf16>, vector<240x64xbf16>, vector<96x64xf32> -> vector<96x64xf32>
    %57 = arith.addf %52, %56 : vector<96x64xf32>
    %c44 = arith.constant 44 : index
    %c0_52 = arith.constant 0 : index
    %58 = vector.load %arg16[%c44, %c0_52] : memref<152x240xbf16, #tpu.memory_space<vmem>>, vector<96x240xbf16>
    %c3 = arith.constant 3 : index
    %c0_53 = arith.constant 0 : index
    %c0_54 = arith.constant 0 : index
    %59 = vector.load %arg6[%c3, %c0_53, %c0_54] : memref<5x240x64xbf16, #tpu.memory_space<vmem>>, vector<1x240x64xbf16>
    %60 = vector.shape_cast %59 : vector<1x240x64xbf16> to vector<240x64xbf16>
    %cst_55 = arith.constant dense<0.000000e+00> : vector<96x64xf32>
    %61 = tpu.matmul %58, %60, %cst_55 {dimension_numbers = #tpu.dot_dimension_numbers<[1], [0], [0], [1], [0, 0, 1, 1], [], []>} : vector<96x240xbf16>, vector<240x64xbf16>, vector<96x64xf32> -> vector<96x64xf32>
    %62 = arith.addf %57, %61 : vector<96x64xf32>
    %c56 = arith.constant 56 : index
    %c0_56 = arith.constant 0 : index
    %63 = vector.load %arg16[%c56, %c0_56] : memref<152x240xbf16, #tpu.memory_space<vmem>>, vector<96x240xbf16>
    %c4 = arith.constant 4 : index
    %c0_57 = arith.constant 0 : index
    %c0_58 = arith.constant 0 : index
    %64 = vector.load %arg6[%c4, %c0_57, %c0_58] : memref<5x240x64xbf16, #tpu.memory_space<vmem>>, vector<1x240x64xbf16>
    %65 = vector.shape_cast %64 : vector<1x240x64xbf16> to vector<240x64xbf16>
    %cst_59 = arith.constant dense<0.000000e+00> : vector<96x64xf32>
    %66 = tpu.matmul %63, %65, %cst_59 {dimension_numbers = #tpu.dot_dimension_numbers<[1], [0], [0], [1], [0, 0, 1, 1], [], []>} : vector<96x240xbf16>, vector<240x64xbf16>, vector<96x64xf32> -> vector<96x64xf32>
    %67 = arith.addf %62, %66 : vector<96x64xf32>
    %c0_60 = arith.constant 0 : index
    %c0_61 = arith.constant 0 : index
    %68 = vector.load %arg7[%c0_60, %c0_61] : memref<1x64xf32, #tpu.memory_space<vmem>>, vector<1x64xf32>
    %69 = vector.broadcast %68 : vector<1x64xf32> to vector<96x64xf32>
    %70 = arith.addf %67, %69 : vector<96x64xf32>
    %cst_62 = arith.constant 0.000000e+00 : f32
    %71 = vector.broadcast %cst_62 : f32 to vector<96x64xf32>
    %72 = arith.maximumf %70, %71 : vector<96x64xf32>
    %73 = arith.truncf %72 : vector<96x64xf32> to vector<96x64xbf16>
    %c0_63 = arith.constant 0 : index
    %c0_64 = arith.constant 0 : index
    %c96_65 = arith.constant 96 : index
    %74 = vector.load %arg15[%c0_63, %c0_64, %c96_65] : memref<1x96x320xbf16, #tpu.memory_space<vmem>>, vector<1x96x64xbf16>
    %75 = vector.shape_cast %74 : vector<1x96x64xbf16> to vector<96x64xbf16>
    %76 = vector.shape_cast %73 : vector<96x64xbf16> to vector<1x96x64xbf16>
    tpu.vector_store %arg15[%c0_63, %c0_64, %c96_65], %76 {strides = array<i32>} : memref<1x96x320xbf16, #tpu.memory_space<vmem>>, vector<1x96x64xbf16>,
    %c0_66 = arith.constant 0 : index
    %c0_67 = arith.constant 0 : index
    %77 = vector.load %arg4[%c0_66, %c0_67] : memref<192x128xbf16, #tpu.memory_space<vmem>>, vector<192x128xbf16>
    %cst_68 = arith.constant dense<0.000000e+00> : vector<96x128xf32>
    %78 = tpu.matmul %18, %77, %cst_68 {dimension_numbers = #tpu.dot_dimension_numbers<[1], [0], [0], [1], [0, 0, 1, 1], [], []>} : vector<96x192xbf16>, vector<192x128xbf16>, vector<96x128xf32> -> vector<96x128xf32>
    %c0_69 = arith.constant 0 : index
    %c0_70 = arith.constant 0 : index
    %79 = vector.load %arg5[%c0_69, %c0_70] : memref<1x128xf32, #tpu.memory_space<vmem>>, vector<1x128xf32>
    %80 = vector.broadcast %79 : vector<1x128xf32> to vector<96x128xf32>
    %81 = arith.addf %78, %80 : vector<96x128xf32>
    %82 = vector.extract_strided_slice %81 {offsets = [0, 0], sizes = [96, 64], strides = [1, 1]} : vector<96x128xf32> to vector<96x64xf32>
    %cst_71 = arith.constant 0.000000e+00 : f32
    %83 = vector.broadcast %cst_71 : f32 to vector<96x64xf32>
    %84 = arith.maximumf %82, %83 : vector<96x64xf32>
    %85 = vector.broadcast %16 : vector<96x1xf32> to vector<96x64xf32>
    %86 = arith.mulf %84, %85 : vector<96x64xf32>
    %87 = arith.truncf %86 : vector<96x64xf32> to vector<96x64xbf16>
    %c33_72 = arith.constant 33 : index
    %c0_73 = arith.constant 0 : index
    %88 = vector.load %arg17[%c33_72, %c0_73] : memref<152x192xbf16, #tpu.memory_space<vmem>>, vector<96x64xbf16>
    tpu.vector_store %arg17[%c33_72, %c0_73], %87 {strides = array<i32>} : memref<152x192xbf16, #tpu.memory_space<vmem>>, vector<96x64xbf16>,
    %c32_74 = arith.constant 32 : index
    %c64 = arith.constant 64 : index
    %89 = vector.load %arg17[%c32_74, %c64] : memref<152x192xbf16, #tpu.memory_space<vmem>>, vector<96x64xbf16>
    tpu.vector_store %arg17[%c32_74, %c64], %87 {strides = array<i32>} : memref<152x192xbf16, #tpu.memory_space<vmem>>, vector<96x64xbf16>,
    %c31_75 = arith.constant 31 : index
    %c128 = arith.constant 128 : index
    %90 = vector.load %arg17[%c31_75, %c128] : memref<152x192xbf16, #tpu.memory_space<vmem>>, vector<96x64xbf16>
    tpu.vector_store %arg17[%c31_75, %c128], %87 {strides = array<i32>} : memref<152x192xbf16, #tpu.memory_space<vmem>>, vector<96x64xbf16>,
    %91 = vector.extract_strided_slice %81 {offsets = [0, 64], sizes = [96, 64], strides = [1, 1]} : vector<96x128xf32> to vector<96x64xf32>
    %c32_76 = arith.constant 32 : index
    %c0_77 = arith.constant 0 : index
    %92 = vector.load %arg19[%c32_76, %c0_77] : memref<152x64xf32, #tpu.memory_space<vmem>>, vector<96x64xf32>
    tpu.vector_store %arg19[%c32_76, %c0_77], %91 {strides = array<i32>} : memref<152x64xf32, #tpu.memory_space<vmem>>, vector<96x64xf32>,
    %cst_78 = arith.constant 0.000000e+00 : f32
    %93 = vector.broadcast %cst_78 : f32 to vector<96x96xf32>
    %c20_79 = arith.constant 20 : index
    %c0_80 = arith.constant 0 : index
    %94 = vector.load %arg17[%c20_79, %c0_80] : memref<152x192xbf16, #tpu.memory_space<vmem>>, vector<96x192xbf16>
    %c0_81 = arith.constant 0 : index
    %c0_82 = arith.constant 0 : index
    %c0_83 = arith.constant 0 : index
    %95 = vector.load %arg8[%c0_81, %c0_82, %c0_83] : memref<3x192x96xbf16, #tpu.memory_space<vmem>>, vector<1x192x96xbf16>
    %96 = vector.shape_cast %95 : vector<1x192x96xbf16> to vector<192x96xbf16>
    %cst_84 = arith.constant dense<0.000000e+00> : vector<96x96xf32>
    %97 = tpu.matmul %94, %96, %cst_84 {dimension_numbers = #tpu.dot_dimension_numbers<[1], [0], [0], [1], [0, 0, 1, 1], [], []>} : vector<96x192xbf16>, vector<192x96xbf16>, vector<96x96xf32> -> vector<96x96xf32>
    %98 = arith.addf %93, %97 : vector<96x96xf32>
    %c32_85 = arith.constant 32 : index
    %c0_86 = arith.constant 0 : index
    %99 = vector.load %arg17[%c32_85, %c0_86] : memref<152x192xbf16, #tpu.memory_space<vmem>>, vector<96x192xbf16>
    %c1_87 = arith.constant 1 : index
    %c0_88 = arith.constant 0 : index
    %c0_89 = arith.constant 0 : index
    %100 = vector.load %arg8[%c1_87, %c0_88, %c0_89] : memref<3x192x96xbf16, #tpu.memory_space<vmem>>, vector<1x192x96xbf16>
    %101 = vector.shape_cast %100 : vector<1x192x96xbf16> to vector<192x96xbf16>
    %cst_90 = arith.constant dense<0.000000e+00> : vector<96x96xf32>
    %102 = tpu.matmul %99, %101, %cst_90 {dimension_numbers = #tpu.dot_dimension_numbers<[1], [0], [0], [1], [0, 0, 1, 1], [], []>} : vector<96x192xbf16>, vector<192x96xbf16>, vector<96x96xf32> -> vector<96x96xf32>
    %103 = arith.addf %98, %102 : vector<96x96xf32>
    %c44_91 = arith.constant 44 : index
    %c0_92 = arith.constant 0 : index
    %104 = vector.load %arg17[%c44_91, %c0_92] : memref<152x192xbf16, #tpu.memory_space<vmem>>, vector<96x192xbf16>
    %c2_93 = arith.constant 2 : index
    %c0_94 = arith.constant 0 : index
    %c0_95 = arith.constant 0 : index
    %105 = vector.load %arg8[%c2_93, %c0_94, %c0_95] : memref<3x192x96xbf16, #tpu.memory_space<vmem>>, vector<1x192x96xbf16>
    %106 = vector.shape_cast %105 : vector<1x192x96xbf16> to vector<192x96xbf16>
    %cst_96 = arith.constant dense<0.000000e+00> : vector<96x96xf32>
    %107 = tpu.matmul %104, %106, %cst_96 {dimension_numbers = #tpu.dot_dimension_numbers<[1], [0], [0], [1], [0, 0, 1, 1], [], []>} : vector<96x192xbf16>, vector<192x96xbf16>, vector<96x96xf32> -> vector<96x96xf32>
    %108 = arith.addf %103, %107 : vector<96x96xf32>
    %c0_97 = arith.constant 0 : index
    %c0_98 = arith.constant 0 : index
    %109 = vector.load %arg9[%c0_97, %c0_98] : memref<1x96xf32, #tpu.memory_space<vmem>>, vector<1x96xf32>
    %110 = vector.broadcast %109 : vector<1x96xf32> to vector<96x96xf32>
    %111 = arith.addf %108, %110 : vector<96x96xf32>
    %cst_99 = arith.constant 0.000000e+00 : f32
    %112 = vector.broadcast %cst_99 : f32 to vector<96x96xf32>
    %113 = arith.maximumf %111, %112 : vector<96x96xf32>
    %114 = vector.broadcast %16 : vector<96x1xf32> to vector<96x96xf32>
    %115 = arith.mulf %113, %114 : vector<96x96xf32>
    %116 = arith.truncf %115 : vector<96x96xf32> to vector<96x96xbf16>
    %c33_100 = arith.constant 33 : index
    %c0_101 = arith.constant 0 : index
    %117 = vector.load %arg18[%c33_100, %c0_101] : memref<152x288xbf16, #tpu.memory_space<vmem>>, vector<96x96xbf16>
    tpu.vector_store %arg18[%c33_100, %c0_101], %116 {strides = array<i32>} : memref<152x288xbf16, #tpu.memory_space<vmem>>, vector<96x96xbf16>,
    %c32_102 = arith.constant 32 : index
    %c96_103 = arith.constant 96 : index
    %118 = vector.load %arg18[%c32_102, %c96_103] : memref<152x288xbf16, #tpu.memory_space<vmem>>, vector<96x96xbf16>
    tpu.vector_store %arg18[%c32_102, %c96_103], %116 {strides = array<i32>} : memref<152x288xbf16, #tpu.memory_space<vmem>>, vector<96x96xbf16>,
    %c31_104 = arith.constant 31 : index
    %c192_105 = arith.constant 192 : index
    %119 = vector.load %arg18[%c31_104, %c192_105] : memref<152x288xbf16, #tpu.memory_space<vmem>>, vector<96x96xbf16>
    tpu.vector_store %arg18[%c31_104, %c192_105], %116 {strides = array<i32>} : memref<152x288xbf16, #tpu.memory_space<vmem>>, vector<96x96xbf16>,
    %cst_106 = arith.constant 0.000000e+00 : f32
    %120 = vector.broadcast %cst_106 : f32 to vector<96x96xf32>
    %c20_107 = arith.constant 20 : index
    %c0_108 = arith.constant 0 : index
    %121 = vector.load %arg18[%c20_107, %c0_108] : memref<152x288xbf16, #tpu.memory_space<vmem>>, vector<96x288xbf16>
    %c0_109 = arith.constant 0 : index
    %c0_110 = arith.constant 0 : index
    %c0_111 = arith.constant 0 : index
    %122 = vector.load %arg10[%c0_109, %c0_110, %c0_111] : memref<3x288x96xbf16, #tpu.memory_space<vmem>>, vector<1x288x96xbf16>
    %123 = vector.shape_cast %122 : vector<1x288x96xbf16> to vector<288x96xbf16>
    %cst_112 = arith.constant dense<0.000000e+00> : vector<96x96xf32>
    %124 = tpu.matmul %121, %123, %cst_112 {dimension_numbers = #tpu.dot_dimension_numbers<[1], [0], [0], [1], [0, 0, 1, 1], [], []>} : vector<96x288xbf16>, vector<288x96xbf16>, vector<96x96xf32> -> vector<96x96xf32>
    %125 = arith.addf %120, %124 : vector<96x96xf32>
    %c32_113 = arith.constant 32 : index
    %c0_114 = arith.constant 0 : index
    %126 = vector.load %arg18[%c32_113, %c0_114] : memref<152x288xbf16, #tpu.memory_space<vmem>>, vector<96x288xbf16>
    %c1_115 = arith.constant 1 : index
    %c0_116 = arith.constant 0 : index
    %c0_117 = arith.constant 0 : index
    %127 = vector.load %arg10[%c1_115, %c0_116, %c0_117] : memref<3x288x96xbf16, #tpu.memory_space<vmem>>, vector<1x288x96xbf16>
    %128 = vector.shape_cast %127 : vector<1x288x96xbf16> to vector<288x96xbf16>
    %cst_118 = arith.constant dense<0.000000e+00> : vector<96x96xf32>
    %129 = tpu.matmul %126, %128, %cst_118 {dimension_numbers = #tpu.dot_dimension_numbers<[1], [0], [0], [1], [0, 0, 1, 1], [], []>} : vector<96x288xbf16>, vector<288x96xbf16>, vector<96x96xf32> -> vector<96x96xf32>
    %130 = arith.addf %125, %129 : vector<96x96xf32>
    %c44_119 = arith.constant 44 : index
    %c0_120 = arith.constant 0 : index
    %131 = vector.load %arg18[%c44_119, %c0_120] : memref<152x288xbf16, #tpu.memory_space<vmem>>, vector<96x288xbf16>
    %c2_121 = arith.constant 2 : index
    %c0_122 = arith.constant 0 : index
    %c0_123 = arith.constant 0 : index
    %132 = vector.load %arg10[%c2_121, %c0_122, %c0_123] : memref<3x288x96xbf16, #tpu.memory_space<vmem>>, vector<1x288x96xbf16>
    %133 = vector.shape_cast %132 : vector<1x288x96xbf16> to vector<288x96xbf16>
    %cst_124 = arith.constant dense<0.000000e+00> : vector<96x96xf32>
    %134 = tpu.matmul %131, %133, %cst_124 {dimension_numbers = #tpu.dot_dimension_numbers<[1], [0], [0], [1], [0, 0, 1, 1], [], []>} : vector<96x288xbf16>, vector<288x96xbf16>, vector<96x96xf32> -> vector<96x96xf32>
    %135 = arith.addf %130, %134 : vector<96x96xf32>
    %c0_125 = arith.constant 0 : index
    %c0_126 = arith.constant 0 : index
    %136 = vector.load %arg11[%c0_125, %c0_126] : memref<1x96xf32, #tpu.memory_space<vmem>>, vector<1x96xf32>
    %137 = vector.broadcast %136 : vector<1x96xf32> to vector<96x96xf32>
    %138 = arith.addf %135, %137 : vector<96x96xf32>
    %cst_127 = arith.constant 0.000000e+00 : f32
    %139 = vector.broadcast %cst_127 : f32 to vector<96x96xf32>
    %140 = arith.maximumf %138, %139 : vector<96x96xf32>
    %141 = arith.truncf %140 : vector<96x96xf32> to vector<96x96xbf16>
    %c0_128 = arith.constant 0 : index
    %c0_129 = arith.constant 0 : index
    %c160 = arith.constant 160 : index
    %142 = vector.load %arg15[%c0_128, %c0_129, %c160] : memref<1x96x320xbf16, #tpu.memory_space<vmem>>, vector<1x96x96xbf16>
    %143 = vector.shape_cast %142 : vector<1x96x96xbf16> to vector<96x96xbf16>
    %144 = vector.shape_cast %141 : vector<96x96xbf16> to vector<1x96x96xbf16>
    tpu.vector_store %arg15[%c0_128, %c0_129, %c160], %144 {strides = array<i32>} : memref<1x96x320xbf16, #tpu.memory_space<vmem>>, vector<1x96x96xbf16>,
    %cst_130 = arith.constant 0.000000e+00 : f32
    %145 = vector.broadcast %cst_130 : f32 to vector<96x64xf32>
    %c19 = arith.constant 19 : index
    %c0_131 = arith.constant 0 : index
    %146 = vector.load %arg19[%c19, %c0_131] : memref<152x64xf32, #tpu.memory_space<vmem>>, vector<96x64xf32>
    %147 = arith.addf %145, %146 : vector<96x64xf32>
    %c20_132 = arith.constant 20 : index
    %c0_133 = arith.constant 0 : index
    %148 = vector.load %arg19[%c20_132, %c0_133] : memref<152x64xf32, #tpu.memory_space<vmem>>, vector<96x64xf32>
    %149 = arith.addf %147, %148 : vector<96x64xf32>
    %c21 = arith.constant 21 : index
    %c0_134 = arith.constant 0 : index
    %150 = vector.load %arg19[%c21, %c0_134] : memref<152x64xf32, #tpu.memory_space<vmem>>, vector<96x64xf32>
    %151 = arith.addf %149, %150 : vector<96x64xf32>
    %c31_135 = arith.constant 31 : index
    %c0_136 = arith.constant 0 : index
    %152 = vector.load %arg19[%c31_135, %c0_136] : memref<152x64xf32, #tpu.memory_space<vmem>>, vector<96x64xf32>
    %153 = arith.addf %151, %152 : vector<96x64xf32>
    %c32_137 = arith.constant 32 : index
    %c0_138 = arith.constant 0 : index
    %154 = vector.load %arg19[%c32_137, %c0_138] : memref<152x64xf32, #tpu.memory_space<vmem>>, vector<96x64xf32>
    %155 = arith.addf %153, %154 : vector<96x64xf32>
    %c33_139 = arith.constant 33 : index
    %c0_140 = arith.constant 0 : index
    %156 = vector.load %arg19[%c33_139, %c0_140] : memref<152x64xf32, #tpu.memory_space<vmem>>, vector<96x64xf32>
    %157 = arith.addf %155, %156 : vector<96x64xf32>
    %c43 = arith.constant 43 : index
    %c0_141 = arith.constant 0 : index
    %158 = vector.load %arg19[%c43, %c0_141] : memref<152x64xf32, #tpu.memory_space<vmem>>, vector<96x64xf32>
    %159 = arith.addf %157, %158 : vector<96x64xf32>
    %c44_142 = arith.constant 44 : index
    %c0_143 = arith.constant 0 : index
    %160 = vector.load %arg19[%c44_142, %c0_143] : memref<152x64xf32, #tpu.memory_space<vmem>>, vector<96x64xf32>
    %161 = arith.addf %159, %160 : vector<96x64xf32>
    %c45 = arith.constant 45 : index
    %c0_144 = arith.constant 0 : index
    %162 = vector.load %arg19[%c45, %c0_144] : memref<152x64xf32, #tpu.memory_space<vmem>>, vector<96x64xf32>
    %163 = arith.addf %161, %162 : vector<96x64xf32>
    %c0_145 = arith.constant 0 : index
    %c0_146 = arith.constant 0 : index
    %164 = vector.load %arg14[%c0_145, %c0_146] : memref<96x1xf32, #tpu.memory_space<vmem>>, vector<96x1xf32>
    %165 = vector.broadcast %164 : vector<96x1xf32> to vector<96x64xf32>
    %166 = arith.mulf %163, %165 : vector<96x64xf32>
    %c0_147 = arith.constant 0 : index
    %c0_148 = arith.constant 0 : index
    %167 = vector.load %arg12[%c0_147, %c0_148] : memref<1x64xf32, #tpu.memory_space<vmem>>, vector<1x64xf32>
    %168 = vector.broadcast %167 : vector<1x64xf32> to vector<96x64xf32>
    %169 = arith.addf %166, %168 : vector<96x64xf32>
    %cst_149 = arith.constant 0.000000e+00 : f32
    %170 = vector.broadcast %cst_149 : f32 to vector<96x64xf32>
    %171 = arith.maximumf %169, %170 : vector<96x64xf32>
    %172 = arith.truncf %171 : vector<96x64xf32> to vector<96x64xbf16>
    %c0_150 = arith.constant 0 : index
    %c0_151 = arith.constant 0 : index
    %c256 = arith.constant 256 : index
    %173 = vector.load %arg15[%c0_150, %c0_151, %c256] : memref<1x96x320xbf16, #tpu.memory_space<vmem>>, vector<1x96x64xbf16>
    %174 = vector.shape_cast %173 : vector<1x96x64xbf16> to vector<96x64xbf16>
    %175 = vector.shape_cast %172 : vector<96x64xbf16> to vector<1x96x64xbf16>
    tpu.vector_store %arg15[%c0_150, %c0_151, %c256], %175 {strides = array<i32>} : memref<1x96x320xbf16, #tpu.memory_space<vmem>>, vector<1x96x64xbf16>,
    return
  }
  func.func @transform_0(%arg0: i32) -> (i32, i32, i32) {
    %c0_i32 = arith.constant 0 : i32
    %c0_i32_0 = arith.constant 0 : i32
    %c0_i32_1 = arith.constant 0 : i32
    return %arg0, %c0_i32, %c0_i32_0 : i32, i32, i32
  }
  func.func @transform_1(%arg0: i32) -> (i32, i32) {
    %c0_i32 = arith.constant 0 : i32
    %c0_i32_0 = arith.constant 0 : i32
    %c0_i32_1 = arith.constant 0 : i32
    return %c0_i32, %c0_i32_0 : i32, i32
  }
  func.func @transform_2(%arg0: i32) -> (i32, i32) {
    %c0_i32 = arith.constant 0 : i32
    %c0_i32_0 = arith.constant 0 : i32
    %c0_i32_1 = arith.constant 0 : i32
    return %c0_i32, %c0_i32_0 : i32, i32
  }
  func.func @transform_3(%arg0: i32) -> (i32, i32) {
    %c0_i32 = arith.constant 0 : i32
    %c0_i32_0 = arith.constant 0 : i32
    %c0_i32_1 = arith.constant 0 : i32
    return %c0_i32, %c0_i32_0 : i32, i32
  }
  func.func @transform_4(%arg0: i32) -> (i32, i32) {
    %c0_i32 = arith.constant 0 : i32
    %c0_i32_0 = arith.constant 0 : i32
    %c0_i32_1 = arith.constant 0 : i32
    return %c0_i32, %c0_i32_0 : i32, i32
  }
  func.func @transform_5(%arg0: i32) -> (i32, i32, i32) {
    %c0_i32 = arith.constant 0 : i32
    %c0_i32_0 = arith.constant 0 : i32
    %c0_i32_1 = arith.constant 0 : i32
    %c0_i32_2 = arith.constant 0 : i32
    return %c0_i32, %c0_i32_0, %c0_i32_1 : i32, i32, i32
  }
  func.func @transform_6(%arg0: i32) -> (i32, i32) {
    %c0_i32 = arith.constant 0 : i32
    %c0_i32_0 = arith.constant 0 : i32
    %c0_i32_1 = arith.constant 0 : i32
    return %c0_i32, %c0_i32_0 : i32, i32
  }
  func.func @transform_7(%arg0: i32) -> (i32, i32, i32) {
    %c0_i32 = arith.constant 0 : i32
    %c0_i32_0 = arith.constant 0 : i32
    %c0_i32_1 = arith.constant 0 : i32
    %c0_i32_2 = arith.constant 0 : i32
    return %c0_i32, %c0_i32_0, %c0_i32_1 : i32, i32, i32
  }
  func.func @transform_8(%arg0: i32) -> (i32, i32) {
    %c0_i32 = arith.constant 0 : i32
    %c0_i32_0 = arith.constant 0 : i32
    %c0_i32_1 = arith.constant 0 : i32
    return %c0_i32, %c0_i32_0 : i32, i32
  }
  func.func @transform_9(%arg0: i32) -> (i32, i32, i32) {
    %c0_i32 = arith.constant 0 : i32
    %c0_i32_0 = arith.constant 0 : i32
    %c0_i32_1 = arith.constant 0 : i32
    %c0_i32_2 = arith.constant 0 : i32
    return %c0_i32, %c0_i32_0, %c0_i32_1 : i32, i32, i32
  }
  func.func @transform_10(%arg0: i32) -> (i32, i32) {
    %c0_i32 = arith.constant 0 : i32
    %c0_i32_0 = arith.constant 0 : i32
    %c0_i32_1 = arith.constant 0 : i32
    return %c0_i32, %c0_i32_0 : i32, i32
  }
  func.func @transform_11(%arg0: i32) -> (i32, i32) {
    %c0_i32 = arith.constant 0 : i32
    %c0_i32_0 = arith.constant 0 : i32
    %c0_i32_1 = arith.constant 0 : i32
    return %c0_i32, %c0_i32_0 : i32, i32
  }
  func.func @transform_12(%arg0: i32) -> (i32, i32) {
    %c0_i32 = arith.constant 0 : i32
    %c0_i32_0 = arith.constant 0 : i32
    %c0_i32_1 = arith.constant 0 : i32
    return %c0_i32, %c0_i32_0 : i32, i32
  }
  func.func @transform_13(%arg0: i32) -> (i32, i32) {
    %c0_i32 = arith.constant 0 : i32
    %c0_i32_0 = arith.constant 0 : i32
    %c0_i32_1 = arith.constant 0 : i32
    return %c0_i32, %c0_i32_0 : i32, i32
  }
  func.func @transform_14(%arg0: i32) -> (i32, i32, i32) {
    %c0_i32 = arith.constant 0 : i32
    %c0_i32_0 = arith.constant 0 : i32
    %c0_i32_1 = arith.constant 0 : i32
    return %arg0, %c0_i32, %c0_i32_0 : i32, i32, i32
  }
}

</mosaic_0001>

<bundles_post_ra>
// kernel: mixed_5b_forward.1
= control target key start
LH: loop header
LB: loop body
LE: loop exit
PB: predicated region body
PF: predicated region fallthrough
CT: control target
= control target key end

     0   :  { %s8660_s29 = smov 0   ;;  %s11766_s0 = inlined_call_operand.vmem [shape: bf16[2,96,192], index: 0, kind: input, shape index: {}]   ;;  %s11767_s1 = inlined_call_operand.vmem [shape: bf16[192,144], index: 1, kind: input, shape index: {}]   ;;  %s11768_s2 = inlined_call_operand.vmem [shape: f32[1,144], index: 2, kind: input, shape index: {}]   ;;  %s11769_s3 = inlined_call_operand.vmem [shape: bf16[192,128], index: 3, kind: input, shape index: {}]   ;;  %s11770_s4 = inlined_call_operand.vmem [shape: f32[1,128], index: 4, kind: input, shape index: {}]   ;;  %s11771_s5 = inlined_call_operand.vmem [shape: bf16[5,240,64], index: 5, kind: input, shape index: {}]   ;;  %s11772_s6 = inlined_call_operand.vmem [shape: f32[1,64], index: 6, kind: input, shape index: {}]   ;;  %s11773_s7 = inlined_call_operand.vmem [shape: bf16[3,192,96], index: 7, kind: input, shape index: {}]   ;;  %s11774_s8 = inlined_call_operand.vmem [shape: f32[1,96], index: 8, kind: input, shape index: {}]   ;;  %s11775_s9 = inlined_call_operand.vmem [shape: bf16[3,288,96], index: 9, kind: input, shape index: {}]   ;;  %s11776_s10 = inlined_call_operand.vmem [shape: f32[1,96], index: 10, kind: input, shape index: {}]   ;;  %s11777_s11 = inlined_call_operand.vmem [shape: f32[1,64], index: 11, kind: input, shape index: {}]   ;;  %s11778_s12 = inlined_call_operand.vmem [shape: f32[96,1], index: 12, kind: input, shape index: {}]   ;;  %s11779_s13 = inlined_call_operand.vmem [shape: f32[96,1], index: 13, kind: input, shape index: {}]   ;;  %s11780_s14 = inlined_call_operand.vmem [shape: bf16[2,96,320], index: 14, kind: output, shape index: {}]  }
   0x1 LB: > { %s7080_s30 = sadd.s32 4294967295, %s8576_s29   ;;  %p7084_p0 = scmp.ge.s32.totalorder %s8576_s29, 1  ;;  %s8576_s29 = sphi %s8660_s29, %s24_s29  }
   0x2   : > { %p412_p1 = scmp.lt.s32.totalorder %s8576_s29, 3 }
   0x4   : > { %p413_p2 = pnand %p7084_p0, %p412_p1 }
   0x6   : > { %416 = sbr.rel (%p413_p2) target bundleno = 1766 (0x6e6), region = 76 }
   0xd   : > { %v8239_v0 = vld [vmem:[%s11767_s1 + $0x4] ss:$8 sps:$4 sm:$0xff]   ;;  %v8241_v1 = vld [vmem:[%s11767_s1] ss:$8 sps:$4 sm:$0xff]   ;;  %v8242_v2 = vld [vmem:[%s11767_s1 + $0x14] ss:$8 sps:$4 sm:$0xff]   ;;  %v584_v57 = vlaneseq }
   0xe   : > { %786 = vmatprep.subr.bf16.mxu0 %v8239_v0  ;;  %p8677_p3 = scmp.lt.s32.totalorder %s7080_s30, 1  ;;  %v8578_v3 = vmov 0   ;;  %v8244_v4 = vld [vmem:[%s11767_s1 + $0x10] ss:$8 sps:$4 sm:$0xff]   ;;  %v8245_v5 = vld [vmem:[%s11767_s1 + $0x24] ss:$8 sps:$4 sm:$0xff]  }
   0xf   : > { %8237 = vset.pattern.permute.xlu0 %v8578_v3  ;;  %502 = vst [vmem:[#allocation4] sm:$0xff] %v8578_v3  ;;  %507 = vst [vmem:[#allocation4 + $0x18] sm:$0xff] %v8578_v3  ;;  %787 = vmatpush1.bf16.msra.mxu0 %v8241_v1  ;;  %v8247_v6 = vld [vmem:[%s11767_s1 + $0x20] ss:$8 sps:$4 sm:$0xff]   ;;  %v8248_v7 = vld [vmem:[%s11767_s1 + $0x34] ss:$8 sps:$4 sm:$0xff]  }
  0x10   : > { %509 = vst [vmem:[#allocation4 + $0x24] sm:$0xff] %v8578_v3  ;;  %511 = vst [vmem:[#allocation4 + $0x30] sm:$0x11] %v8578_v3  ;;  %8238 = vset.pattern.permute.xlu1 %v8578_v3  ;;  %788 = vmatprep.subr.bf16.mxu0 %v8242_v2  ;;  %s11937_s30 = smov (!%p8677_p3, %s7080_s30), 1  ;;  %v8250_v8 = vld [vmem:[%s11767_s1 + $0x30] ss:$8 sps:$4 sm:$0xff]  }
  0x11   : > { %514 = vst [vmem:[#allocation4 + $0xb4] sm:$0x88] %v8578_v3  ;;  %517 = vst [vmem:[#allocation4 + $0xc0] sm:$0xff] %v8578_v3  ;;  %1996 = vmatprep.subr.bf16.mxu1 %v8578_v3  ;;  %s8220_s16 = smul.u32 96, %s11937_s30  ;;  %v8251_v9 = vld [vmem:[%s11767_s1 + $0x44] ss:$8 sps:$4 sm:$0xff]  }
  0x12   : > { %519 = vst [vmem:[#allocation4 + $0xcc] sm:$0xff] %v8578_v3  ;;  %v8253_v10 = vld [vmem:[%s11767_s1 + $0x40] ss:$8 sps:$4 sm:$0xff]   ;;  %v8254_v11 = vld [vmem:[%s11767_s1 + $0x54] ss:$8 sps:$4 sm:$0xff]   ;;  %vm11785_vm0 = vcmask 523264  }
  0x13   : > { %789 = vmatpush1.bf16.msra.mxu0 %v8244_v4  ;;  %s8717_s23 = scalar_lea.vmem %s11766_s0, %s8220_s16  ;;  %v8256_v13 = vld [vmem:[%s11767_s1 + $0x50] ss:$8 sps:$4 sm:$0xff]   ;;  %v8257_v14 = vld [vmem:[%s11767_s1 + $0x64] ss:$8 sps:$4 sm:$0xff]   ;;  %v8259_v15 = vld [vmem:[%s11767_s1 + $0x60] ss:$8 sps:$4 sm:$0xff]  }
  0x14   : > { %790 = vmatprep.subr.bf16.mxu0 %v8245_v5  ;;  %v8277_v12 = vld [vmem:[%s8717_s23 + $0x4] ss:$8 sps:$4 sm:$0xff]   ;;  %v8260_v16 = vld [vmem:[%s11767_s1 + $0x74] ss:$8 sps:$4 sm:$0xff]   ;;  %v8262_v20 = vld [vmem:[%s11767_s1 + $0x70] ss:$8 sps:$4 sm:$0xff]  }
  0x15   : > { %7123 = vmatprep.mubr.msk.bf16.mxu0 %vm11785_vm0, %v8277_v12  ;;  %v534_v17 = vld [vmem:[%s11778_s12] sm:$0xff]  ;;  %v536_v18 = vld [vmem:[%s11778_s12 + $0x10] sm:$0xff]  ;;  %v535_v19 = vld [vmem:[%s11778_s12 + $0x8] sm:$0xff]  ;;  %v585_v63 = vshrl.u32 %v584_v57, 7  ;;  %s8221_s20 = smul.u32 144, %s11937_s30  ;;  %vm11782_vm1 = vcmask 781312  }
  0x16   : > { %966 = vperm.xlu0 %8237, %v534_v17   ;;  %976 = vperm.xlu1 %8238, %v536_v18   ;;  %v8263_v21 = vld [vmem:[%s11767_s1 + $0x84] ss:$8 sps:$4 sm:$0xff]   ;;  %v537_v22 = vld [vmem:[%s11778_s12 + $0x18] sm:$0xff]  ;;  %v8265_v24 = vld [vmem:[%s11767_s1 + $0x80] ss:$8 sps:$4 sm:$0xff]   ;;  %vm11784_vm2 = vcmask 1040384  }
  0x17   : > { %791 = vmatpush1.bf16.msra.mxu0 %v8247_v6  ;;  %v538_v23 = vld [vmem:[%s11778_s12 + $0x20] sm:$0xff]  ;;  %v539_v25 = vld [vmem:[%s11778_s12 + $0x28] sm:$0xff]  ;;  %v8266_v26 = vld [vmem:[%s11767_s1 + $0x94] ss:$8 sps:$4 sm:$0xff]   ;;  %v586_v2 = vsub.s32 0, %v585_v63  ;;  %v590_v4 = vsub.s32 1, %v585_v63  ;;  %s8901_s22 = scalar_lea.vmem %s11780_s14, %s8221_s20 }
  0x18   : > { %792 = vmatprep.subr.bf16.mxu0 %v8248_v7  ;;  %v540_v27 = vld [vmem:[%s11778_s12 + $0x30] sm:$0xff]  ;;  %v541_v29 = vld [vmem:[%s11778_s12 + $0x38] sm:$0xff]  ;;  %v8269_v30 = vld [vmem:[%s11767_s1 + $0xa4] ss:$8 sps:$4 sm:$0xff]   ;;  %vm477_vm3 = vcmask 913412   ;;  %vm1605_vm5 = vcmask 1042432  }
  0x19   : > { %v8268_v28 = vld [vmem:[%s11767_s1 + $0x90] ss:$8 sps:$4 sm:$0xff]   ;;  %v542_v31 = vld [vmem:[%s11778_s12 + $0x40] sm:$0xff]  ;;  %v543_v33 = vld [vmem:[%s11778_s12 + $0x48] sm:$0xff]  ;;  %vm1606_vm6 = vcmask 1046532   ;;  %vm1109_vm9 = vcmask 1044484  }
  0x1a   : > { %971 = vperm.xlu0 %8237, %v535_v19   ;;  %981 = vperm.xlu1 %8238, %v537_v22   ;;  %v8271_v32 = vld [vmem:[%s11767_s1 + $0xa0] ss:$8 sps:$4 sm:$0xff]   ;;  %v8272_v34 = vld [vmem:[%s11767_s1 + $0xb4] ss:$8 sps:$4 sm:$0xff]   ;;  %v8274_v36 = vld [vmem:[%s11767_s1 + $0xb0] ss:$8 sps:$4 sm:$0xff]  }
  0x1b   : > { %793 = vmatpush1.bf16.msra.mxu0 %v8250_v8  ;;  %v544_v35 = vld [vmem:[%s11778_s12 + $0x50] sm:$0xff]  ;;  %v545_v37 = vld [vmem:[%s11778_s12 + $0x58] sm:$0xff]  ;;  %v8275_v38 = vld [vmem:[%s8717_s23] ss:$8 sps:$4 sm:$0xff]   ;;  %vm11788_vm7 = vsmask.f32 3328 }
  0x1c   : > { %794 = vmatprep.subr.bf16.mxu0 %v8251_v9  ;;  %v8278_v39 = vld [vmem:[%s8717_s23 + $0x14] ss:$8 sps:$4 sm:$0xff]   ;;  %v8280_v40 = vld [vmem:[%s8717_s23 + $0x10] ss:$8 sps:$4 sm:$0xff]   ;;  %v8281_v41 = vld [vmem:[%s8717_s23 + $0x24] ss:$8 sps:$4 sm:$0xff]  }
  0x1d   : > { %v8283_v42 = vld [vmem:[%s8717_s23 + $0x20] ss:$8 sps:$4 sm:$0xff]   ;;  %v8284_v43 = vld [vmem:[%s8717_s23 + $0x34] ss:$8 sps:$4 sm:$0xff]   ;;  %v8286_v44 = vld [vmem:[%s8717_s23 + $0x30] ss:$8 sps:$4 sm:$0xff]  }
  0x1e   : > { %986 = vperm.xlu0 %8237, %v538_v23   ;;  %991 = vperm.xlu1 %8238, %v539_v25   ;;  %v8287_v45 = vld [vmem:[%s8717_s23 + $0x44] ss:$8 sps:$4 sm:$0xff]   ;;  %v8289_v46 = vld [vmem:[%s8717_s23 + $0x40] ss:$8 sps:$4 sm:$0xff]   ;;  %v8290_v47 = vld [vmem:[%s8717_s23 + $0x54] ss:$8 sps:$4 sm:$0xff]  }
  0x1f   : > { %795 = vmatpush1.bf16.msra.mxu0 %v8253_v10  ;;  %v8292_v48 = vld [vmem:[%s8717_s23 + $0x50] ss:$8 sps:$4 sm:$0xff]   ;;  %v8293_v49 = vld [vmem:[%s11771_s5] sm:$0xff]   ;;  %v8294_v50 = vld [vmem:[%s11771_s5 + $0x8] sm:$0xff]   ;;  %vm1455_vm8 = vsmask.f32 7440 }
  0x20   : > { %796 = vmatprep.subr.bf16.mxu0 %v8254_v11  ;;  %v8295_v51 = vld [vmem:[%s11771_s5 + $0x10] sm:$0xff]   ;;  %v8296_v52 = vld [vmem:[%s11771_s5 + $0x18] sm:$0xff]   ;;  %v8297_v53 = vld [vmem:[%s11771_s5 + $0x20] sm:$0xff]   ;;  %s8579_s18 = smov 32   ;;  %vm11786_vm11 = vsmask.f32 256 }
  0x21   : > { %v8298_v54 = vld [vmem:[%s11771_s5 + $0x28] sm:$0xff]   ;;  %v8299_v55 = vld [vmem:[%s11771_s5 + $0x78] sm:$0xff]   ;;  %v8300_v56 = vld [vmem:[%s11771_s5 + $0x30] sm:$0xff]   ;;  %vm1229_vm12 = vsmask.f32 4368  ;;  %s8580_s24 = smov 96  }
  0x22   : > { %996 = vperm.xlu0 %8237, %v540_v27   ;;  %1001 = vperm.xlu1 %8238, %v541_v29   ;;  %v8849_v58 = vld [vmem:[#allocation4] sm:$0xff]  ;;  %v8301_v59 = vld [vmem:[%s11771_s5 + $0x80] sm:$0xff]   ;;  %v8302_v60 = vld [vmem:[%s11771_s5 + $0x38] sm:$0xff]   ;;  %s8581_s15 = smov 80   ;;  %s8582_s16 = smov 48  }
  0x23   : > { %797 = vmatpush1.bf16.msra.mxu0 %v8256_v13  ;;  %1997 = vmatpush1.bf16.msra.mxu1 %v8299_v55  ;;  %v8303_v61 = vld [vmem:[%s11771_s5 + $0x88] sm:$0xff]   ;;  %v8304_v62 = vld [vmem:[%s11771_s5 + $0x40] sm:$0xff]   ;;  %v8305_v0 = vld [vmem:[%s11771_s5 + $0x90] sm:$0xff]  }
  0x24   : > { %798 = vmatprep.subr.bf16.mxu0 %v8257_v14  ;;  %1998 = vmatprep.subr.bf16.mxu1 %v8849_v58  ;;  %v8306_v1 = vld [vmem:[%s11771_s5 + $0x48] sm:$0xff]   ;;  %v8307_v5 = vld [vmem:[%s11771_s5 + $0x98] sm:$0xff]   ;;  %v8308_v6 = vld [vmem:[%s11771_s5 + $0x50] sm:$0xff]  }
  0x25   : > { %v8309_v23 = vld [vmem:[%s11771_s5 + $0xa0] sm:$0xff]   ;;  %vm478_vm4 = vmor %vm477_vm3, %vm11784_vm2  ;;  %vm469_vm3 = vcmask 1043456  }
  0x26   : > { %1006 = vperm.xlu0 %8237, %v542_v31   ;;  %1011 = vperm.xlu1 %8238, %v543_v33   ;;  %479 = vst.msk [vmem:[#allocation2 + $0x20] sm:$0x11] %vm478_vm4, %v8849_v58  ;;  %vm8947_vm10 = vmor %vm1605_vm5, %vm1606_vm6  ;;  %vm470_vm4 = vcmask 916484   ;;  %vm11781_vm6 = vcmask 523268  }
  0x27   : > { %799 = vmatpush1.bf16.msra.mxu0 %v8259_v15  ;;  %1999 = vmatpush1.bf16.msra.mxu1 %v8301_v59  ;;  %vm8982_vm13 = vmor %vm11784_vm2, %vm1109_vm9  ;;  %vm11783_vm9 = vcmask 1043459   ;;  %vm1440_vm2 = vcmask 130052  }
  0x28   : > { %800 = vmatprep.subr.bf16.mxu0 %v8260_v16  ;;  %2000 = vmatprep.subr.bf16.mxu1 %v8849_v58  ;;  %vm8996_vm14 = vmor %vm11788_vm7, %vm1455_vm8 }
  0x29   : > { %vm9043_vm15 = vmor %vm11786_vm11, %vm1229_vm12  ;;  %vm481_vm12 = vcmask 916487   ;;  %vm1682_vm11 = vcmask 785408  }
  0x2a   : > { %1016 = vperm.xlu0 %8237, %v544_v35   ;;  %1021 = vperm.xlu1 %8238, %v545_v37   ;;  %vm471_vm5 = vmor %vm470_vm4, %vm469_vm3  ;;  %vm1977_vm4 = vcmask 916480  }
  0x2b   : > { %801 = vmatpush1.bf16.msra.mxu0 %v8262_v20  ;;  %2001 = vmatpush1.bf16.msra.mxu1 %v8303_v61  ;;  %473 = vst.msk [vmem:[#allocation2 + $0x8] sm:$0xff] %vm471_vm5, %v8849_v58  ;;  %474 = vst.msk [vmem:[#allocation2 + $0x10] sm:$0xff] %vm471_vm5, %v8849_v58 }
  0x2c   : > { %802 = vmatprep.subr.bf16.mxu0 %v8263_v21  ;;  %2002 = vmatprep.subr.bf16.mxu1 %v8849_v58  ;;  %475 = vst.msk [vmem:[#allocation2 + $0x18] sm:$0xff] %vm471_vm5, %v8849_v58  ;;  %485 = vst.msk [vmem:[#allocation2 + $0x88] sm:$0xff] %vm471_vm5, %v8849_v58 }
  0x2d   : > { %486 = vst.msk [vmem:[#allocation2 + $0x90] sm:$0xff] %vm471_vm5, %v8849_v58  ;;  %484 = vst.msk [vmem:[#allocation2 + $0x80] sm:$0xff] %vm471_vm5, %v8849_v58  ;;  %vm1404_vm5 = vcmask 781696  }
  0x2e   : > { %vm488_vm8 = vmor %vm11781_vm6, %vm469_vm3  ;;  %vm1377_vm6 = vcmask 654336  }
  0x2f   : > { %803 = vmatpush1.bf16.msra.mxu0 %v8265_v24  ;;  %2003 = vmatpush1.bf16.msra.mxu1 %v8305_v0  ;;  %v8310_v24 = vld [vmem:[%s11771_s5 + $0x58] sm:$0xff]   ;;  %491 = vst.msk [vmem:[#allocation3 + $0x10] sm:$0xff] %vm488_vm8, %v8849_v58  ;;  %500 = vst.msk [vmem:[#allocation3 + $0x88] sm:$0xff] %vm488_vm8, %v8849_v58 }
  0x30   : > { %804 = vmatprep.subr.bf16.mxu0 %v8266_v26  ;;  %2004 = vmatprep.subr.bf16.mxu1 %v8849_v58  ;;  %492 = vst.msk [vmem:[#allocation3 + $0x18] sm:$0xff] %vm488_vm8, %v8849_v58  ;;  %499 = vst.msk [vmem:[#allocation3 + $0x80] sm:$0xff] %vm488_vm8, %v8849_v58  ;;  %vm11787_vm8 = vsmask.f32 7938 }
  0x31   : > { %vm482_vm3 = vmor %vm481_vm12, %vm11783_vm9  ;;  %vm1582_vm12 = vcmask 519299   ;;  %vm1555_vm9 = vcmask 392192  }
  0x32   : > { %483 = vst.msk [vmem:[#allocation2 + $0x78] sm:$0x88] %vm482_vm3, %v8849_v58  ;;  %vm1583_vm3 = vsmask.f32 7950 }
  0x33   : > { %805 = vmatpush1.bf16.msra.mxu0 %v8268_v28  ;;  %2005 = vmatpush1.bf16.msra.mxu1 %v8307_v5 }
  0x34   : > { %806 = vmatprep.subr.bf16.mxu0 %v8269_v30  ;;  %2006 = vmatprep.subr.bf16.mxu1 %v8849_v58 }
  0x37   : > { %807 = vmatpush1.bf16.msra.mxu0 %v8271_v32  ;;  %2007 = vmatpush1.bf16.msra.mxu1 %v8309_v23 }
  0x38   : > { %808 = vmatprep.subr.bf16.mxu0 %v8272_v34  ;;  %2008 = vmatprep.subr.bf16.mxu1 %v8849_v58 }
  0x3b   : > { %809 = vmatpush1.bf16.msra.mxu0 %v8274_v36 }
  0x3c   : > { %2209 = vmatprep.subr.bf16.mxu0 %v8578_v3 }
  0x3e   : > { %819 = vmatmul.mubr.bf16.vlgmr.msra.gmra.mrb[0].mxu0 %v8275_v38 }
  0x3f   : > { %7124 = vmatprep.mubr.msk.bf16.mxu0 %vm11785_vm0, %v8278_v39  ;;  %2210 = vmatpush1.bf16.msra.mxu0 %v8293_v49 }
  0x40   : > { %2211 = vmatprep.subr.bf16.mxu0 %v8578_v3 }
  0x43   : > { %2212 = vmatpush1.bf16.msra.mxu0 %v8294_v50 }
  0x44   : > { %2213 = vmatprep.subr.bf16.mxu0 %v8578_v3 }
  0x46   : > { %829 = vmatmul.mubr.bf16.gmra.mrb[4].mxu0 %v8280_v40 }
  0x47   : > { %7125 = vmatprep.mubr.msk.bf16.mxu0 %vm11785_vm0, %v8281_v41  ;;  %2214 = vmatpush1.bf16.msra.mxu0 %v8295_v51  ;;  %v8336_v51 = vld [vmem:[%s11771_s5 + $0x1a0] sm:$0xff]  }
  0x48   : > { %2215 = vmatprep.subr.bf16.mxu0 %v8578_v3 }
  0x4b   : > { %2216 = vmatpush1.bf16.msra.mxu0 %v8296_v52 }
  0x4c   : > { %2217 = vmatprep.subr.bf16.mxu0 %v8578_v3 }
  0x4e   : > { %839 = vmatmul.mubr.bf16.gmra.mrb[8].mxu0 %v8283_v42 }
  0x4f   : > { %7126 = vmatprep.mubr.msk.bf16.mxu0 %vm11785_vm0, %v8284_v43  ;;  %2218 = vmatpush1.bf16.msra.mxu0 %v8297_v53 }
  0x50   : > { %2219 = vmatprep.subr.bf16.mxu0 %v8578_v3 }
  0x53   : > { %2220 = vmatpush1.bf16.msra.mxu0 %v8298_v54 }
  0x54   : > { %2221 = vmatprep.subr.bf16.mxu0 %v8578_v3  ;;  %v582_v3 = vld [vmem:[%s11768_s2] sm:$0x3] }
  0x55   : > { %v8884_v7 = vrot.slane %v582_v3, %v586_v2  ;;  %v8888_v8 = vrot.slane %v582_v3, %v590_v4  ;;  %v8313_v3 = vld [vmem:[%s11771_s5 + $0xb0] sm:$0xff]   ;;  %v8314_v4 = vld [vmem:[%s11771_s5 + $0x68] sm:$0xff]  }
  0x56   : > { %849 = vmatmul.mubr.bf16.gmra.mrb[12].mxu0 %v8286_v44 }
  0x57   : > { %7127 = vmatprep.mubr.msk.bf16.mxu0 %vm11785_vm0, %v8287_v45  ;;  %2222 = vmatpush1.bf16.msra.mxu0 %v8300_v56 }
  0x58   : > { %2223 = vmatprep.subr.bf16.mxu0 %v8849_v58 }
  0x5b   : > { %2224 = vmatpush1.bf16.msra.mxu0 %v8302_v60 }
  0x5c   : > { %2225 = vmatprep.subr.bf16.mxu0 %v8849_v58 }
  0x5e   : > { %859 = vmatmul.mubr.bf16.gmra.mrb[16].mxu0 %v8289_v46  ;;  %v8311_v46 = vld [vmem:[%s11771_s5 + $0xa8] sm:$0xff]  }
  0x5f   : > { %7128 = vmatprep.mubr.msk.bf16.mxu0 %vm11785_vm0, %v8290_v47  ;;  %2226 = vmatpush1.bf16.msra.mxu0 %v8304_v62  ;;  %v8312_v47 = vld [vmem:[%s11771_s5 + $0x60] sm:$0xff]   ;;  %vm9419_vm0 = vmand %vm1582_vm12, %vm1583_vm3  ;;  %vm1588_vm12 = vcmask 519296  }
  0x60   : > { %2227 = vmatprep.subr.bf16.mxu0 %v8849_v58  ;;  %2009 = vmatpush1.bf16.msra.mxu1 %v8311_v46 }
  0x61   : > { %2010 = vmatprep.subr.bf16.mxu1 %v8849_v58 }
  0x63   : > { %2228 = vmatpush1.bf16.msra.mxu0 %v8306_v1 }
  0x64   : > { %2229 = vmatprep.subr.bf16.mxu0 %v8849_v58  ;;  %2011 = vmatpush1.bf16.msra.mxu1 %v8313_v3 }
  0x65   : > { %2012 = vmatprep.subr.bf16.mxu1 %v8849_v58 }
  0x66   : > { %869 = vmatmul.mubr.bf16.gmra.mrb[20].mxu0 %v8292_v48 }
  0x67   : > { %2230 = vmatpush1.bf16.msra.mxu0 %v8308_v6 }
  0x68   : > { %2231 = vmatprep.subr.bf16.mxu0 %v8849_v58 }
  0x6b   : > { %2232 = vmatpush1.bf16.msra.mxu0 %v8310_v24 }
  0x6c   : > { %2233 = vmatprep.subr.bf16.mxu0 %v8849_v58 }
  0x6f   : > { %2234 = vmatpush1.bf16.msra.mxu0 %v8312_v47 }
  0x70   : > { %2235 = vmatprep.subr.bf16.mxu0 %v8849_v58 }
  0x73   : > { %2236 = vmatpush1.bf16.msra.mxu0 %v8314_v4 }
  0x74   : > { %2237 = vmatprep.subr.bf16.mxu0 %v8849_v58 }
  0x95   : > { %v8891_v9 = vpop.permute.xlu0 %966  ;;  %v8919_v30 = vpop.permute.xlu1 %976 }
  0x99   : > { %v8911_v25 = vpop.permute.xlu0 %971  ;;  %v8953_v57 = vpop.permute.xlu1 %981 }
  0x9d   : > { %v9027_v46 = vpop.permute.xlu1 %991 }
 0x111   : > { %v820_v10 = vpop.f32.mrb[0].mxu0 }
 0x112   : > { %v821_v11 = vadd.f32 %v820_v10, %v8884_v7  ;;  %v822_v12 = vpop.f32.mrb[1].mxu0 }
 0x113   : > { %v823_v13 = vadd.f32 %v822_v12, %v8888_v8  ;;  %v824_v14 = vpop.f32.mrb[2].mxu0 }
 0x114   : > { %v879_v15 = vmax.f32 %v821_v11, 0.0  ;;  %v825_v16 = vadd.f32 %v824_v14, %v8884_v7  ;;  %v826_v17 = vpop.f32.mrb[3].mxu0 }
 0x115   : > { %v952_v18 = vmax.f32 %v823_v13, 0.0  ;;  %v827_v19 = vadd.f32 %v826_v17, %v8888_v8 }
 0x116   : > { %v7848_v20 = vpack.c.bf16 %v879_v15, %v879_v15  ;;  %v1024_v21 = vmul.f32 %v8891_v9, %v879_v15  ;;  %v880_v22 = vmax.f32 %v825_v16, 0.0 }
 0x117   : > { %v1025_v26 = vmul.f32 %v8891_v9, %v952_v18  ;;  %v953_v27 = vmax.f32 %v827_v19, 0.0 }
 0x118   : > { %940 = vst.msk [vmem:[%s8901_s22] sm:$0xf] %vm11782_vm1, %v7848_v20  ;;  %v7849_v28 = vpack.c.bf16 %v880_v22, %v880_v22  ;;  %v1026_v29 = vmul.f32 %v8911_v25, %v880_v22 }
 0x119   : > { %v8921_v31 = vpack.c.bf16 %v1025_v26, %v1024_v21  ;;  %v1027_v32 = vmul.f32 %v8911_v25, %v953_v27  ;;  %v830_v33 = vpop.f32.mrb[4].mxu0  ;;  %v8315_v26 = vld [vmem:[%s11771_s5 + $0xb8] sm:$0xff]   ;;  %v8316_v27 = vld [vmem:[%s11771_s5 + $0x70] sm:$0xff]  }
 0x11a   : > { %941 = vst.msk [vmem:[%s8901_s22 + $0xc] sm:$0xf] %vm11782_vm1, %v7849_v28  ;;  %v831_v34 = vadd.f32 %v830_v33, %v8884_v7  ;;  %v832_v35 = vpop.f32.mrb[5].mxu0  ;;  %2013 = vmatpush1.bf16.msra.mxu1 %v8315_v26  ;;  %2238 = vmatpush1.bf16.msra.mxu0 %v8316_v27 }
 0x11b   : > { %v8929_v36 = vpack.c.bf16 %v1027_v32, %v1026_v29  ;;  %v833_v37 = vadd.f32 %v832_v35, %v8888_v8  ;;  %v834_v38 = vpop.f32.mrb[6].mxu0  ;;  %v1111_v39 = vrot.slane %v8921_v31, 7  ;;  %v1608_v40 = vrot.slane %v8921_v31, 5  ;;  %v9014_v35 = vpop.permute.xlu0 %986  ;;  %2014 = vmatprep.subr.bf16.mxu1 %v8849_v58  ;;  %2825 = vmatprep.subr.bf16.mxu0 %v8849_v58 }
 0x11c   : > { %v881_v41 = vmax.f32 %v831_v34, 0.0  ;;  %v835_v42 = vadd.f32 %v834_v38, %v8884_v7  ;;  %v836_v43 = vpop.f32.mrb[7].mxu0  ;;  %v1232_v44 = vshrl.u32 %v8921_v31, 16  ;;  %v1235_v45 = vshll.u32 %v8921_v31, 16 }
 0x11d   : > { %v954_v48 = vmax.f32 %v833_v37, 0.0  ;;  %v837_v49 = vadd.f32 %v836_v43, %v8888_v8  ;;  %1146 = vrot.lane.b32.xlu0 %v1111_v39, %s8579_s18  ;;  %v1112_v50 = vrot.slane %v1111_v39, 4  ;;  %v1609_v52 = vrot.slane %v1608_v40, 4 }
 0x11e   : > { %v7850_v53 = vpack.c.bf16 %v881_v41, %v881_v41  ;;  %v1028_v54 = vmul.f32 %v8919_v30, %v881_v41  ;;  %v882_v55 = vmax.f32 %v835_v42, 0.0  ;;  %v1610_v56 = vrot.slane %v8929_v36, 5 }
 0x11f   : > { %v1029_v59 = vmul.f32 %v8919_v30, %v954_v48  ;;  %v955_v60 = vmax.f32 %v837_v49, 0.0  ;;  %v8956_v61 = vrot.slane %v1232_v44, 7  ;;  %v1457_v62 = vrot.slane %v1235_v45, 5 }
 0x120   : > { %942 = vst.msk [vmem:[%s8901_s22 + $0x18] sm:$0xf] %vm11782_vm1, %v7850_v53  ;;  %v7851_v63 = vpack.c.bf16 %v882_v55, %v882_v55  ;;  %v1030_v0 = vmul.f32 %v8953_v57, %v882_v55  ;;  %v1611_v1 = vsel %vm8947_vm10, %v1609_v52, %v1610_v56  ;;  %v1458_v2 = vrot.slane %v1232_v44, 4 }
 0x121   : > { %v8973_v5 = vpack.c.bf16 %v1029_v59, %v1028_v54  ;;  %v1031_v6 = vmul.f32 %v8953_v57, %v955_v60  ;;  %1645 = vrot.lane.b32.xlu1 %v1611_v1, %s8580_s24  ;;  %v840_v10 = vpop.f32.mrb[8].mxu0  ;;  %1643 = vrot.lane.b32.xlu0 %v1608_v40, %s8580_s24  ;;  %v1237_v11 = vor.u32 %v1235_v45, %v8956_v61  ;;  %v1243_v12 = vshll.u32 %v8929_v36, 16  ;;  %v8320_v45 = vld [vmem:[%s11771_s5 + $0xc0] sm:$0xff]  }
 0x122   : > { %943 = vst.msk [vmem:[%s8901_s22 + $0x24] sm:$0xf] %vm11782_vm1, %v7851_v63  ;;  %v841_v14 = vadd.f32 %v840_v10, %v8884_v7  ;;  %v842_v15 = vpop.f32.mrb[9].mxu0  ;;  %v1459_v16 = vor.u32 %v1458_v2, %v1457_v62  ;;  %v1113_v17 = vrot.slane %v8929_v36, 7  ;;  %v1238_v18 = vrot.slane %v8956_v61, 4  ;;  %2015 = vmatpush1.bf16.msra.mxu1 %v8320_v45  ;;  %v8321_v61 = vld [vmem:[%s11771_s5 + $0xc8] sm:$0xff]  }
 0x123   : > { %v8991_v19 = vpack.c.bf16 %v1031_v6, %v1030_v0  ;;  %v843_v20 = vadd.f32 %v842_v15, %v8888_v8  ;;  %v844_v21 = vpop.f32.mrb[10].mxu0  ;;  %v9000_v23 = vrot.slane %v1243_v12, 5  ;;  %v1116_v24 = vrot.slane %v8973_v5, 7  ;;  %2016 = vmatprep.subr.bf16.mxu1 %v8849_v58 }
 0x124   : > { %v883_v28 = vmax.f32 %v841_v14, 0.0  ;;  %v845_v29 = vadd.f32 %v844_v21, %v8884_v7  ;;  %v846_v32 = vpop.f32.mrb[11].mxu0  ;;  %v1460_v33 = vrot.slane %v1459_v16, 4  ;;  %v1114_v34 = vsel %vm8982_vm13, %v1112_v50, %v1113_v17 }
 0x125   : > { %v956_v37 = vmax.f32 %v843_v20, 0.0  ;;  %v847_v38 = vadd.f32 %v846_v32, %v8888_v8  ;;  %1338 = vrot.lane.b32.xlu1 %v1237_v11, %s8581_s15  ;;  %1516 = vrot.lane.b32.xlu0 %v1457_v62, %s8582_s16  ;;  %v1115_v39 = vrot.slane %v1113_v17, 4  ;;  %v1240_v40 = vshrl.u32 %v8929_v36, 16 }
 0x126   : > { %v7852_v41 = vpack.c.bf16 %v883_v28, %v883_v28  ;;  %v1032_v42 = vmul.f32 %v9014_v35, %v883_v28  ;;  %v884_v43 = vmax.f32 %v845_v29, 0.0  ;;  %v1462_v44 = vsel %vm8996_vm14, %v1460_v33, %v9000_v23  ;;  %2017 = vmatpush1.bf16.msra.mxu1 %v8321_v61 }
 0x127   : > { %v1033_v47 = vmul.f32 %v9014_v35, %v956_v37  ;;  %v957_v48 = vmax.f32 %v847_v38, 0.0  ;;  %v1117_v49 = vsel %vm8982_vm13, %v1115_v39, %v1116_v24  ;;  %v9034_v50 = vrot.slane %v1240_v40, 7  ;;  %v9090_v39 = vpop.permute.xlu1 %1001  ;;  %2018 = vmatprep.subr.bf16.mxu1 %v8849_v58 }
 0x128   : > { %944 = vst.msk [vmem:[%s8901_s22 + $0x30] sm:$0xf] %vm11782_vm1, %v7852_v41  ;;  %v7853_v52 = vpack.c.bf16 %v884_v43, %v884_v43  ;;  %v1034_v53 = vmul.f32 %v9027_v46, %v884_v43  ;;  %v1613_v55 = vrot.slane %v8973_v5, 5  ;;  %v1616_v59 = vrot.slane %v8991_v19, 5 }
 0x129   : > { %v9049_v60 = vpack.c.bf16 %v1033_v47, %v1032_v42  ;;  %v1035_v62 = vmul.f32 %v9027_v46, %v957_v48  ;;  %1518 = vrot.lane.b32.xlu1 %v1462_v44, %s8582_s16  ;;  %v850_v63 = vpop.f32.mrb[12].mxu0  ;;  %1148 = vrot.lane.b32.xlu0 %v1114_v34, %s8579_s18  ;;  %v1245_v0 = vor.u32 %v1243_v12, %v9034_v50  ;;  %v1612_v1 = vrot.slane %v1610_v56, 4 }
 0x12a   : > { %945 = vst.msk [vmem:[%s8901_s22 + $0x3c] sm:$0xf] %vm11782_vm1, %v7853_v52  ;;  %v851_v2 = vadd.f32 %v850_v63, %v8884_v7  ;;  %v852_v3 = vpop.f32.mrb[13].mxu0  ;;  %v1615_v4 = vrot.slane %v1613_v55, 4  ;;  %v1247_v6 = vrot.slane %v9034_v50, 4  ;;  %v1249_v10 = vshrl.u32 %v8973_v5, 16 }
 0x12b   : > { %v9062_v11 = vpack.c.bf16 %v1035_v62, %v1034_v53  ;;  %v853_v14 = vadd.f32 %v852_v3, %v8888_v8  ;;  %v854_v15 = vpop.f32.mrb[14].mxu0  ;;  %v1246_v56 = vsel %vm9043_vm15, %v1238_v18, %v1245_v0  ;;  %v1614_v12 = vsel %vm8947_vm10, %v1612_v1, %v1613_v55  ;;  %v9082_v18 = vpop.permute.xlu0 %996 }
 0x12c   : > { %v885_v16 = vmax.f32 %v851_v2, 0.0  ;;  %v855_v17 = vadd.f32 %v854_v15, %v8884_v7  ;;  %v856_v20 = vpop.f32.mrb[15].mxu0  ;;  %v1617_v21 = vsel %vm8947_vm10, %v1615_v4, %v1616_v59  ;;  %v9077_v26 = vrot.slane %v1249_v10, 7 }
 0x12d   : > { %v958_v27 = vmax.f32 %v853_v14, 0.0  ;;  %v857_v28 = vadd.f32 %v856_v20, %v8888_v8  ;;  %1150 = vrot.lane.b32.xlu1 %v1117_v49, %s8579_s18  ;;  %1340 = vrot.lane.b32.xlu0 %v1246_v56, %s8581_s15  ;;  %v1252_v29 = vshll.u32 %v8973_v5, 16  ;;  %v1463_v32 = vrot.slane %v1240_v40, 4  ;;  %v8323_v49 = vld [vmem:[%s11771_s5 + $0xd0] sm:$0xff]   ;;  %v8324_v14 = vld [vmem:[%s11771_s5 + $0xd8] sm:$0xff]  }
 0x12e   : > { %v7854_v33 = vpack.c.bf16 %v885_v16, %v885_v16  ;;  %v1036_v34 = vmul.f32 %v9082_v18, %v885_v16  ;;  %v886_v37 = vmax.f32 %v855_v17, 0.0  ;;  %v1261_v38 = vshll.u32 %v8991_v19, 16  ;;  %2019 = vmatpush1.bf16.msra.mxu1 %v8323_v49 }
 0x12f   : > { %v1037_v41 = vmul.f32 %v9082_v18, %v958_v27  ;;  %v959_v42 = vmax.f32 %v857_v28, 0.0  ;;  %v1254_v43 = vor.u32 %v1252_v29, %v9077_v26  ;;  %v1464_v44 = vor.u32 %v1463_v32, %v9000_v23  ;;  %2020 = vmatprep.subr.bf16.mxu1 %v8849_v58  ;;  %v9129_v20 = vpop.permute.xlu0 %1006 }
 0x130   : > { %946 = vst.msk [vmem:[%s8901_s22 + $0x48] sm:$0xf] %vm11782_vm1, %v7854_v33  ;;  %v7855_v40 = vpack.c.bf16 %v886_v37, %v886_v37  ;;  %v1038_v45 = vmul.f32 %v9090_v39, %v886_v37  ;;  %v1466_v47 = vrot.slane %v1252_v29, 5  ;;  %v1468_v48 = vrot.slane %v1249_v10, 4  ;;  %v8325_v33 = vld [vmem:[%s11771_s5 + $0xe0] sm:$0xff]  }
 0x131   : > { %v9102_v50 = vpack.c.bf16 %v1037_v41, %v1036_v34  ;;  %v1039_v52 = vmul.f32 %v9090_v39, %v959_v42  ;;  %1649 = vrot.lane.b32.xlu1 %v1617_v21, %s8580_s24  ;;  %v860_v23 = vpop.f32.mrb[16].mxu0  ;;  %1647 = vrot.lane.b32.xlu0 %v1614_v12, %s8580_s24  ;;  %v1255_v53 = vsel %vm9043_vm15, %v1247_v6, %v1254_v43  ;;  %v1465_v63 = vrot.slane %v1464_v44, 4  ;;  %v9139_v34 = vpop.permute.xlu1 %1011 }
 0x132   : > { %947 = vst.msk [vmem:[%s8901_s22 + $0x54] sm:$0xf] %vm11782_vm1, %v7855_v40  ;;  %v861_v55 = vadd.f32 %v860_v23, %v8884_v7  ;;  %v862_v62 = vpop.f32.mrb[17].mxu0  ;;  %v1469_v0 = vor.u32 %v1468_v48, %v1466_v47  ;;  %v9114_v1 = vrot.slane %v1261_v38, 5  ;;  %v1118_v6 = vrot.slane %v1116_v24, 4  ;;  %2021 = vmatpush1.bf16.msra.mxu1 %v8324_v14 }
 0x133   : > { %v9116_v2 = vpack.c.bf16 %v1039_v52, %v1038_v45  ;;  %v863_v3 = vadd.f32 %v862_v62, %v8888_v8  ;;  %v864_v4 = vpop.f32.mrb[18].mxu0  ;;  %v1119_v10 = vrot.slane %v8991_v19, 7  ;;  %v1467_v16 = vsel %vm8996_vm14, %v1465_v63, %v1466_v47  ;;  %2022 = vmatprep.subr.bf16.mxu1 %v8849_v58 }
 0x134   : > { %v887_v15 = vmax.f32 %v861_v55, 0.0  ;;  %v865_v56 = vadd.f32 %v864_v4, %v8884_v7  ;;  %v866_v12 = vpop.f32.mrb[19].mxu0  ;;  %v1470_v17 = vrot.slane %v1469_v0, 4  ;;  %v1122_v27 = vrot.slane %v9049_v60, 7 }
 0x135   : > { %v960_v21 = vmax.f32 %v863_v3, 0.0  ;;  %v867_v24 = vadd.f32 %v866_v12, %v8888_v8  ;;  %1342 = vrot.lane.b32.xlu1 %v1255_v53, %s8581_s15  ;;  %1520 = vrot.lane.b32.xlu0 %v1467_v16, %s8582_s16  ;;  %v1121_v61 = vrot.slane %v1119_v10, 4  ;;  %v1120_v43 = vsel %vm8982_vm13, %v1118_v6, %v1119_v10 }
 0x136   : > { %v7856_v28 = vpack.c.bf16 %v887_v15, %v887_v15  ;;  %v1040_v29 = vmul.f32 %v9129_v20, %v887_v15  ;;  %v888_v32 = vmax.f32 %v865_v56, 0.0  ;;  %v1472_v42 = vsel %vm8996_vm14, %v1470_v17, %v9114_v1  ;;  %2023 = vmatpush1.bf16.msra.mxu1 %v8325_v33  ;;  %v8327_v17 = vld [vmem:[%s11771_s5 + $0xe8] sm:$0xff]  }
 0x137   : > { %v1041_v37 = vmul.f32 %v9129_v20, %v960_v21  ;;  %v961_v41 = vmax.f32 %v867_v24, 0.0  ;;  %v1258_v45 = vshrl.u32 %v8991_v19, 16  ;;  %v1619_v47 = vrot.slane %v9049_v60, 5  ;;  %2024 = vmatprep.subr.bf16.mxu1 %v8849_v58  ;;  %v9179_v21 = vpop.permute.xlu0 %1016 }
 0x138   : > { %948 = vst.msk [vmem:[%s8901_s22 + $0x60] sm:$0xf] %vm11782_vm1, %v7856_v28  ;;  %v7857_v44 = vpack.c.bf16 %v888_v32, %v888_v32  ;;  %v1042_v40 = vmul.f32 %v9139_v34, %v888_v32  ;;  %v1123_v23 = vsel %vm8982_vm13, %v1121_v61, %v1122_v27  ;;  %v1256_v62 = vrot.slane %v9077_v26, 4 }
 0x139   : > { %v9153_v48 = vpack.c.bf16 %v1041_v37, %v1040_v29  ;;  %v1043_v49 = vmul.f32 %v9139_v34, %v961_v41  ;;  %1522 = vrot.lane.b32.xlu1 %v1472_v42, %s8582_s16  ;;  %v870_v52 = vpop.f32.mrb[20].mxu0  ;;  %1152 = vrot.lane.b32.xlu0 %v1120_v43, %s8579_s18  ;;  %v1260_v63 = vrot.slane %v1258_v45, 7  ;;  %v1267_v0 = vshrl.u32 %v9049_v60, 16  ;;  %v9188_v37 = vpop.permute.xlu1 %1021 }
 0x13a   : > { %949 = vst.msk [vmem:[%s8901_s22 + $0x6c] sm:$0xf] %vm11782_vm1, %v7857_v44  ;;  %v871_v53 = vadd.f32 %v870_v52, %v8884_v7  ;;  %v872_v55 = vpop.f32.mrb[21].mxu0  ;;  %v1621_v10 = vrot.slane %v1619_v47, 4  ;;  %v1622_v14 = vrot.slane %v9062_v11, 5  ;;  %v1270_v16 = vshll.u32 %v9049_v60, 16  ;;  %2025 = vmatpush1.bf16.msra.mxu1 %v8327_v17 }
 0x13b   : > { %v9167_v3 = vpack.c.bf16 %v1043_v49, %v1042_v40  ;;  %v873_v4 = vadd.f32 %v872_v55, %v8888_v8  ;;  %v874_v6 = vpop.f32.mrb[22].mxu0  ;;  %v1263_v26 = vor.u32 %v1261_v38, %v1260_v63  ;;  %v1269_v28 = vrot.slane %v1267_v0, 7  ;;  %2495 = vmatprep.subr.bf16.mxu1 %v8849_v58 }
 0x13c   : > { %v889_v15 = vmax.f32 %v871_v53, 0.0  ;;  %v875_v56 = vadd.f32 %v874_v6, %v8884_v7  ;;  %v876_v12 = vpop.f32.mrb[23].mxu0  ;;  %v1618_v7 = vrot.slane %v1616_v59, 4  ;;  %v1623_v59 = vsel %vm8947_vm10, %v1621_v10, %v1622_v14 }
 0x13d   : > { %v962_v24 = vmax.f32 %v873_v4, 0.0  ;;  %v877_v61 = vadd.f32 %v876_v12, %v8888_v8  ;;  %1154 = vrot.lane.b32.xlu1 %v1123_v23, %s8579_s18  ;;  %v1264_v33 = vsel %vm9043_vm15, %v1256_v62, %v1263_v26  ;;  %v1473_v42 = vrot.slane %v1258_v45, 4 }
 0x13e   : > { %v7858_v29 = vpack.c.bf16 %v889_v15, %v889_v15  ;;  %v1044_v38 = vmul.f32 %v9179_v21, %v889_v15  ;;  %v890_v32 = vmax.f32 %v875_v56, 0.0  ;;  %1344 = vrot.lane.b32.xlu0 %v1264_v33, %s8581_s15  ;;  %v1272_v40 = vor.u32 %v1270_v16, %v1269_v28 }
 0x13f   : > { %v1045_v41 = vmul.f32 %v9179_v21, %v962_v24  ;;  %v963_v8 = vmax.f32 %v877_v61, 0.0  ;;  %v1476_v49 = vrot.slane %v1270_v16, 5  ;;  %v1474_v53 = vor.u32 %v1473_v42, %v9114_v1 }
 0x140   : > { %950 = vst.msk [vmem:[%s8901_s22 + $0x78] sm:$0xf] %vm11782_vm1, %v7858_v29  ;;  %v7859_v43 = vpack.c.bf16 %v890_v32, %v890_v32  ;;  %v1046_v44 = vmul.f32 %v9188_v37, %v890_v32  ;;  %v1279_v55 = vshll.u32 %v9062_v11, 16  ;;  %v1620_v45 = vsel %vm8947_vm10, %v1618_v7, %v1619_v47 }
 0x141   : > { %v9200_v52 = vpack.c.bf16 %v1045_v41, %v1044_v38  ;;  %v1047_v23 = vmul.f32 %v9188_v37, %v963_v8  ;;  %1653 = vrot.lane.b32.xlu1 %v1623_v59, %s8580_s24  ;;  %v1265_v62 = vrot.slane %v1260_v63, 4  ;;  %v1478_v4 = vrot.slane %v1267_v0, 4 }
 0x142   : > { %951 = vst.msk [vmem:[%s8901_s22 + $0x84] sm:$0xf] %vm11782_vm1, %v7859_v43  ;;  %1651 = vrot.lane.b32.xlu0 %v1620_v45, %s8580_s24  ;;  %v1475_v10 = vrot.slane %v1474_v53, 4  ;;  %v1276_v1 = vshrl.u32 %v9062_v11, 16  ;;  %v1481_v12 = vrot.slane %v1279_v55, 5  ;;  %v1125_v26 = vrot.slane %v9062_v11, 7  ;;  %vm9414_vm1 = vmand %vm1404_vm5, %vm11787_vm8 }
 0x143   : > { %v9210_v6 = vpack.c.bf16 %v1047_v23, %v1046_v44  ;;  %v1273_v15 = vsel %vm9043_vm15, %v1265_v62, %v1272_v40  ;;  %v1479_v56 = vor.u32 %v1478_v4, %v1476_v49  ;;  %v1124_v0 = vrot.slane %v1122_v27, 4 }
 0x144   : > { %v1477_v47 = vsel %vm8996_vm14, %v1475_v10, %v1476_v49  ;;  %v1278_v16 = vrot.slane %v1276_v1, 7  ;;  %v1128_v17 = vrot.slane %v9102_v50, 7  ;;  %v1625_v61 = vrot.slane %v9102_v50, 5 }
 0x145   : > { %1346 = vrot.lane.b32.xlu1 %v1273_v15, %s8581_s15  ;;  %v1480_v63 = vrot.slane %v1479_v56, 4  ;;  %v1285_v7 = vshrl.u32 %v9102_v50, 16  ;;  %v1288_v29 = vshll.u32 %v9102_v50, 16  ;;  %v1127_v38 = vrot.slane %v1125_v26, 4 }
 0x146   : > { %1524 = vrot.lane.b32.xlu0 %v1477_v47, %s8582_s16  ;;  %v1126_v27 = vsel %vm8982_vm13, %v1124_v0, %v1125_v26  ;;  %v1281_v32 = vor.u32 %v1279_v55, %v1278_v16  ;;  %v1274_v41 = vrot.slane %v1269_v28, 4  ;;  %v1628_v8 = vrot.slane %v9116_v2, 5 }
 0x147   : > { %v1482_v24 = vsel %vm8996_vm14, %v1480_v63, %v1481_v12  ;;  %v1129_v33 = vsel %vm8982_vm13, %v1127_v38, %v1128_v17  ;;  %v1483_v59 = vrot.slane %v1276_v1, 4  ;;  %v1627_v42 = vrot.slane %v1625_v61, 4 }
 0x148   : > { %v1287_v43 = vrot.slane %v1285_v7, 7  ;;  %v1486_v44 = vrot.slane %v1288_v29, 5  ;;  %v1488_v40 = vrot.slane %v1285_v7, 4  ;;  %v1282_v49 = vsel %vm9043_vm15, %v1274_v41, %v1281_v32 }
 0x149   : > { %1526 = vrot.lane.b32.xlu1 %v1482_v24, %s8582_s16  ;;  %v1484_v23 = vor.u32 %v1483_v59, %v1481_v12  ;;  %v1629_v28 = vsel %vm8947_vm10, %v1627_v42, %v1628_v8  ;;  %v1624_v53 = vrot.slane %v1622_v14, 4  ;;  %v1283_v4 = vrot.slane %v1278_v16, 4 }
 0x14a   : > { %1156 = vrot.lane.b32.xlu0 %v1126_v27, %s8579_s18  ;;  %v1290_v55 = vor.u32 %v1288_v29, %v1287_v43  ;;  %v1489_v45 = vor.u32 %v1488_v40, %v1486_v44  ;;  %v1297_v10 = vshll.u32 %v9116_v2, 16  ;;  %v1294_v15 = vshrl.u32 %v9116_v2, 16 }
 0x14b   : > { %v1626_v62 = vsel %vm8947_vm10, %v1624_v53, %v1625_v61  ;;  %v1485_v56 = vrot.slane %v1484_v23, 4  ;;  %v1303_v14 = vshrl.u32 %v9153_v48, 16  ;;  %v1306_v26 = vshll.u32 %v9153_v48, 16 }
 0x14c   : > { %v1291_v1 = vsel %vm9043_vm15, %v1283_v4, %v1290_v55  ;;  %v1490_v12 = vrot.slane %v1489_v45, 4  ;;  %v1130_v47 = vrot.slane %v1128_v17, 4  ;;  %v1491_v0 = vrot.slane %v1297_v10, 5 }
 0x14d   : > { %1158 = vrot.lane.b32.xlu1 %v1129_v33, %s8579_s18  ;;  %v1487_v63 = vsel %vm8996_vm14, %v1485_v56, %v1486_v44  ;;  %v1131_v16 = vrot.slane %v9116_v2, 7  ;;  %v1296_v24 = vrot.slane %v1294_v15, 7  ;;  %v1134_v61 = vrot.slane %v9153_v48, 7 }
 0x14e   : > { %1348 = vrot.lane.b32.xlu0 %v1282_v49, %s8581_s15  ;;  %v1493_v7 = vrot.slane %v1294_v15, 4  ;;  %v1492_v29 = vsel %vm8996_vm14, %v1490_v12, %v1491_v0  ;;  %v9264_v38 = vrot.slane %v1303_v14, 7  ;;  %v1496_v27 = vrot.slane %v1306_v26, 5 }
 0x14f   : > { %v1498_v32 = vrot.slane %v1303_v14, 4  ;;  %v1132_v17 = vsel %vm8982_vm13, %v1130_v47, %v1131_v16  ;;  %v1133_v33 = vrot.slane %v1131_v16, 4  ;;  %v1299_v41 = vor.u32 %v1297_v10, %v1296_v24 }
 0x150   : > { %v1494_v59 = vor.u32 %v1493_v7, %v1491_v0  ;;  %v1292_v44 = vrot.slane %v1287_v43, 4  ;;  %v1308_v40 = vor.u32 %v1306_v26, %v9264_v38  ;;  %v1315_v53 = vshll.u32 %v9167_v3, 16 }
 0x151   : > { %1657 = vrot.lane.b32.xlu1 %v1629_v28, %s8580_s24  ;;  %v1135_v42 = vsel %vm8982_vm13, %v1133_v33, %v1134_v61  ;;  %v1499_v49 = vor.u32 %v1498_v32, %v1496_v27  ;;  %v1301_v28 = vrot.slane %v1296_v24, 4  ;;  %v1312_v4 = vshrl.u32 %v9167_v3, 16  ;;  %v8317_v32 = vld [vmem:[#allocation2 + $0x8] ss:$8 sps:$4 sm:$0xff]  }
 0x152   : > { %1655 = vrot.lane.b32.xlu0 %v1626_v62, %s8580_s24  ;;  %v1300_v23 = vsel %vm9043_vm15, %v1292_v44, %v1299_v41  ;;  %v1495_v55 = vrot.slane %v1494_v59, 4  ;;  %v1631_v62 = vrot.slane %v9153_v48, 5  ;;  %v1501_v15 = vrot.slane %v1315_v53, 5 }
 0x153   : > { %v1309_v45 = vsel %vm9043_vm15, %v1301_v28, %v1308_v40  ;;  %v1500_v43 = vrot.slane %v1499_v49, 4  ;;  %v1630_v56 = vrot.slane %v1628_v8, 4  ;;  %v1314_v26 = vrot.slane %v1312_v4, 7 }
 0x154   : > { %v1497_v10 = vsel %vm8996_vm14, %v1495_v55, %v1496_v27  ;;  %v1633_v14 = vrot.slane %v1631_v62, 4  ;;  %v1136_v47 = vrot.slane %v1134_v61, 4  ;;  %v1137_v8 = vrot.slane %v9167_v3, 7  ;;  %v8326_v61 = vld [vmem:[%s11771_s5 + $0x168] sm:$0xff]  }
 0x155   : > { %1350 = vrot.lane.b32.xlu1 %v1291_v1, %s8581_s15  ;;  %v1634_v1 = vrot.slane %v9167_v3, 5  ;;  %v1502_v12 = vsel %vm8996_vm14, %v1500_v43, %v1501_v15  ;;  %v1140_v0 = vrot.slane %v9200_v52, 7  ;;  %v1317_v24 = vor.u32 %v1315_v53, %v1314_v26 }
 0x156   : > { %1528 = vrot.lane.b32.xlu0 %v1487_v63, %s8582_s16  ;;  %v1632_v63 = vsel %vm8947_vm10, %v1630_v56, %v1631_v62  ;;  %v1138_v7 = vsel %vm8982_vm13, %v1136_v47, %v1137_v8  ;;  %v1324_v27 = vshll.u32 %v9200_v52, 16  ;;  %v1143_v41 = vrot.slane %v9210_v6, 7 }
 0x157   : > { %v1635_v16 = vsel %vm8947_vm10, %v1633_v14, %v1634_v1  ;;  %v1142_v33 = vrot.slane %v1140_v0, 4  ;;  %v1503_v59 = vrot.slane %v1312_v4, 4  ;;  %v1330_v40 = vshrl.u32 %v9210_v6, 16 }
 0x158   : > { %v1506_v49 = vrot.slane %v1324_v27, 5  ;;  %v1145_v4 = vrot.slane %v1143_v41, 4  ;;  %v1319_v47 = vrot.slane %v1314_v26, 4  ;;  %vm1709_vm8 = vcmask 912899  }
 0x159   : > { %1530 = vrot.lane.b32.xlu1 %v1492_v29, %s8582_s16  ;;  %v1310_v29 = vrot.slane %v9264_v38, 4  ;;  %v1139_v38 = vrot.slane %v1137_v8, 4  ;;  %v1144_v28 = vsel %vm8982_vm13, %v1142_v33, %v1143_v41  ;;  %v1504_v53 = vor.u32 %v1503_v59, %v1501_v15 }
 0x15a   : > { %1160 = vrot.lane.b32.xlu0 %v1132_v17, %s8579_s18  ;;  %v8319_v17 = vld [vmem:[#allocation2 + $0xc] ss:$8 sps:$4 sm:$0xff]   ;;  %v1332_v62 = vrot.slane %v1330_v40, 7  ;;  %v1640_v41 = vrot.slane %v9210_v6, 5 }
 0x15b   : > { %7245 = vmatprep.mubr.msk.bf16.mxu0 %vm1977_vm4, %v8319_v17  ;;  %v1318_v44 = vsel %vm9043_vm15, %v1310_v29, %v1317_v24  ;;  %v1141_v43 = vsel %vm8982_vm13, %v1139_v38, %v1140_v0  ;;  %v1505_v56 = vrot.slane %v1504_v53, 4  ;;  %v1636_v17 = vrot.slane %v1634_v1, 4  ;;  %v8341_v53 = vld [vmem:[%s11771_s5 + $0x1b0] sm:$0xff]  }
 0x15c   : > { %2242 = vmatmul.mubr.bf16.vlgmr.msra.gmra.mrb[24].mxu0 %v8317_v32  ;;  %v1337_v38 = vrot.slane %v1332_v62, 4  ;;  %vm1212_vm13 = vcmask 388097  }
 0x15d   : > { %1162 = vrot.lane.b32.xlu1 %v1135_v42, %s8579_s18  ;;  %v1321_v42 = vshrl.u32 %v9200_v52, 16  ;;  %2826 = vmatpush1.bf16.msra.mxu0 %v8326_v61  ;;  %v1507_v13 = vsel %vm8996_vm14, %v1505_v56, %v1506_v49  ;;  %v9357_v61 = vld [vmem:[#allocation4] sm:$0xff]  ;;  %v8345_v56 = vld [vmem:[%s11771_s5 + $0x1c0] sm:$0xff]  }
 0x15e   : > { %1352 = vrot.lane.b32.xlu0 %v1300_v23, %s8581_s15  ;;  %v8329_v23 = vld [vmem:[%s11771_s5 + $0x170] sm:$0xff]   ;;  %2827 = vmatprep.subr.bf16.mxu0 %v8849_v58 }
 0x15f   : > { %v1323_v55 = vrot.slane %v1321_v42, 7 }
 0x161   : > { %1354 = vrot.lane.b32.xlu1 %v1309_v45, %s8581_s15  ;;  %v1508_v45 = vrot.slane %v1321_v42, 4  ;;  %2828 = vmatpush1.bf16.msra.mxu0 %v8329_v23  ;;  %v1326_v15 = vor.u32 %v1324_v27, %v1323_v55  ;;  %v8332_v27 = vld [vmem:[%s11771_s5 + $0x188] sm:$0xff]   ;;  %v1642_v23 = vrot.slane %v1640_v41, 4 }
 0x162   : > { %1532 = vrot.lane.b32.xlu0 %v1497_v10, %s8582_s16  ;;  %v8330_v10 = vld [vmem:[%s11771_s5 + $0x178] sm:$0xff]   ;;  %2829 = vmatprep.subr.bf16.mxu0 %v8849_v58  ;;  %v1637_v58 = vrot.slane %v9200_v52, 5 }
 0x163   : > { %v1509_v14 = vor.u32 %v1508_v45, %v1506_v49  ;;  %v1327_v0 = vsel %vm9043_vm15, %v1319_v47, %v1326_v15  ;;  %v8335_v49 = vld [vmem:[%s11771_s5 + $0x198] sm:$0xff]  }
 0x164   : > { %v1639_v33 = vrot.slane %v1637_v58, 4  ;;  %v1638_v42 = vsel %vm8947_vm10, %v1636_v17, %v1637_v58 }
 0x165   : > { %1534 = vrot.lane.b32.xlu1 %v1502_v12, %s8582_s16  ;;  %v1333_v12 = vshll.u32 %v9210_v6, 16  ;;  %2830 = vmatpush1.bf16.msra.mxu0 %v8330_v10  ;;  %v1510_v24 = vrot.slane %v1509_v14, 4 }
 0x166   : > { %1659 = vrot.lane.b32.xlu0 %v1632_v63, %s8580_s24  ;;  %v8331_v63 = vld [vmem:[%s11771_s5 + $0x180] sm:$0xff]   ;;  %2831 = vmatprep.subr.bf16.mxu0 %v9357_v61  ;;  %v1641_v1 = vsel %vm8947_vm10, %v1639_v33, %v1640_v41  ;;  %vm1185_vm10 = vcmask 261120  }
 0x167   : > { %v1335_v8 = vor.u32 %v1333_v12, %v1332_v62  ;;  %v1511_v26 = vrot.slane %v1333_v12, 5 }
 0x169   : > { %1661 = vrot.lane.b32.xlu1 %v1635_v16, %s8580_s24  ;;  %v1328_v16 = vrot.slane %v1323_v55, 4  ;;  %2832 = vmatpush1.bf16.msra.mxu0 %v8331_v63  ;;  %v1512_v32 = vsel %vm8996_vm14, %v1510_v24, %v1511_v26  ;;  %v1585_v63 = vld [vmem:[#allocation2 + $0x1c] sm:$0x8] }
 0x16a   : > { %1164 = vrot.lane.b32.xlu0 %v1138_v7, %s8579_s18  ;;  %v1513_v7 = vrot.slane %v1330_v40, 4  ;;  %2833 = vmatprep.subr.bf16.mxu0 %v9357_v61 }
 0x16b   : > { %v1336_v29 = vsel %vm9043_vm15, %v1328_v16, %v1335_v8  ;;  %v8347_v16 = vld [vmem:[%s11771_s5 + $0x1c8] sm:$0xff]  }
 0x16c   : > { %v1514_v59 = vor.u32 %v1513_v7, %v1511_v26 }
 0x16d   : > { %1356 = vrot.lane.b32.xlu1 %v1318_v44, %s8581_s15  ;;  %2834 = vmatpush1.bf16.msra.mxu0 %v8332_v27  ;;  %v8334_v44 = vld [vmem:[%s11771_s5 + $0x190] sm:$0xff]  }
 0x16e   : > { %1168 = vrot.lane.b32.xlu0 %v1144_v28, %s8579_s18  ;;  %2835 = vmatprep.subr.bf16.mxu0 %v9357_v61  ;;  %v1515_v40 = vrot.slane %v1514_v59, 4  ;;  %v8338_v28 = vld [vmem:[%s11771_s5 + $0x1a8] sm:$0xff]  }
 0x171   : > { %1166 = vrot.lane.b32.xlu1 %v1141_v43, %s8579_s18  ;;  %2836 = vmatpush1.bf16.msra.mxu0 %v8334_v44  ;;  %v8343_v43 = vld [vmem:[%s11771_s5 + $0x1b8] sm:$0xff]   ;;  %v8351_v44 = vld [vmem:[%s11771_s5 + $0x1d0] sm:$0xff]  }
 0x172   : > { %1170 = vrot.lane.b32.xlu0 %v1145_v4, %s8579_s18  ;;  %2837 = vmatprep.subr.bf16.mxu0 %v9357_v61 }
 0x175   : > { %1536 = vrot.lane.b32.xlu1 %v1507_v13, %s8582_s16  ;;  %2838 = vmatpush1.bf16.msra.mxu0 %v8335_v49 }
 0x176   : > { %1358 = vrot.lane.b32.xlu0 %v1327_v0, %s8581_s15  ;;  %2839 = vmatprep.subr.bf16.mxu0 %v9357_v61 }
 0x179   : > { %1360 = vrot.lane.b32.xlu1 %v1336_v29, %s8581_s15  ;;  %2840 = vmatpush1.bf16.msra.mxu0 %v8336_v51 }
 0x17a   : > { %1538 = vrot.lane.b32.xlu0 %v1512_v32, %s8582_s16  ;;  %2841 = vmatprep.subr.bf16.mxu0 %v9357_v61 }
 0x17d   : > { %1663 = vrot.lane.b32.xlu1 %v1638_v42, %s8580_s24  ;;  %2842 = vmatpush1.bf16.msra.mxu0 %v8338_v28  ;;  %v8353_v28 = vld [vmem:[%s11771_s5 + $0x1d8] sm:$0xff]  }
 0x17e   : > { %1665 = vrot.lane.b32.xlu0 %v1641_v1, %s8580_s24  ;;  %2843 = vmatprep.subr.bf16.mxu0 %v9357_v61 }
 0x181   : > { %1540 = vrot.lane.b32.xlu1 %v1515_v40, %s8582_s16  ;;  %2844 = vmatpush1.bf16.msra.mxu0 %v8341_v53 }
 0x182   : > { %1362 = vrot.lane.b32.xlu0 %v1337_v38, %s8581_s15  ;;  %2845 = vmatprep.subr.bf16.mxu0 %v9357_v61 }
 0x185   : > { %1667 = vrot.lane.b32.xlu1 %v1642_v23, %s8580_s24  ;;  %2846 = vmatpush1.bf16.msra.mxu0 %v8343_v43 }
 0x186   : > { %2847 = vmatprep.subr.bf16.mxu0 %v9357_v61 }
 0x189   : > { %2848 = vmatpush1.bf16.msra.mxu0 %v8345_v56 }
 0x18a   : > { %2849 = vmatprep.subr.bf16.mxu0 %v9357_v61 }
 0x18d   : > { %2850 = vmatpush1.bf16.msra.mxu0 %v8347_v16 }
 0x18e   : > { %2851 = vmatprep.subr.bf16.mxu0 %v9357_v61 }
 0x18f   : > { %v1147_v55 = vpop.permute.xlu0 %1146 }
 0x190   : > { %v1172_v45 = vrot.slane %v1147_v55, 4 }
 0x191   : > { %2852 = vmatpush1.bf16.msra.mxu0 %v8351_v44 }
 0x192   : > { %v1186_v62 = vsel %vm1185_vm10, %v1147_v55, %v1172_v45  ;;  %2853 = vmatprep.subr.bf16.mxu0 %v9357_v61 }
 0x193   : > { %1213 = vst.msk [vmem:[#allocation2 + $0x20] sm:$0xe] %vm1212_vm13, %v1186_v62  ;;  %v1646_v4 = vpop.permute.xlu1 %1645  ;;  %v1644_v10 = vpop.permute.xlu0 %1643  ;;  %vm11789_vm13 = vcmask 1044224  }
 0x194   : > { %v1669_v13 = vrot.slane %v1644_v10, 4  ;;  %vm9429_vm7 = vmor %vm1440_vm2, %vm11789_vm13  ;;  %v1670_v29 = vrot.slane %v1646_v4, 4  ;;  %vm1214_vm2 = vcmask 388096   ;;  %vm1711_vm13 = vcmask 912896  }
 0x195   : > { %2854 = vmatpush1.bf16.msra.mxu0 %v8353_v28 }
 0x196   : > { %v1683_v41 = vsel %vm1682_vm11, %v1644_v10, %v1669_v13  ;;  %v1684_v38 = vsel %vm1682_vm11, %v1646_v4, %v1670_v29  ;;  %3460 = vmatprep.subr.bf16.mxu0 %v9357_v61 }
 0x197   : > { %v1339_v12 = vpop.permute.xlu1 %1338  ;;  %v1517_v14 = vpop.permute.xlu0 %1516 }
 0x198   : > { %v1364_v47 = vrot.slane %v1339_v12, 4  ;;  %v1542_v0 = vrot.slane %v1517_v14, 4 }
 0x19a   : > { %v1378_v24 = vsel %vm1377_vm6, %v1339_v12, %v1364_v47  ;;  %v1407_v58 = vld [vmem:[#allocation2 + $0x20] sm:$0xf]  ;;  %v1556_v26 = vsel %vm1555_vm9, %v1517_v14, %v1542_v0 }
 0x19b   : > { %v1408_v27 = vsel %vm9414_vm1, %v1378_v24, %v1407_v58  ;;  %v1586_v32 = vsel %vm9419_vm0, %v1556_v26, %v1585_v63  ;;  %v1519_v17 = vpop.permute.xlu1 %1518  ;;  %v1149_v33 = vpop.permute.xlu0 %1148  ;;  %vm1854_vm0 = vcmask 1045504   ;;  %vm1226_vm1 = vcmask 385024  }
 0x19c   : > { %1409 = vst [vmem:[#allocation2 + $0x20] sm:$0xf] %v1408_v27  ;;  %1587 = vst [vmem:[#allocation2 + $0x1c] sm:$0x8] %v1586_v32  ;;  %v1543_v59 = vrot.slane %v1519_v17, 4  ;;  %v1173_v42 = vrot.slane %v1149_v33, 4 }
 0x19d   : > { %1710 = vst.msk [vmem:[#allocation2 + $0x1c] sm:$0x8] %vm1709_vm8, %v1683_v41 }
 0x19e   : > { %1442 = vst.msk [vmem:[#allocation2 + $0x20] sm:$0xff] %vm9429_vm7, %v8921_v31  ;;  %v1557_v1 = vsel %vm1555_vm9, %v1519_v17, %v1543_v59  ;;  %v1187_v40 = vsel %vm1185_vm10, %v1149_v33, %v1173_v42  ;;  %v1767_v33 = vld [vmem:[#allocation2 + $0x10] sm:$0xcc] }
 0x19f   : > { %1589 = vst.msk [vmem:[#allocation2 + $0x24] sm:$0xf] %vm1588_vm12, %v1557_v1  ;;  %v1151_v49 = vpop.permute.xlu1 %1150  ;;  %v1341_v23 = vpop.permute.xlu0 %1340 }
 0x1a0   : > { %1215 = vst.msk [vmem:[#allocation2 + $0x28] sm:$0xf] %vm1214_vm2, %v1187_v40  ;;  %v1174_v31 = vrot.slane %v1151_v49, 4  ;;  %v1365_v51 = vrot.slane %v1341_v23, 4 }
 0x1a1   : > { %1712 = vst.msk [vmem:[#allocation2 + $0x24] sm:$0xf] %vm1711_vm13, %v1684_v38 }
 0x1a2   : > { %v1188_v53 = vsel %vm1185_vm10, %v1151_v49, %v1174_v31  ;;  %v1379_v55 = vsel %vm1377_vm6, %v1341_v23, %v1365_v51 }
 0x1a3   : > { %1216 = vst.msk [vmem:[#allocation2 + $0x30] sm:$0xf] %vm1214_vm2, %v1188_v53  ;;  %v1650_v45 = vpop.permute.xlu1 %1649  ;;  %v1648_v43 = vpop.permute.xlu0 %1647 }
 0x1a4   : > { %1411 = vst.msk [vmem:[#allocation2 + $0x28] sm:$0xf] %vm1404_vm5, %v1379_v55  ;;  %v1671_v62 = vrot.slane %v1648_v43, 4  ;;  %v1727_v56 = vld [vmem:[#allocation2 + $0x18] sm:$0xff]  ;;  %v1672_v0 = vrot.slane %v1650_v45, 4 }
 0x1a5   : > { %1443 = vst.msk [vmem:[#allocation2 + $0x28] sm:$0xff] %vm9429_vm7, %v8929_v36  ;;  %v7184_v44 = vcombine.high %v1767_v33, %v1727_v56  ;;  %v7183_v38 = vcombine.low %v1767_v33, %v1727_v56 }
 0x1a6   : > { %v1685_v36 = vsel %vm1682_vm11, %v1648_v43, %v1671_v62  ;;  %v1686_v32 = vsel %vm1682_vm11, %v1650_v45, %v1672_v0 }
 0x1a7   : > { %v1343_v4 = vpop.permute.xlu1 %1342  ;;  %v1521_v10 = vpop.permute.xlu0 %1520  ;;  %v1858_v28 = vrot.slane %v7184_v44, 2  ;;  %v1855_v62 = vrot.slane %v7183_v38, 2 }
 0x1a8   : > { %v1728_v15 = vld [vmem:[#allocation2 + $0x20] sm:$0xff]  ;;  %v1366_v12 = vrot.slane %v1343_v4, 4  ;;  %v1544_v14 = vrot.slane %v1521_v10, 4 }
 0x1a9   : > { %v7221_v13 = vcombine.high %v1727_v56, %v1728_v15  ;;  %v7220_v47 = vcombine.low %v1727_v56, %v1728_v15 }
 0x1aa   : > { %v1380_v8 = vsel %vm1377_vm6, %v1343_v4, %v1366_v12  ;;  %v1558_v63 = vsel %vm1555_vm9, %v1521_v10, %v1544_v14  ;;  %v8337_v4 = vld [vmem:[%s11771_s5 + $0xf0] sm:$0xff]  }
 0x1ab   : > { %7246 = vmatprep.mubr.msk.bf16.mxu0 %vm1977_vm4, %v7221_v13  ;;  %1412 = vst.msk [vmem:[#allocation2 + $0x30] sm:$0xf] %vm1404_vm5, %v1380_v8  ;;  %v1523_v16 = vpop.permute.xlu1 %1522  ;;  %v1153_v24 = vpop.permute.xlu0 %1152 }
 0x1ac   : > { %1590 = vst.msk [vmem:[#allocation2 + $0x2c] sm:$0xf] %vm1588_vm12, %v1558_v63  ;;  %2250 = vmatmul.mubr.bf16.gmra.mrb[28].mxu0 %v7220_v47  ;;  %v1545_v58 = vrot.slane %v1523_v16, 4  ;;  %v1175_v26 = vrot.slane %v1153_v24, 4 }
 0x1ad   : > { %1444 = vst.msk [vmem:[#allocation2 + $0x30] sm:$0xff] %vm9429_vm7, %v8973_v5 }
 0x1ae   : > { %1713 = vst.msk [vmem:[#allocation2 + $0x2c] sm:$0xf] %vm1711_vm13, %v1685_v36  ;;  %v1559_v29 = vsel %vm1555_vm9, %v1523_v16, %v1545_v58  ;;  %v1189_v27 = vsel %vm1185_vm10, %v1153_v24, %v1175_v26  ;;  %v8339_v36 = vld [vmem:[%s11771_s5 + $0xf8] sm:$0xff]  }
 0x1af   : > { %1591 = vst.msk [vmem:[#allocation2 + $0x34] sm:$0xf] %vm1588_vm12, %v1559_v29  ;;  %v1155_v17 = vpop.permute.xlu1 %1154 }
 0x1b0   : > { %1217 = vst.msk [vmem:[#allocation2 + $0x38] sm:$0xf] %vm1214_vm2, %v1189_v27  ;;  %v1176_v41 = vrot.slane %v1155_v17, 4  ;;  %v1345_v5 = vpop.permute.xlu0 %1344 }
 0x1b1   : > { %1714 = vst.msk [vmem:[#allocation2 + $0x34] sm:$0xf] %vm1711_vm13, %v1686_v32  ;;  %v1367_v42 = vrot.slane %v1345_v5, 4 }
 0x1b2   : > { %v1190_v59 = vsel %vm1185_vm10, %v1155_v17, %v1176_v41  ;;  %v8342_v17 = vld [vmem:[%s11771_s5 + $0x100] sm:$0xff]  }
 0x1b3   : > { %1218 = vst.msk [vmem:[#allocation2 + $0x40] sm:$0xf] %vm1214_vm2, %v1190_v59  ;;  %v1654_v1 = vpop.permute.xlu1 %1653  ;;  %v1381_v49 = vsel %vm1377_vm6, %v1345_v5, %v1367_v42 }
 0x1b4   : > { %1413 = vst.msk [vmem:[#allocation2 + $0x38] sm:$0xf] %vm1404_vm5, %v1381_v49  ;;  %v1652_v51 = vpop.permute.xlu0 %1651  ;;  %v1674_v63 = vrot.slane %v1654_v1, 4 }
 0x1b5   : > { %v1729_v40 = vld [vmem:[#allocation2 + $0x28] sm:$0xff]  ;;  %1445 = vst.msk [vmem:[#allocation2 + $0x38] sm:$0xff] %vm9429_vm7, %v8991_v19 }
 0x1b6   : > { %v9484_v23 = vcombine.high %v1728_v15, %v1729_v40  ;;  %v9486_v31 = vcombine.low %v1728_v15, %v1729_v40  ;;  %v1673_v15 = vrot.slane %v1652_v51, 4  ;;  %v1688_v32 = vsel %vm1682_vm11, %v1654_v1, %v1674_v63  ;;  %v8344_v1 = vld [vmem:[%s11771_s5 + $0x108] sm:$0xff]  }
 0x1b7   : > { %v1347_v45 = vpop.permute.xlu1 %1346 }
 0x1b8   : > { %v1859_v53 = vrot.slane %v9484_v23, 2  ;;  %v1856_v55 = vrot.slane %v9486_v31, 2  ;;  %v9494_v43 = vld [vmem:[#allocation2 + $0x30] sm:$0xff]  ;;  %v1368_v10 = vrot.slane %v1347_v45, 4  ;;  %v1525_v12 = vpop.permute.xlu0 %1524  ;;  %v1687_v58 = vsel %vm1682_vm11, %v1652_v51, %v1673_v15 }
 0x1b9   : > { %v7223_v19 = vcombine.high %v1729_v40, %v9494_v43  ;;  %v7222_v13 = vcombine.low %v1729_v40, %v9494_v43  ;;  %v1546_v8 = vrot.slane %v1525_v12, 4 }
 0x1ba   : > { %v1860_v56 = vsel %vm1854_vm0, %v1858_v28, %v1859_v53  ;;  %v1857_v14 = vsel %vm1854_vm0, %v1855_v62, %v1856_v55  ;;  %v1382_v47 = vsel %vm1377_vm6, %v1347_v45, %v1368_v10 }
 0x1bb   : > { %7212 = vmatprep.mubr.msk.bf16.mxu1 %vm1977_vm4, %v1860_v56  ;;  %7247 = vmatprep.mubr.msk.bf16.mxu0 %vm1977_vm4, %v7223_v19  ;;  %1414 = vst.msk [vmem:[#allocation2 + $0x40] sm:$0xf] %vm1404_vm5, %v1382_v47  ;;  %v1527_v0 = vpop.permute.xlu1 %1526  ;;  %v1560_v16 = vsel %vm1555_vm9, %v1525_v12, %v1546_v8 }
 0x1bc   : > { %2029 = vmatmul.mubr.bf16.vlgmr.msra.gmra.mrb[0].mxu1 %v1857_v14  ;;  %2258 = vmatmul.mubr.bf16.gmra.mrb[32].mxu0 %v7222_v13  ;;  %1446 = vst.msk [vmem:[#allocation2 + $0x40] sm:$0xff] %vm9429_vm7, %v9049_v60  ;;  %v1547_v24 = vrot.slane %v1527_v0, 4  ;;  %v1157_v26 = vpop.permute.xlu0 %1156  ;;  %v8346_v14 = vld [vmem:[%s11771_s5 + $0x110] sm:$0xff]  }
 0x1bd   : > { %2496 = vmatpush1.bf16.msra.mxu1 %v8337_v4  ;;  %1592 = vst.msk [vmem:[#allocation2 + $0x3c] sm:$0xf] %vm1588_vm12, %v1560_v16  ;;  %v1177_v27 = vrot.slane %v1157_v26, 4 }
 0x1be   : > { %2497 = vmatprep.subr.bf16.mxu1 %v9357_v61  ;;  %1715 = vst.msk [vmem:[#allocation2 + $0x3c] sm:$0xf] %vm1711_vm13, %v1687_v58  ;;  %v1561_v29 = vsel %vm1555_vm9, %v1527_v0, %v1547_v24 }
 0x1bf   : > { %1593 = vst.msk [vmem:[#allocation2 + $0x44] sm:$0xf] %vm1588_vm12, %v1561_v29  ;;  %v1159_v60 = vpop.permute.xlu1 %1158  ;;  %v1191_v33 = vsel %vm1185_vm10, %v1157_v26, %v1177_v27 }
 0x1c0   : > { %1716 = vst.msk [vmem:[#allocation2 + $0x44] sm:$0xf] %vm1711_vm13, %v1688_v32  ;;  %v1178_v41 = vrot.slane %v1159_v60, 4  ;;  %v1349_v5 = vpop.permute.xlu0 %1348 }
 0x1c1   : > { %2498 = vmatpush1.bf16.msra.mxu1 %v8339_v36  ;;  %1219 = vst.msk [vmem:[#allocation2 + $0x48] sm:$0xf] %vm1214_vm2, %v1191_v33  ;;  %v1369_v42 = vrot.slane %v1349_v5, 4  ;;  %v8352_v33 = vld [vmem:[%s11771_s5 + $0x120] sm:$0xff]  }
 0x1c2   : > { %2499 = vmatprep.subr.bf16.mxu1 %v9357_v61  ;;  %v1192_v59 = vsel %vm1185_vm10, %v1159_v60, %v1178_v41 }
 0x1c3   : > { %1220 = vst.msk [vmem:[#allocation2 + $0x50] sm:$0xf] %vm1214_vm2, %v1192_v59  ;;  %v1658_v44 = vpop.permute.xlu1 %1657  ;;  %v1383_v40 = vsel %vm1377_vm6, %v1349_v5, %v1369_v42 }
 0x1c4   : > { %1415 = vst.msk [vmem:[#allocation2 + $0x48] sm:$0xf] %vm1404_vm5, %v1383_v40  ;;  %v1656_v38 = vpop.permute.xlu0 %1655  ;;  %v1676_v63 = vrot.slane %v1658_v44, 4 }
 0x1c5   : > { %2500 = vmatpush1.bf16.msra.mxu1 %v8342_v17  ;;  %v1731_v49 = vld [vmem:[#allocation2 + $0x38] sm:$0xff]  ;;  %1447 = vst.msk [vmem:[#allocation2 + $0x48] sm:$0xff] %vm9429_vm7, %v9062_v11  ;;  %v1675_v19 = vrot.slane %v1656_v38, 4 }
 0x1c6   : > { %2501 = vmatprep.subr.bf16.mxu1 %v9357_v61  ;;  %v9544_v51 = vcombine.high %v9494_v43, %v1731_v49  ;;  %v9547_v28 = vcombine.low %v9494_v43, %v1731_v49 }
 0x1c7   : > { %v1351_v45 = vpop.permute.xlu1 %1350  ;;  %v1732_v62 = vld [vmem:[#allocation2 + $0x40] sm:$0xff]  ;;  %v1689_v24 = vsel %vm1682_vm11, %v1656_v38, %v1675_v19  ;;  %v8354_v38 = vld [vmem:[%s11771_s5 + $0x128] sm:$0xff]  }
 0x1c8   : > { %v1370_v4 = vrot.slane %v1351_v45, 4  ;;  %v1863_v10 = vrot.slane %v9544_v51, 2  ;;  %v9550_v56 = vcombine.high %v1731_v49, %v1732_v62  ;;  %v1529_v15 = vpop.permute.xlu0 %1528  ;;  %v1861_v11 = vrot.slane %v9547_v28, 2 }
 0x1c9   : > { %2502 = vmatpush1.bf16.msra.mxu1 %v8344_v1  ;;  %v9554_v12 = vcombine.low %v1731_v49, %v1732_v62  ;;  %v1548_v47 = vrot.slane %v1529_v15, 4 }
 0x1ca   : > { %2503 = vmatprep.subr.bf16.mxu1 %v9357_v61  ;;  %v1384_v13 = vsel %vm1377_vm6, %v1351_v45, %v1370_v4  ;;  %v1864_v8 = vsel %vm1854_vm0, %v1859_v53, %v1863_v10  ;;  %7248 = vmatprep.mubr.msk.bf16.mxu0 %vm1977_vm4, %v9550_v56  ;;  %v1862_v36 = vsel %vm1854_vm0, %v1856_v55, %v1861_v11  ;;  %v8349_v55 = vld [vmem:[%s11771_s5 + $0x118] sm:$0xff]  }
 0x1cb   : > { %1416 = vst.msk [vmem:[#allocation2 + $0x50] sm:$0xf] %vm1404_vm5, %v1384_v13  ;;  %7213 = vmatprep.mubr.msk.bf16.mxu1 %vm1977_vm4, %v1864_v8  ;;  %v1531_v0 = vpop.permute.xlu1 %1530  ;;  %2266 = vmatmul.mubr.bf16.gmra.mrb[36].mxu0 %v9554_v12  ;;  %v1562_v53 = vsel %vm1555_vm9, %v1529_v15, %v1548_v47 }
 0x1cc   : > { %1448 = vst.msk [vmem:[#allocation2 + $0x50] sm:$0xff] %vm9429_vm7, %v9102_v50  ;;  %v1549_v16 = vrot.slane %v1531_v0, 4  ;;  %2037 = vmatmul.mubr.bf16.gmra.mrb[4].mxu1 %v1862_v36  ;;  %v1161_v58 = vpop.permute.xlu0 %1160  ;;  %v1690_v50 = vsel %vm1682_vm11, %v1658_v44, %v1676_v63  ;;  %v8356_v36 = vld [vmem:[%s11771_s5 + $0x130] sm:$0xff]  }
 0x1cd   : > { %1594 = vst.msk [vmem:[#allocation2 + $0x4c] sm:$0xf] %vm1588_vm12, %v1562_v53  ;;  %2504 = vmatpush1.bf16.msra.mxu1 %v8346_v14  ;;  %v1179_v29 = vrot.slane %v1161_v58, 4 }
 0x1ce   : > { %1717 = vst.msk [vmem:[#allocation2 + $0x4c] sm:$0xf] %vm1711_vm13, %v1689_v24  ;;  %v1563_v26 = vsel %vm1555_vm9, %v1531_v0, %v1549_v16  ;;  %2505 = vmatprep.subr.bf16.mxu1 %v9357_v61 }
 0x1cf   : > { %1595 = vst.msk [vmem:[#allocation2 + $0x54] sm:$0xf] %vm1588_vm12, %v1563_v26  ;;  %v1163_v27 = vpop.permute.xlu1 %1162  ;;  %v1193_v32 = vsel %vm1185_vm10, %v1161_v58, %v1179_v29  ;;  %v8358_v29 = vld [vmem:[%s11771_s5 + $0x138] sm:$0xff]  }
 0x1d0   : > { %1718 = vst.msk [vmem:[#allocation2 + $0x54] sm:$0xf] %vm1711_vm13, %v1690_v50  ;;  %v1180_v60 = vrot.slane %v1163_v27, 4  ;;  %v1353_v17 = vpop.permute.xlu0 %1352 }
 0x1d1   : > { %1221 = vst.msk [vmem:[#allocation2 + $0x58] sm:$0xf] %vm1214_vm2, %v1193_v32  ;;  %2506 = vmatpush1.bf16.msra.mxu1 %v8349_v55  ;;  %v1371_v5 = vrot.slane %v1353_v17, 4 }
 0x1d2   : > { %v1194_v41 = vsel %vm1185_vm10, %v1163_v27, %v1180_v60  ;;  %2507 = vmatprep.subr.bf16.mxu1 %v9357_v61 }
 0x1d3   : > { %1222 = vst.msk [vmem:[#allocation2 + $0x60] sm:$0xf] %vm1214_vm2, %v1194_v41  ;;  %v1355_v59 = vpop.permute.xlu1 %1354  ;;  %v1385_v42 = vsel %vm1377_vm6, %v1353_v17, %v1371_v5 }
 0x1d4   : > { %v1372_v44 = vrot.slane %v1355_v59, 4  ;;  %1417 = vst.msk [vmem:[#allocation2 + $0x58] sm:$0xf] %vm1404_vm5, %v1385_v42  ;;  %v1533_v1 = vpop.permute.xlu0 %1532  ;;  %v2588_v42 = vld [vmem:[#allocation2 + $0x28] sm:$0xcc] }
 0x1d5   : > { %v1733_v40 = vld [vmem:[#allocation2 + $0x48] sm:$0xff]  ;;  %2508 = vmatpush1.bf16.msra.mxu1 %v8352_v33  ;;  %1449 = vst.msk [vmem:[#allocation2 + $0x58] sm:$0xff] %vm9429_vm7, %v9116_v2  ;;  %v1550_v45 = vrot.slane %v1533_v1, 4  ;;  %v8360_v33 = vld [vmem:[%s11771_s5 + $0x140] sm:$0xff]  }
 0x1d6   : > { %v1386_v49 = vsel %vm1377_vm6, %v1355_v59, %v1372_v44  ;;  %v9607_v4 = vcombine.high %v1732_v62, %v1733_v40  ;;  %v9609_v19 = vcombine.low %v1732_v62, %v1733_v40  ;;  %2509 = vmatprep.subr.bf16.mxu1 %v9357_v61 }
 0x1d7   : > { %1418 = vst.msk [vmem:[#allocation2 + $0x60] sm:$0xf] %vm1404_vm5, %v1386_v49  ;;  %v1535_v15 = vpop.permute.xlu1 %1534  ;;  %v1734_v14 = vld [vmem:[#allocation2 + $0x50] sm:$0xff]  ;;  %v1564_v13 = vsel %vm1555_vm9, %v1533_v1, %v1550_v45 }
 0x1d8   : > { %1450 = vst.msk [vmem:[#allocation2 + $0x60] sm:$0xff] %vm9429_vm7, %v9153_v48  ;;  %v1551_v2 = vrot.slane %v1535_v15, 4  ;;  %v1867_v47 = vrot.slane %v9607_v4, 2  ;;  %v9618_v8 = vcombine.high %v1733_v40, %v1734_v14  ;;  %v1660_v62 = vpop.permute.xlu0 %1659  ;;  %v1865_v63 = vrot.slane %v9609_v19, 2 }
 0x1d9   : > { %1596 = vst.msk [vmem:[#allocation2 + $0x5c] sm:$0xf] %vm1588_vm12, %v1564_v13  ;;  %v9622_v0 = vcombine.low %v1733_v40, %v1734_v14  ;;  %2510 = vmatpush1.bf16.msra.mxu1 %v8354_v38  ;;  %v1677_v53 = vrot.slane %v1660_v62, 4  ;;  %v7345_v38 = vcombine.high %v2588_v42, %v9494_v43  ;;  %v8362_v13 = vld [vmem:[%s11771_s5 + $0x148] sm:$0xff]  }
 0x1da   : > { %v1565_v48 = vsel %vm1555_vm9, %v1535_v15, %v1551_v2  ;;  %v1868_v16 = vsel %vm1854_vm0, %v1863_v10, %v1867_v47  ;;  %7249 = vmatprep.mubr.msk.bf16.mxu0 %vm1977_vm4, %v9618_v8  ;;  %2511 = vmatprep.subr.bf16.mxu1 %v9357_v61  ;;  %v1866_v58 = vsel %vm1854_vm0, %v1861_v11, %v1865_v63 }
 0x1db   : > { %1597 = vst.msk [vmem:[#allocation2 + $0x64] sm:$0xf] %vm1588_vm12, %v1565_v48  ;;  %7214 = vmatprep.mubr.msk.bf16.mxu1 %vm1977_vm4, %v1868_v16  ;;  %v1662_v24 = vpop.permute.xlu1 %1661  ;;  %2274 = vmatmul.mubr.bf16.gmra.mrb[40].mxu0 %v9622_v0  ;;  %v1691_v10 = vsel %vm1682_vm11, %v1660_v62, %v1677_v53 }
 0x1dc   : > { %v1678_v55 = vrot.slane %v1662_v24, 4  ;;  %2045 = vmatmul.mubr.bf16.gmra.mrb[8].mxu1 %v1866_v58  ;;  %1719 = vst.msk [vmem:[#allocation2 + $0x5c] sm:$0xf] %vm1711_vm13, %v1691_v10  ;;  %v1165_v26 = vpop.permute.xlu0 %1164 }
 0x1dd   : > { %2512 = vmatpush1.bf16.msra.mxu1 %v8356_v36  ;;  %v1181_v27 = vrot.slane %v1165_v26, 4  ;;  %v2689_v36 = vrot.slane %v9550_v56, 2 }
 0x1de   : > { %v1692_v50 = vsel %vm1682_vm11, %v1662_v24, %v1678_v55  ;;  %2513 = vmatprep.subr.bf16.mxu1 %v9357_v61  ;;  %v2688_v55 = vrot.slane %v7345_v38, 2 }
 0x1df   : > { %1720 = vst.msk [vmem:[#allocation2 + $0x64] sm:$0xf] %vm1711_vm13, %v1692_v50  ;;  %v1357_v11 = vpop.permute.xlu1 %1356  ;;  %v1195_v32 = vsel %vm1185_vm10, %v1165_v26, %v1181_v27  ;;  %v8366_v50 = vld [vmem:[%s11771_s5 + $0x150] sm:$0xff]  }
 0x1e0   : > { %v1373_v60 = vrot.slane %v1357_v11, 4  ;;  %1223 = vst.msk [vmem:[#allocation2 + $0x68] sm:$0xf] %vm1214_vm2, %v1195_v32  ;;  %v1169_v17 = vpop.permute.xlu0 %1168 }
 0x1e1   : > { %2514 = vmatpush1.bf16.msra.mxu1 %v8358_v29  ;;  %v1183_v5 = vrot.slane %v1169_v17, 4 }
 0x1e2   : > { %v1387_v41 = vsel %vm1377_vm6, %v1357_v11, %v1373_v60  ;;  %2515 = vmatprep.subr.bf16.mxu1 %v9357_v61 }
 0x1e3   : > { %1419 = vst.msk [vmem:[#allocation2 + $0x68] sm:$0xf] %vm1404_vm5, %v1387_v41  ;;  %v1167_v59 = vpop.permute.xlu1 %1166  ;;  %v1197_v44 = vsel %vm1185_vm10, %v1169_v17, %v1183_v5  ;;  %v1735_v40 = vld [vmem:[#allocation2 + $0x58] sm:$0xff]  ;;  %v2686_v41 = vrot.slane %v9554_v12, 2 }
 0x1e4   : > { %1451 = vst.msk [vmem:[#allocation2 + $0x68] sm:$0xff] %vm9429_vm7, %v9167_v3  ;;  %v1182_v1 = vrot.slane %v1167_v59, 4  ;;  %v1171_v49 = vpop.permute.xlu0 %1170  ;;  %v9666_v45 = vcombine.high %v1734_v14, %v1735_v40  ;;  %v9668_v15 = vcombine.low %v1734_v14, %v1735_v40  ;;  %v8369_v5 = vld [vmem:[%s11771_s5 + $0x158] sm:$0xff]  }
 0x1e5   : > { %1225 = vst.msk [vmem:[#allocation2 + $0x78] sm:$0xf] %vm1214_vm2, %v1197_v44  ;;  %2516 = vmatpush1.bf16.msra.mxu1 %v8360_v33  ;;  %v1184_v2 = vrot.slane %v1171_v49, 4 }
 0x1e6   : > { %v1196_v3 = vsel %vm1185_vm10, %v1167_v59, %v1182_v1  ;;  %v9674_v62 = vld [vmem:[#allocation2 + $0x60] sm:$0xff]  ;;  %2517 = vmatprep.subr.bf16.mxu1 %v9357_v61  ;;  %v1871_v14 = vrot.slane %v9666_v45, 2  ;;  %v1869_v16 = vrot.slane %v9668_v15, 2 }
 0x1e7   : > { %1224 = vst.msk [vmem:[#allocation2 + $0x70] sm:$0xf] %vm1214_vm2, %v1196_v3  ;;  %v1537_v48 = vpop.permute.xlu1 %1536  ;;  %v9681_v53 = vcombine.high %v1735_v40, %v9674_v62  ;;  %v9685_v24 = vcombine.low %v1735_v40, %v9674_v62  ;;  %v1198_v58 = vsel %vm1185_vm10, %v1171_v49, %v1184_v2  ;;  %v8355_v1 = vld [vmem:[%s11769_s3] sm:$0xff]   ;;  %vm11819_vm2 = vsmask.f32 256 }
 0x1e8   : > { %v1552_v10 = vrot.slane %v1537_v48, 4  ;;  %1227 = vst.msk [vmem:[#allocation2 + $0x80] sm:$0x1] %vm1226_vm1, %v1198_v58  ;;  %v1359_v56 = vpop.permute.xlu0 %1358  ;;  %v1872_v26 = vsel %vm1854_vm0, %v1867_v47, %v1871_v14  ;;  %v1870_v29 = vsel %vm1854_vm0, %v1865_v63, %v1869_v16  ;;  %v2690_v47 = vsel %vm1854_vm0, %v2688_v55, %v2689_v36 }
 0x1e9   : > { %7250 = vmatprep.mubr.msk.bf16.mxu0 %vm1977_vm4, %v9681_v53  ;;  %2518 = vmatpush1.bf16.msra.mxu1 %v8362_v13  ;;  %v1374_v11 = vrot.slane %v1359_v56, 4  ;;  %v7344_v63 = vcombine.low %v2588_v42, %v9494_v43  ;;  %v2693_v42 = vrot.slane %v9618_v8, 2  ;;  %v8373_v13 = vld [vmem:[%s11771_s5 + $0x160] sm:$0xff]  }
 0x1ea   : > { %v1566_v27 = vsel %vm1555_vm9, %v1537_v48, %v1552_v10  ;;  %7215 = vmatprep.mubr.msk.bf16.mxu1 %vm1977_vm4, %v1872_v26  ;;  %2282 = vmatmul.mubr.bf16.gmra.mrb[44].mxu0 %v9685_v24  ;;  %v8357_v48 = vld [vmem:[%s11769_s3 + $0x8] sm:$0xff]  }
 0x1eb   : > { %1598 = vst.msk [vmem:[#allocation2 + $0x6c] sm:$0xf] %vm1588_vm12, %v1566_v27  ;;  %2053 = vmatmul.mubr.bf16.gmra.mrb[12].mxu1 %v1870_v29  ;;  %v1361_v32 = vpop.permute.xlu1 %1360  ;;  %7373 = vmatprep.mubr.msk.bf16.mxu0 %vm1977_vm4, %v2690_v47  ;;  %v1388_v60 = vsel %vm1377_vm6, %v1359_v56, %v1374_v11  ;;  %v2685_v12 = vrot.slane %v7344_v63, 2  ;;  %v2694_v7 = vsel %vm1854_vm0, %v2689_v36, %v2693_v42  ;;  %v2691_v56 = vrot.slane %v9622_v0, 2 }
 0x1ec   : > { %v1375_v17 = vrot.slane %v1361_v32, 4  ;;  %2519 = vmatprep.subr.bf16.mxu1 %v9357_v61  ;;  %1420 = vst.msk [vmem:[#allocation2 + $0x70] sm:$0xf] %vm1404_vm5, %v1388_v60  ;;  %v1539_v33 = vpop.permute.xlu0 %1538  ;;  %v2697_v27 = vrot.slane %v9681_v53, 2 }
 0x1ed   : > { %2520 = vmatpush1.bf16.msra.mxu1 %v8366_v50  ;;  %1452 = vst.msk [vmem:[#allocation2 + $0x70] sm:$0xff] %vm9429_vm7, %v9200_v52  ;;  %v1553_v59 = vrot.slane %v1539_v33, 4  ;;  %v2687_v49 = vsel %vm1854_vm0, %v2685_v12, %v2686_v41 }
 0x1ee   : > { %v1389_v43 = vsel %vm1377_vm6, %v1361_v32, %v1375_v17  ;;  %2521 = vmatprep.subr.bf16.mxu1 %v9357_v61  ;;  %v8359_v32 = vld [vmem:[%s11769_s3 + $0x10] sm:$0xff]  }
 0x1ef   : > { %1421 = vst.msk [vmem:[#allocation2 + $0x78] sm:$0xf] %vm1404_vm5, %v1389_v43  ;;  %v1664_v44 = vpop.permute.xlu1 %1663  ;;  %v1567_v52 = vsel %vm1555_vm9, %v1539_v33, %v1553_v59  ;;  %vm11816_vm5 = vsmask.f32 3328  ;;  %v1424_v60 = vld [vmem:[#allocation2 + $0x80] sm:$0x1]  ;;  %v2692_v43 = vsel %vm1854_vm0, %v2686_v41, %v2691_v56 }
 0x1f0   : > { %1453 = vst.msk [vmem:[#allocation2 + $0x78] sm:$0xff] %vm9429_vm7, %v9210_v6  ;;  %v1679_v40 = vrot.slane %v1664_v44, 4  ;;  %v1666_v38 = vpop.permute.xlu0 %1665  ;;  %vm1422_vm7 = vcmask 778624   ;;  %vm9749_vm8 = vmand %vm1588_vm12, %vm11816_vm5 }
 0x1f1   : > { %1599 = vst.msk [vmem:[#allocation2 + $0x74] sm:$0xf] %vm1588_vm12, %v1567_v52  ;;  %2522 = vmatpush1.bf16.msra.mxu1 %v8369_v5  ;;  %v1680_v2 = vrot.slane %v1666_v38, 4  ;;  %vm9756_vm1 = vmand %vm1422_vm7, %vm11819_vm2  ;;  %vm493_vm2 = vcmask 520196  }
 0x1f2   : > { %v1693_v3 = vsel %vm1682_vm11, %v1664_v44, %v1679_v40  ;;  %2858 = vmatmul.mubr.bf16.vlgmr.msra.gmra.mrb[48].mxu0 %v2687_v49  ;;  %2523 = vmatprep.subr.bf16.mxu1 %v9357_v61  ;;  %v2698_v44 = vsel %vm1854_vm0, %v2693_v42, %v2697_v27  ;;  %v2695_v42 = vrot.slane %v9685_v24, 2 }
 0x1f3   : > { %1721 = vst.msk [vmem:[#allocation2 + $0x6c] sm:$0xf] %vm1711_vm13, %v1693_v3  ;;  %3461 = vmatpush1.bf16.msra.mxu0 %v8355_v1  ;;  %v1541_v6 = vpop.permute.xlu1 %1540  ;;  %7374 = vmatprep.mubr.msk.bf16.mxu0 %vm1977_vm4, %v2694_v7  ;;  %v1694_v58 = vsel %vm1682_vm11, %v1666_v38, %v1680_v2  ;;  %v8361_v1 = vld [vmem:[%s11769_s3 + $0x18] sm:$0xff]  }
 0x1f4   : > { %v1554_v10 = vrot.slane %v1541_v6, 4  ;;  %3462 = vmatprep.subr.bf16.mxu0 %v9357_v61  ;;  %1722 = vst.msk [vmem:[#allocation2 + $0x74] sm:$0xf] %vm1711_vm13, %v1694_v58  ;;  %v1363_v55 = vpop.permute.xlu0 %1362 }
 0x1f5   : > { %2524 = vmatpush1.bf16.msra.mxu1 %v8373_v13  ;;  %v1376_v50 = vrot.slane %v1363_v55, 4 }
 0x1f6   : > { %v1568_v26 = vsel %vm1555_vm9, %v1541_v6, %v1554_v10  ;;  %3123 = vmatprep.subr.bf16.mxu1 %v9357_v61  ;;  %vm1723_vm9 = vcmask 911872  }
 0x1f7   : > { %v1602_v11 = vld [vmem:[#allocation2 + $0x7c] sm:$0xf]  ;;  %3463 = vmatpush1.bf16.msra.mxu0 %v8357_v48  ;;  %v1668_v47 = vpop.permute.xlu1 %1667  ;;  %v1390_v17 = vsel %vm1377_vm6, %v1363_v55, %v1376_v50  ;;  %v8364_v48 = vld [vmem:[%s11769_s3 + $0x20] sm:$0xff]   ;;  %v8367_v50 = vld [vmem:[%s11769_s3 + $0x28] sm:$0xff]   ;;  %vm11822_vm6 = vcmask 523264  }
 0x1f8   : > { %v1603_v63 = vsel %vm9749_vm8, %v1568_v26, %v1602_v11  ;;  %v1681_v33 = vrot.slane %v1668_v47, 4  ;;  %3464 = vmatprep.subr.bf16.mxu0 %v9357_v61  ;;  %v1425_v5 = vsel %vm9756_vm1, %v1390_v17, %v1424_v60  ;;  %v2600_v60 = vld [vmem:[#allocation2 + $0x88] sm:$0x33]  ;;  %vm11823_vm13 = vmmov %vm11822_vm6 }
 0x1f9   : > { %1604 = vst [vmem:[#allocation2 + $0x7c] sm:$0xf] %v1603_v63  ;;  %1426 = vst [vmem:[#allocation2 + $0x80] sm:$0x1] %v1425_v5 }
 0x1fa   : > { %v1695_v59 = vsel %vm1682_vm11, %v1668_v47, %v1681_v33  ;;  %2866 = vmatmul.mubr.bf16.gmra.mrb[52].mxu0 %v2692_v43  ;;  %v1768_v12 = vld [vmem:[#allocation2 + $0x68] sm:$0xff]  ;;  %v8374_v43 = vld [vmem:[%s11769_s3 + $0x38] sm:$0xff]   ;;  %vm11824_vm12 = vmmov %vm11822_vm6 }
 0x1fb   : > { %1724 = vst.msk [vmem:[#allocation2 + $0x7c] sm:$0x7] %vm1723_vm9, %v1695_v59  ;;  %3465 = vmatpush1.bf16.msra.mxu0 %v8359_v32  ;;  %7375 = vmatprep.mubr.msk.bf16.mxu0 %vm1977_vm4, %v2698_v44  ;;  %v9779_v52 = vcombine.high %v9674_v62, %v1768_v12  ;;  %v9782_v41 = vcombine.low %v9674_v62, %v1768_v12  ;;  %v1769_v40 = vld [vmem:[#allocation2 + $0x70] sm:$0x33]  ;;  %vm11825_vm7 = vmmov %vm11822_vm6  ;;  %vm496_vm9 = vcmask 523271  }
 0x1fc   : > { %3466 = vmatprep.subr.bf16.mxu0 %v9357_v61  ;;  %v9786_v38 = vld [vmem:[#allocation2 + $0x70] sm:$0xff]  ;;  %v7196_v3 = vcombine.high %v1769_v40, %v1769_v40  ;;  %v7195_v10 = vcombine.low %v1769_v40, %v1769_v40  ;;  %v7357_v59 = vcombine.high %v2600_v60, %v2600_v60  ;;  %vm11826_vm5 = vmmov %vm11822_vm6 }
 0x1fd   : > { %v1875_v49 = vrot.slane %v9779_v52, 2  ;;  %v1873_v13 = vrot.slane %v9782_v41, 2  ;;  %v9791_v2 = vcombine.high %v1768_v12, %v9786_v38  ;;  %v9808_v55 = vcombine.low %v1768_v12, %v9786_v38  ;;  %v8371_v32 = vld [vmem:[%s11769_s3 + $0x30] sm:$0xff]   ;;  %vm11827_vm8 = vmmov %vm11826_vm5 }
 0x1fe   : > { %v1879_v6 = vrot.slane %v7196_v3, 2  ;;  %v1877_v11 = vrot.slane %v7195_v10, 2  ;;  %v2709_v12 = vrot.slane %v7357_v59, 2  ;;  %v8557_v10 = vld [vmem:[%s8717_s23] ss:$8 sps:$4 sm:$0xff]  }
 0x1ff   : > { %3467 = vmatpush1.bf16.msra.mxu0 %v8361_v1  ;;  %v1876_v62 = vsel %vm1854_vm0, %v1871_v14, %v1875_v49  ;;  %v1874_v7 = vsel %vm1854_vm0, %v1869_v16, %v1873_v13  ;;  %v2701_v58 = vrot.slane %v9791_v2, 2  ;;  %v2696_v14 = vsel %vm1854_vm0, %v2691_v56, %v2695_v42  ;;  %v8377_v1 = vld [vmem:[%s11769_s3 + $0x40] sm:$0xff]  }
 0x200   : > { %7216 = vmatprep.mubr.msk.bf16.mxu1 %vm1977_vm4, %v1876_v62  ;;  %3468 = vmatprep.subr.bf16.mxu0 %v9357_v61  ;;  %v1880_v36 = vsel %vm1854_vm0, %v1875_v49, %v1879_v6  ;;  %v2599_v29 = vld [vmem:[#allocation2 + $0x80] sm:$0xff]  ;;  %v2699_v47 = vrot.slane %v9808_v55, 2  ;;  %v1878_v63 = vsel %vm1854_vm0, %v1873_v13, %v1877_v11  ;;  %v7356_v49 = vcombine.low %v2600_v60, %v2600_v60  ;;  %v9857_v13 = vld [vmem:[#allocation4] sm:$0xff]  ;;  %v8384_v6 = vld [vmem:[%s11771_s5 + $0x1f8] sm:$0xff]  }
 0x201   : > { %2061 = vmatmul.mubr.bf16.gmra.mrb[16].mxu1 %v1874_v7  ;;  %v2702_v16 = vsel %vm1854_vm0, %v2697_v27, %v2701_v58  ;;  %v8383_v62 = vld [vmem:[%s11769_s3 + $0x50] sm:$0xff]   ;;  %v8564_v60 = vld [vmem:[%s8717_s23 + $0x44] ss:$8 sps:$4 sm:$0xff]  }
 0x202   : > { %7217 = vmatprep.mubr.msk.bf16.mxu1 %vm1977_vm4, %v1880_v36  ;;  %2874 = vmatmul.mubr.bf16.gmra.mrb[56].mxu0 %v2696_v14  ;;  %v9812_v26 = vld [vmem:[#allocation2 + $0x78] sm:$0xff]  ;;  %v2700_v17 = vsel %vm1854_vm0, %v2695_v42, %v2699_v47  ;;  %v8379_v42 = vld [vmem:[%s11771_s5 + $0x1e8] sm:$0xff]   ;;  %v2707_v3 = vrot.slane %v7356_v49, 2 }
 0x203   : > { %3469 = vmatpush1.bf16.msra.mxu0 %v8364_v48  ;;  %7376 = vmatprep.mubr.msk.bf16.mxu0 %vm1977_vm4, %v2702_v16  ;;  %v9819_v56 = vcombine.high %v9812_v26, %v2599_v29  ;;  %v9834_v5 = vcombine.low %v9812_v26, %v2599_v29  ;;  %v8556_v48 = vld [vmem:[%s8717_s23 + $0x4] ss:$8 sps:$4 sm:$0xff]   ;;  %v8558_v36 = vld [vmem:[%s8717_s23 + $0x14] ss:$8 sps:$4 sm:$0xff]   ;;  %v8559_v14 = vld [vmem:[%s8717_s23 + $0x10] ss:$8 sps:$4 sm:$0xff]  }
 0x204   : > { %3470 = vmatprep.subr.bf16.mxu0 %v9357_v61  ;;  %v8560_v16 = vld [vmem:[%s8717_s23 + $0x24] ss:$8 sps:$4 sm:$0xff]   ;;  %v8562_v11 = vld [vmem:[%s8717_s23 + $0x34] ss:$8 sps:$4 sm:$0xff]  }
 0x205   : > { %v2705_v27 = vrot.slane %v9819_v56, 2  ;;  %v2703_v44 = vrot.slane %v9834_v5, 2  ;;  %v8392_v29 = vld [vmem:[%s11771_s5 + $0x228] sm:$0xff]  }
 0x207   : > { %3471 = vmatpush1.bf16.msra.mxu0 %v8367_v50  ;;  %v2706_v33 = vsel %vm1854_vm0, %v2701_v58, %v2705_v27  ;;  %v2704_v40 = vsel %vm1854_vm0, %v2699_v47, %v2703_v44  ;;  %v2708_v7 = vsel %vm1854_vm0, %v2703_v44, %v2707_v3  ;;  %v8387_v58 = vld [vmem:[%s11771_s5 + $0x208] sm:$0xff]   ;;  %v7291_v47 = vcombine.low %v9786_v38, %v9812_v26  ;;  %v8566_v44 = vld [vmem:[%s8717_s23 + $0x54] ss:$8 sps:$4 sm:$0xff]  }
 0x208   : > { %3472 = vmatprep.subr.bf16.mxu0 %v9357_v61  ;;  %v8561_v50 = vld [vmem:[%s8717_s23 + $0x20] ss:$8 sps:$4 sm:$0xff]  }
 0x209   : > { %2069 = vmatmul.mubr.bf16.gmra.mrb[20].mxu1 %v1878_v63  ;;  %v8563_v63 = vld [vmem:[%s8717_s23 + $0x30] ss:$8 sps:$4 sm:$0xff]  }
 0x20a   : > { %7308 = vmatprep.mubr.msk.bf16.mxu1 %vm1977_vm4, %v9484_v23  ;;  %2882 = vmatmul.mubr.bf16.gmra.mrb[60].mxu0 %v2700_v17  ;;  %v8375_v23 = vld [vmem:[%s11771_s5 + $0x1e0] sm:$0xff]  }
 0x20b   : > { %3473 = vmatpush1.bf16.msra.mxu0 %v8371_v32  ;;  %7377 = vmatprep.mubr.msk.bf16.mxu0 %vm1977_vm4, %v2706_v33  ;;  %v8398_v32 = vld [vmem:[%s11771_s5 + $0x238] sm:$0xff]  }
 0x20c   : > { %3474 = vmatprep.subr.bf16.mxu0 %v9357_v61 }
 0x20f   : > { %3475 = vmatpush1.bf16.msra.mxu0 %v8374_v43  ;;  %v8400_v43 = vld [vmem:[%s11771_s5 + $0x248] sm:$0xff]  }
 0x210   : > { %3476 = vmatprep.subr.bf16.mxu0 %v9357_v61  ;;  %v2710_v61 = vsel %vm1854_vm0, %v2705_v27, %v2709_v12  ;;  %v8397_v27 = vld [vmem:[#allocation2 + $0x3c] ss:$8 sps:$4 sm:$0xff]   ;;  %v8401_v12 = vld [vmem:[%s11771_s5 + $0x250] sm:$0xff]  }
 0x211   : > { %2528 = vmatmul.mubr.bf16.vlgmr.msra.gmra.mrb[24].mxu1 %v9486_v31  ;;  %v8380_v31 = vld [vmem:[%s11769_s3 + $0x48] sm:$0xff]  }
 0x212   : > { %3124 = vmatpush1.bf16.msra.mxu1 %v8375_v23  ;;  %7309 = vmatprep.mubr.msk.bf16.mxu1 %vm1977_vm4, %v9544_v51  ;;  %v8381_v51 = vld [vmem:[%s11771_s5 + $0x1f0] sm:$0xff]   ;;  %v8565_v23 = vld [vmem:[%s8717_s23 + $0x40] ss:$8 sps:$4 sm:$0xff]  }
 0x213   : > { %2890 = vmatmul.mubr.bf16.gmra.mrb[64].mxu0 %v2704_v40  ;;  %3125 = vmatprep.subr.bf16.mxu1 %v9857_v13  ;;  %v8567_v40 = vld [vmem:[%s8717_s23 + $0x50] ss:$8 sps:$4 sm:$0xff]   ;;  %s8583_s23 = smov 64  }
 0x214   : > { %3477 = vmatpush1.bf16.msra.mxu0 %v8377_v1  ;;  %7378 = vmatprep.mubr.msk.bf16.mxu0 %vm1977_vm4, %v2710_v61  ;;  %v8395_v1 = vld [vmem:[#allocation2 + $0x38] ss:$8 sps:$4 sm:$0xff]  }
 0x215   : > { %3478 = vmatprep.subr.bf16.mxu0 %v9857_v13 }
 0x216   : > { %3126 = vmatpush1.bf16.msra.mxu1 %v8379_v42  ;;  %v8402_v42 = vld [vmem:[#allocation2 + $0x8c] ss:$8 sps:$4 sm:$0xff]  }
 0x217   : > { %3127 = vmatprep.subr.bf16.mxu1 %v9857_v13 }
 0x218   : > { %3479 = vmatpush1.bf16.msra.mxu0 %v8380_v31 }
 0x219   : > { %2536 = vmatmul.mubr.bf16.gmra.mrb[28].mxu1 %v9547_v28  ;;  %3480 = vmatprep.subr.bf16.mxu0 %v9857_v13  ;;  %v8385_v28 = vld [vmem:[%s11769_s3 + $0x58] sm:$0xff]  }
 0x21a   : > { %3128 = vmatpush1.bf16.msra.mxu1 %v8381_v51  ;;  %7310 = vmatprep.mubr.msk.bf16.mxu1 %vm1977_vm4, %v9607_v4  ;;  %v8386_v4 = vld [vmem:[%s11771_s5 + $0x200] sm:$0xff]  }
 0x21b   : > { %2898 = vmatmul.mubr.bf16.gmra.mrb[68].mxu0 %v2708_v7  ;;  %3129 = vmatprep.subr.bf16.mxu1 %v9857_v13 }
 0x21c   : > { %3481 = vmatpush1.bf16.msra.mxu0 %v8383_v62  ;;  %7468 = vmatprep.mubr.msk.bf16.mxu0 %vm11822_vm6, %v8556_v48  ;;  %vm11829_vm6 = vcmask 1043459  }
 0x21d   : > { %3482 = vmatprep.subr.bf16.mxu0 %v9857_v13 }
 0x21e   : > { %3130 = vmatpush1.bf16.msra.mxu1 %v8384_v6 }
 0x21f   : > { %3131 = vmatprep.subr.bf16.mxu1 %v9857_v13 }
 0x220   : > { %3483 = vmatpush1.bf16.msra.mxu0 %v8385_v28 }
 0x221   : > { %2544 = vmatmul.mubr.bf16.gmra.mrb[32].mxu1 %v9609_v19  ;;  %4368 = vmatprep.subr.bf16.mxu0 %v9857_v13  ;;  %v8388_v19 = vld [vmem:[%s11771_s5 + $0x210] sm:$0xff]  }
 0x222   : > { %3132 = vmatpush1.bf16.msra.mxu1 %v8386_v4  ;;  %7311 = vmatprep.mubr.msk.bf16.mxu1 %vm1977_vm4, %v9666_v45  ;;  %v8389_v45 = vld [vmem:[%s11771_s5 + $0x218] sm:$0xff]  }
 0x223   : > { %3493 = vmatmul.mubr.bf16.vlgmr.msra.gmra.mrb[72].mxu0 %v8557_v10  ;;  %3133 = vmatprep.subr.bf16.mxu1 %v9857_v13 }
 0x224   : > { %7469 = vmatprep.mubr.msk.bf16.mxu0 %vm11823_vm13, %v8558_v36  ;;  %vm497_vm13 = vmor %vm496_vm9, %vm11829_vm6  ;;  %vm11843_vm6 = vsmask.f32 3328 }
 0x225   : > { %498 = vst.msk [vmem:[#allocation3 + $0x78] sm:$0x88] %vm497_vm13, %v9857_v13 }
 0x226   : > { %3134 = vmatpush1.bf16.msra.mxu1 %v8387_v58 }
 0x227   : > { %3135 = vmatprep.subr.bf16.mxu1 %v9857_v13 }
 0x229   : > { %2552 = vmatmul.mubr.bf16.gmra.mrb[36].mxu1 %v9668_v15  ;;  %v8390_v15 = vld [vmem:[%s11771_s5 + $0x220] sm:$0xff]  }
 0x22a   : > { %3136 = vmatpush1.bf16.msra.mxu1 %v8388_v19  ;;  %7312 = vmatprep.mubr.msk.bf16.mxu1 %vm1977_vm4, %v9779_v52  ;;  %v7292_v52 = vcombine.high %v9786_v38, %v9812_v26  ;;  %v8399_v38 = vld [vmem:[%s11771_s5 + $0x240] sm:$0xff]  }
 0x22b   : > { %3501 = vmatmul.mubr.bf16.gmra.mrb[76].mxu0 %v8559_v14  ;;  %3137 = vmatprep.subr.bf16.mxu1 %v9857_v13 }
 0x22c   : > { %7470 = vmatprep.mubr.msk.bf16.mxu0 %vm11824_vm12, %v8560_v16  ;;  %vm3864_vm12 = vcmask 519171  }
 0x22e   : > { %3138 = vmatpush1.bf16.msra.mxu1 %v8389_v45 }
 0x22f   : > { %3139 = vmatprep.subr.bf16.mxu1 %v9857_v13  ;;  %v2243_v26 = vpop.f32.mrb[24].mxu0 }
 0x230   : > { %v2245_v17 = vpop.f32.mrb[25].mxu0 }
 0x231   : > { %2560 = vmatmul.mubr.bf16.gmra.mrb[40].mxu1 %v9782_v41  ;;  %v8394_v41 = vld [vmem:[%s11771_s5 + $0x230] sm:$0xff]   ;;  %v2246_v33 = vpop.f32.mrb[26].mxu0 }
 0x232   : > { %3140 = vmatpush1.bf16.msra.mxu1 %v8390_v15  ;;  %7313 = vmatprep.mubr.msk.bf16.mxu1 %vm1977_vm4, %v7292_v52  ;;  %v2248_v59 = vpop.f32.mrb[27].mxu0 }
 0x233   : > { %3509 = vmatmul.mubr.bf16.gmra.mrb[80].mxu0 %v8561_v50  ;;  %3141 = vmatprep.subr.bf16.mxu1 %v9857_v13 }
 0x234   : > { %7471 = vmatprep.mubr.msk.bf16.mxu0 %vm11825_vm7, %v8562_v11  ;;  %vm3721_vm7 = vcmask 519168  }
 0x235   : > { %vm10377_vm13 = vmand %vm3721_vm7, %vm11843_vm6 }
 0x236   : > { %3142 = vmatpush1.bf16.msra.mxu1 %v8392_v29 }
 0x237   : > { %3143 = vmatprep.subr.bf16.mxu1 %v9857_v13 }
 0x239   : > { %2568 = vmatmul.mubr.bf16.gmra.mrb[44].mxu1 %v7291_v47 }
 0x23a   : > { %3144 = vmatpush1.bf16.msra.mxu1 %v8394_v41  ;;  %7436 = vmatprep.mubr.msk.bf16.mxu1 %vm1977_vm4, %v8397_v27 }
 0x23b   : > { %3517 = vmatmul.mubr.bf16.gmra.mrb[84].mxu0 %v8563_v63  ;;  %3145 = vmatprep.subr.bf16.mxu1 %v9857_v13 }
 0x23c   : > { %7472 = vmatprep.mubr.msk.bf16.mxu0 %vm11826_vm5, %v8564_v60  ;;  %vm10168_vm5 = vmand %vm3864_vm12, %vm1583_vm3  ;;  %vm3779_vm12 = vcmask 1043968  }
 0x23e   : > { %3146 = vmatpush1.bf16.msra.mxu1 %v8398_v32 }
 0x23f   : > { %3147 = vmatprep.subr.bf16.mxu1 %v9857_v13 }
 0x242   : > { %3148 = vmatpush1.bf16.msra.mxu1 %v8399_v38 }
 0x243   : > { %3525 = vmatmul.mubr.bf16.gmra.mrb[88].mxu0 %v8565_v23  ;;  %3149 = vmatprep.subr.bf16.mxu1 %v9857_v13 }
 0x244   : > { %7473 = vmatprep.mubr.msk.bf16.mxu0 %vm11827_vm8, %v8566_v44  ;;  %vm11832_vm8 = vsmask.f32 7938 }
 0x246   : > { %3150 = vmatpush1.bf16.msra.mxu1 %v8400_v43 }
 0x247   : > { %3151 = vmatprep.subr.bf16.mxu1 %v9857_v13 }
 0x24a   : > { %3152 = vmatpush1.bf16.msra.mxu1 %v8401_v12 }
 0x24b   : > { %3533 = vmatmul.mubr.bf16.gmra.mrb[92].mxu0 %v8567_v40  ;;  %4152 = vmatprep.subr.bf16.mxu1 %v9857_v13 }
 0x24d   : > { %3156 = vmatmul.mubr.bf16.vlgmr.msra.gmra.mrb[48].mxu1 %v8395_v1 }
 0x24e   : > { %7437 = vmatprep.mubr.msk.bf16.mxu1 %vm1977_vm4, %v9618_v8  ;;  %v8404_v8 = vld [vmem:[#allocation2 + $0x88] ss:$8 sps:$4 sm:$0xff]  }
 0x255   : > { %3164 = vmatmul.mubr.bf16.gmra.mrb[52].mxu1 %v9622_v0 }
 0x256   : > { %7438 = vmatprep.mubr.msk.bf16.mxu1 %vm1977_vm4, %v9681_v53 }
 0x25d   : > { %3172 = vmatmul.mubr.bf16.gmra.mrb[56].mxu1 %v9685_v24 }
 0x25e   : > { %7439 = vmatprep.mubr.msk.bf16.mxu1 %vm1977_vm4, %v9791_v2 }
 0x265   : > { %3180 = vmatmul.mubr.bf16.gmra.mrb[60].mxu1 %v9808_v55 }
 0x266   : > { %7440 = vmatprep.mubr.msk.bf16.mxu1 %vm1977_vm4, %v9819_v56 }
 0x26d   : > { %3188 = vmatmul.mubr.bf16.gmra.mrb[64].mxu1 %v9834_v5 }
 0x26e   : > { %7441 = vmatprep.mubr.msk.bf16.mxu1 %vm1977_vm4, %v8402_v42  ;;  %vm11828_vm4 = vcmask 1040384  }
 0x26f   : > { %vm494_vm1 = vmor %vm493_vm2, %vm11828_vm4  ;;  %vm3738_vm4 = vcmask 516096  }
 0x270   : > { %495 = vst.msk [vmem:[#allocation3 + $0x20] sm:$0x11] %vm494_vm1, %v9857_v13  ;;  %vm10186_vm2 = vmand %vm3721_vm7, %vm11832_vm8  ;;  %vm11842_vm1 = vsmask.f32 256 }
 0x271   : > { %vm3739_vm9 = vmand %vm3738_vm4, %vm11842_vm1 }
 0x275   : > { %3196 = vmatmul.mubr.bf16.gmra.mrb[68].mxu1 %v8404_v8 }
 0x27f   : > { %v2251_v0 = vpop.f32.mrb[28].mxu0 }
 0x280   : > { %v2253_v49 = vpop.f32.mrb[29].mxu0 }
 0x281   : > { %v2254_v53 = vpop.f32.mrb[30].mxu0 }
 0x282   : > { %v2256_v61 = vpop.f32.mrb[31].mxu0 }
 0x283   : > { %v8405_v61 = vld [vmem:[%s11773_s7 + $0x60] sm:$0xff]  }
 0x284   : > { %4153 = vmatpush1.bf16.msra.mxu1 %v8405_v61 }
 0x285   : > { %4154 = vmatprep.subr.bf16.mxu1 %v9857_v13 }
 0x28f   : > { %v2030_v24 = vpop.f32.mrb[0].mxu1  ;;  %v2259_v2 = vpop.f32.mrb[32].mxu0 }
 0x290   : > { %v9975_v31 = vadd.f32 %v2243_v26, %v2030_v24  ;;  %v2032_v51 = vpop.f32.mrb[1].mxu1  ;;  %v2261_v55 = vpop.f32.mrb[33].mxu0  ;;  %v8407_v24 = vld [vmem:[%s11773_s7] sm:$0xff]  }
 0x291   : > { %v2033_v3 = vpop.f32.mrb[2].mxu1  ;;  %v2262_v56 = vpop.f32.mrb[34].mxu0  ;;  %4369 = vmatpush1.bf16.msra.mxu0 %v8407_v24  ;;  %v8409_v51 = vld [vmem:[%s11773_s7 + $0x8] sm:$0xff]  }
 0x292   : > { %v9977_v62 = vadd.f32 %v2246_v33, %v2033_v3  ;;  %v2035_v7 = vpop.f32.mrb[3].mxu1  ;;  %v2264_v5 = vpop.f32.mrb[35].mxu0  ;;  %4370 = vmatprep.subr.bf16.mxu0 %v9857_v13 }
 0x295   : > { %4371 = vmatpush1.bf16.msra.mxu0 %v8409_v51 }
 0x296   : > { %4372 = vmatprep.subr.bf16.mxu0 %v9857_v13 }
 0x29e   : > { %v2267_v6 = vpop.f32.mrb[36].mxu0 }
 0x29f   : > { %v2038_v28 = vpop.f32.mrb[4].mxu1  ;;  %v2269_v48 = vpop.f32.mrb[37].mxu0 }
 0x2a0   : > { %v9981_v4 = vadd.f32 %v2251_v0, %v2038_v28  ;;  %v2040_v58 = vpop.f32.mrb[5].mxu1  ;;  %v2270_v10 = vpop.f32.mrb[38].mxu0 }
 0x2a1   : > { %v2041_v36 = vpop.f32.mrb[6].mxu1  ;;  %v2272_v19 = vpop.f32.mrb[39].mxu0 }
 0x2a2   : > { %v9983_v45 = vadd.f32 %v2254_v53, %v2041_v36  ;;  %v2043_v14 = vpop.f32.mrb[7].mxu1  ;;  %v8411_v36 = vld [vmem:[%s11773_s7 + $0x10] sm:$0xff]  }
 0x2a3   : > { %v8410_v14 = vld [vmem:[%s11773_s7 + $0x78] sm:$0xff]   ;;  %4373 = vmatpush1.bf16.msra.mxu0 %v8411_v36 }
 0x2a4   : > { %4374 = vmatprep.subr.bf16.mxu0 %v9857_v13 }
 0x2ae   : > { %v2275_v16 = vpop.f32.mrb[40].mxu0 }
 0x2af   : > { %v2046_v15 = vpop.f32.mrb[8].mxu1  ;;  %v2277_v52 = vpop.f32.mrb[41].mxu0 }
 0x2b0   : > { %v9985_v29 = vadd.f32 %v2259_v2, %v2046_v15  ;;  %v2048_v50 = vpop.f32.mrb[9].mxu1  ;;  %v2278_v11 = vpop.f32.mrb[42].mxu0  ;;  %v8406_v2 = vld [vmem:[%s11773_s7 + $0x68] sm:$0xff]  }
 0x2b1   : > { %v2049_v41 = vpop.f32.mrb[10].mxu1  ;;  %v2280_v47 = vpop.f32.mrb[43].mxu0  ;;  %4155 = vmatpush1.bf16.msra.mxu1 %v8406_v2 }
 0x2b2   : > { %v9987_v27 = vadd.f32 %v2262_v56, %v2049_v41  ;;  %v2051_v32 = vpop.f32.mrb[11].mxu1  ;;  %4156 = vmatprep.subr.bf16.mxu1 %v9857_v13 }
 0x2bd   : > { %v2283_v63 = vpop.f32.mrb[44].mxu0 }
 0x2be   : > { %v2054_v60 = vpop.f32.mrb[12].mxu1  ;;  %v2285_v38 = vpop.f32.mrb[45].mxu0 }
 0x2bf   : > { %v9989_v26 = vadd.f32 %v2267_v6, %v2054_v60  ;;  %v2056_v17 = vpop.f32.mrb[13].mxu1  ;;  %v2286_v33 = vpop.f32.mrb[46].mxu0 }
 0x2c0   : > { %v2057_v43 = vpop.f32.mrb[14].mxu1  ;;  %v2288_v59 = vpop.f32.mrb[47].mxu0  ;;  %v8412_v17 = vld [vmem:[%s11773_s7 + $0x80] sm:$0xff]  }
 0x2c1   : > { %v9991_v23 = vadd.f32 %v2270_v10, %v2057_v43  ;;  %v2059_v44 = vpop.f32.mrb[15].mxu1  ;;  %v8408_v10 = vld [vmem:[%s11773_s7 + $0x70] sm:$0xff]   ;;  %v8417_v59 = vld [vmem:[%s11773_s7 + $0x28] sm:$0xff]  }
 0x2c2   : > { %4157 = vmatpush1.bf16.msra.mxu1 %v8408_v10 }
 0x2c3   : > { %4158 = vmatprep.subr.bf16.mxu1 %v9857_v13 }
 0x2c5   : > { %v9995_v12 = vpop.f32.mrb[48].mxu0 }
 0x2c6   : > { %v2861_v1 = vpop.f32.mrb[49].mxu0  ;;  %4159 = vmatpush1.bf16.msra.mxu1 %v8410_v14 }
 0x2c7   : > { %v9997_v40 = vpop.f32.mrb[50].mxu0  ;;  %4160 = vmatprep.subr.bf16.mxu1 %v9857_v13 }
 0x2c8   : > { %v2864_v42 = vpop.f32.mrb[51].mxu0 }
 0x2ca   : > { %4161 = vmatpush1.bf16.msra.mxu1 %v8412_v17 }
 0x2cb   : > { %4162 = vmatprep.subr.bf16.mxu1 %v9857_v13 }
 0x2cd   : > { %v9999_v8 = vpop.f32.mrb[52].mxu0 }
 0x2ce   : > { %v2869_v0 = vpop.f32.mrb[53].mxu0 }
 0x2cf   : > { %v10001_v49 = vpop.f32.mrb[54].mxu0 }
 0x2d0   : > { %v2872_v53 = vpop.f32.mrb[55].mxu0 }
 0x2d4   : > { %v2062_v55 = vpop.f32.mrb[16].mxu1 }
 0x2d5   : > { %v10017_v3 = vadd.f32 %v2275_v16, %v2062_v55  ;;  %v2064_v56 = vpop.f32.mrb[17].mxu1  ;;  %v10019_v7 = vpop.f32.mrb[56].mxu0  ;;  %v8413_v16 = vld [vmem:[%s11773_s7 + $0x18] sm:$0xff]   ;;  %v8416_v55 = vld [vmem:[%s11773_s7 + $0x90] sm:$0xff]  }
 0x2d6   : > { %v2065_v5 = vpop.f32.mrb[18].mxu1  ;;  %v2877_v6 = vpop.f32.mrb[57].mxu0  ;;  %4375 = vmatpush1.bf16.msra.mxu0 %v8413_v16 }
 0x2d7   : > { %v10021_v28 = vadd.f32 %v2278_v11, %v2065_v5  ;;  %v2067_v48 = vpop.f32.mrb[19].mxu1  ;;  %v10023_v58 = vpop.f32.mrb[58].mxu0  ;;  %4376 = vmatprep.subr.bf16.mxu0 %v9857_v13  ;;  %v8418_v5 = vld [vmem:[%s11773_s7 + $0x98] sm:$0xff]  }
 0x2d8   : > { %v2880_v19 = vpop.f32.mrb[59].mxu0  ;;  %v8421_v6 = vld [vmem:[%s11773_s7 + $0x38] sm:$0xff]  }
 0x2dc   : > { %v2070_v15 = vpop.f32.mrb[20].mxu1 }
 0x2dd   : > { %v10041_v52 = vadd.f32 %v2283_v63, %v2070_v15  ;;  %v2072_v50 = vpop.f32.mrb[21].mxu1  ;;  %v10043_v11 = vpop.f32.mrb[60].mxu0  ;;  %v8415_v63 = vld [vmem:[%s11773_s7 + $0x20] sm:$0xff]  }
 0x2de   : > { %v2073_v41 = vpop.f32.mrb[22].mxu1  ;;  %v2885_v47 = vpop.f32.mrb[61].mxu0  ;;  %4377 = vmatpush1.bf16.msra.mxu0 %v8415_v63  ;;  %v10119_v63 = vld [vmem:[%s11770_s4] ss:$0 sm:$0xff] }
 0x2df   : > { %v10045_v32 = vadd.f32 %v2286_v33, %v2073_v41  ;;  %v2075_v60 = vpop.f32.mrb[23].mxu1  ;;  %v10047_v38 = vpop.f32.mrb[62].mxu0  ;;  %v8414_v33 = vld [vmem:[%s11773_s7 + $0x88] sm:$0xff]   ;;  %4378 = vmatprep.subr.bf16.mxu0 %v9857_v13  ;;  %v8420_v41 = vld [vmem:[%s11773_s7 + $0xa0] sm:$0xff]  }
 0x2e0   : > { %v2888_v43 = vpop.f32.mrb[63].mxu0  ;;  %4163 = vmatpush1.bf16.msra.mxu1 %v8414_v33  ;;  %v8422_v60 = vld [vmem:[%s11773_s7 + $0xa8] sm:$0xff]  }
 0x2e1   : > { %4164 = vmatprep.subr.bf16.mxu1 %v9857_v13  ;;  %v8425_v33 = vld [vmem:[%s11773_s7 + $0x48] sm:$0xff]  }
 0x2e2   : > { %4379 = vmatpush1.bf16.msra.mxu0 %v8417_v59 }
 0x2e3   : > { %4380 = vmatprep.subr.bf16.mxu0 %v9857_v13 }
 0x2e4   : > { %v2529_v44 = vpop.f32.mrb[24].mxu1  ;;  %4165 = vmatpush1.bf16.msra.mxu1 %v8416_v55 }
 0x2e5   : > { %v2576_v1 = vadd.f32 %v2529_v44, %v9975_v31  ;;  %v2531_v42 = vpop.f32.mrb[25].mxu1  ;;  %v8419_v31 = vld [vmem:[%s11773_s7 + $0x30] sm:$0xff]   ;;  %4166 = vmatprep.subr.bf16.mxu1 %v9857_v13 }
 0x2e6   : > { %v10066_v0 = vpop.f32.mrb[64].mxu0  ;;  %v2532_v53 = vpop.f32.mrb[26].mxu1  ;;  %4381 = vmatpush1.bf16.msra.mxu0 %v8419_v31 }
 0x2e7   : > { %v2577_v61 = vadd.f32 %v2532_v53, %v9977_v62  ;;  %v2893_v24 = vpop.f32.mrb[65].mxu0  ;;  %v2534_v2 = vpop.f32.mrb[27].mxu1  ;;  %v10070_v51 = vadd.f32 %v9995_v12, %v2576_v1  ;;  %4382 = vmatprep.subr.bf16.mxu0 %v9857_v13 }
 0x2e8   : > { %v10078_v56 = vpop.f32.mrb[66].mxu0  ;;  %4167 = vmatpush1.bf16.msra.mxu1 %v8418_v5 }
 0x2e9   : > { %v2896_v62 = vpop.f32.mrb[67].mxu0  ;;  %v10083_v12 = vadd.f32 %v9997_v40, %v2577_v61  ;;  %4168 = vmatprep.subr.bf16.mxu1 %v9857_v13 }
 0x2ea   : > { %4383 = vmatpush1.bf16.msra.mxu0 %v8421_v6 }
 0x2eb   : > { %4384 = vmatprep.subr.bf16.mxu0 %v9857_v13 }
 0x2ec   : > { %v2537_v48 = vpop.f32.mrb[28].mxu1  ;;  %4169 = vmatpush1.bf16.msra.mxu1 %v8420_v41 }
 0x2ed   : > { %v2578_v10 = vadd.f32 %v2537_v48, %v9981_v4  ;;  %v2539_v36 = vpop.f32.mrb[29].mxu1  ;;  %4170 = vmatprep.subr.bf16.mxu1 %v9857_v13  ;;  %v8426_v48 = vld [vmem:[%s11773_s7 + $0xb8] sm:$0xff]  }
 0x2ee   : > { %v10094_v40 = vpop.f32.mrb[68].mxu0  ;;  %v2540_v19 = vpop.f32.mrb[30].mxu1 }
 0x2ef   : > { %v2579_v14 = vadd.f32 %v2540_v19, %v9983_v45  ;;  %v2901_v16 = vpop.f32.mrb[69].mxu0  ;;  %v2542_v15 = vpop.f32.mrb[31].mxu1  ;;  %v10098_v50 = vadd.f32 %v9999_v8, %v2578_v10  ;;  %v8423_v8 = vld [vmem:[%s11773_s7 + $0x40] sm:$0xff]  }
 0x2f0   : > { %v10103_v47 = vpop.f32.mrb[70].mxu0  ;;  %4385 = vmatpush1.bf16.msra.mxu0 %v8423_v8  ;;  %4171 = vmatpush1.bf16.msra.mxu1 %v8422_v60 }
 0x2f1   : > { %v2904_v4 = vpop.f32.mrb[71].mxu0  ;;  %v10108_v45 = vadd.f32 %v10001_v49, %v2579_v14  ;;  %4386 = vmatprep.subr.bf16.mxu0 %v9857_v13  ;;  %4172 = vmatprep.subr.bf16.mxu1 %v9857_v13 }
 0x2f4   : > { %v2545_v17 = vpop.f32.mrb[32].mxu1  ;;  %4387 = vmatpush1.bf16.msra.mxu0 %v8425_v33  ;;  %v3866_v33 = vld [vmem:[#allocation3 + $0x1c] sm:$0x8] }
 0x2f5   : > { %v2580_v49 = vadd.f32 %v2545_v17, %v9985_v29  ;;  %v2547_v43 = vpop.f32.mrb[33].mxu1  ;;  %v8424_v29 = vld [vmem:[%s11773_s7 + $0xb0] sm:$0xff]   ;;  %4388 = vmatprep.subr.bf16.mxu0 %v9857_v13 }
 0x2f6   : > { %v3494_v59 = vpop.f32.mrb[72].mxu0  ;;  %v2548_v44 = vpop.f32.mrb[34].mxu1  ;;  %4173 = vmatpush1.bf16.msra.mxu1 %v8424_v29 }
 0x2f7   : > { %v10128_v1 = vadd.f32 %v10119_v63, %v3494_v59  ;;  %v2581_v42 = vadd.f32 %v2548_v44, %v9987_v27  ;;  %v3496_v53 = vpop.f32.mrb[73].mxu0  ;;  %v2550_v61 = vpop.f32.mrb[35].mxu1  ;;  %v10132_v24 = vadd.f32 %v10019_v7, %v2580_v49  ;;  %v8427_v7 = vld [vmem:[%s11773_s7 + $0x50] sm:$0xff]   ;;  %4174 = vmatprep.subr.bf16.mxu1 %v9857_v13  ;;  %v8431_v49 = vld [vmem:[%s11773_s7 + $0x58] sm:$0xff]  }
 0x2f8   : > { %v3497_v2 = vpop.f32.mrb[74].mxu0  ;;  %4389 = vmatpush1.bf16.msra.mxu0 %v8427_v7 }
 0x2f9   : > { %v3541_v55 = vmax.f32 %v10128_v1, 0.0  ;;  %v10140_v31 = vadd.f32 %v10119_v63, %v3497_v2  ;;  %v3499_v27 = vpop.f32.mrb[75].mxu0  ;;  %v10143_v62 = vadd.f32 %v10023_v58, %v2581_v42  ;;  %4390 = vmatprep.subr.bf16.mxu0 %v9857_v13 }
 0x2fa   : > { %4175 = vmatpush1.bf16.msra.mxu1 %v8426_v48 }
 0x2fb   : > { %v3542_v5 = vmax.f32 %v10140_v31, 0.0  ;;  %v3553_v6 = vmul.f32 %v3541_v55, %v8891_v9  ;;  %4662 = vmatprep.subr.bf16.mxu1 %v9857_v13 }
 0x2fc   : > { %v2553_v10 = vpop.f32.mrb[36].mxu1  ;;  %4391 = vmatpush1.bf16.msra.mxu0 %v8431_v49 }
 0x2fd   : > { %v2582_v58 = vadd.f32 %v2553_v10, %v9989_v26  ;;  %v2555_v36 = vpop.f32.mrb[37].mxu1  ;;  %v7884_v19 = vpack.c.bf16 %v3553_v6, %v3553_v6  ;;  %v3554_v14 = vmul.f32 %v3542_v5, %v8911_v25 }
 0x2fe   : > { %v3502_v16 = vpop.f32.mrb[76].mxu0  ;;  %v2556_v15 = vpop.f32.mrb[38].mxu1 }
 0x2ff   : > { %v10159_v41 = vadd.f32 %v10119_v63, %v3502_v16  ;;  %v2583_v4 = vadd.f32 %v2556_v15, %v9991_v23  ;;  %v3504_v8 = vpop.f32.mrb[77].mxu0  ;;  %3743 = vrot.lane.b32.xlu0 %v7884_v19, %s8583_s23  ;;  %v3602_v60 = vshrl.u32 %v7884_v19, 16  ;;  %v3605_v26 = vshll.u32 %v7884_v19, 16  ;;  %v2558_v17 = vpop.f32.mrb[39].mxu1 }
 0x300   : > { %v3505_v23 = vpop.f32.mrb[78].mxu0  ;;  %v7885_v59 = vpack.c.bf16 %v3554_v14, %v3554_v14  ;;  %v10173_v44 = vadd.f32 %v10043_v11, %v2582_v58  ;;  %v3723_v11 = vld [vmem:[#allocation3 + $0x20] sm:$0xf] }
 0x301   : > { %v3543_v42 = vmax.f32 %v10159_v41, 0.0  ;;  %v3604_v53 = vrot.slane %v3602_v60, 7  ;;  %v3792_v61 = vrot.slane %v3605_v26, 5  ;;  %v3793_v29 = vrot.slane %v3602_v60, 4  ;;  %v3507_v2 = vpop.f32.mrb[79].mxu0 }
 0x302   : > { %v10178_v55 = vadd.f32 %v10119_v63, %v3505_v23  ;;  %3745 = vrot.lane.b32.xlu1 %v7885_v59, %s8583_s23  ;;  %v3610_v27 = vshrl.u32 %v7885_v59, 16  ;;  %v3613_v7 = vshll.u32 %v7885_v59, 16  ;;  %v10182_v5 = vadd.f32 %v10047_v38, %v2583_v4 }
 0x303   : > { %v3607_v6 = vor.u32 %v3605_v26, %v3604_v53  ;;  %v3794_v48 = vor.u32 %v3793_v29, %v3792_v61  ;;  %v3867_v10 = vsel %vm10168_vm5, %v3792_v61, %v3866_v33  ;;  %v3555_v58 = vmul.f32 %v3543_v42, %v8919_v30 }
 0x304   : > { %3868 = vst [vmem:[#allocation3 + $0x1c] sm:$0x8] %v3867_v10  ;;  %v3544_v36 = vmax.f32 %v10178_v55, 0.0  ;;  %v10194_v19 = vrot.slane %v3610_v27, 7  ;;  %v3796_v38 = vrot.slane %v3613_v7, 5  ;;  %v3798_v14 = vrot.slane %v3610_v27, 4 }
 0x305   : > { %v2561_v16 = vpop.f32.mrb[40].mxu1  ;;  %v3795_v15 = vrot.slane %v3794_v48, 4  ;;  %v7886_v60 = vpack.c.bf16 %v3555_v58, %v3555_v58  ;;  %v3724_v26 = vsel %vm10186_vm2, %v3607_v6, %v3723_v11  ;;  %v3608_v23 = vrot.slane %v3604_v53, 4 }
 0x306   : > { %v2584_v4 = vadd.f32 %v2561_v16, %v10017_v3  ;;  %v2563_v8 = vpop.f32.mrb[41].mxu1  ;;  %v3799_v17 = vor.u32 %v3798_v14, %v3796_v38  ;;  %v3510_v49 = vpop.f32.mrb[80].mxu0  ;;  %v3556_v33 = vmul.f32 %v3544_v36, %v8953_v57  ;;  %3725 = vst [vmem:[#allocation3 + $0x20] sm:$0xf] %v3724_v26  ;;  %v3615_v59 = vor.u32 %v3613_v7, %v10194_v19 }
 0x307   : > { %v2564_v43 = vpop.f32.mrb[42].mxu1  ;;  %v10202_v42 = vadd.f32 %v10119_v63, %v3510_v49  ;;  %v3512_v3 = vpop.f32.mrb[81].mxu0  ;;  %v3619_v29 = vshrl.u32 %v7886_v60, 16  ;;  %v3622_v2 = vshll.u32 %v7886_v60, 16  ;;  %3747 = vrot.lane.b32.xlu0 %v7886_v60, %s8583_s23  ;;  %v3797_v53 = vsel %vm8996_vm14, %v3795_v15, %v3796_v38 }
 0x308   : > { %v2585_v61 = vadd.f32 %v2564_v43, %v10021_v28  ;;  %v2566_v27 = vpop.f32.mrb[43].mxu1  ;;  %v3800_v13 = vrot.slane %v3799_v17, 4  ;;  %v3513_v11 = vpop.f32.mrb[82].mxu0  ;;  %v10206_v6 = vpack.c.bf16 %v3556_v33, %v3556_v33  ;;  %v10209_v48 = vadd.f32 %v10066_v0, %v2584_v4  ;;  %3869 = vst.msk [vmem:[#allocation3 + $0x24] sm:$0xf] %vm3721_vm7, %v3797_v53 }
 0x309   : > { %v3545_v7 = vmax.f32 %v10202_v42, 0.0  ;;  %v10214_v10 = vrot.slane %v3619_v29, 7  ;;  %v3801_v28 = vrot.slane %v3622_v2, 5  ;;  %v3803_v58 = vrot.slane %v3619_v29, 4  ;;  %v3515_v36 = vpop.f32.mrb[83].mxu0 }
 0x30a   : > { %v10218_v14 = vadd.f32 %v10119_v63, %v3513_v11  ;;  %v3628_v16 = vshrl.u32 %v10206_v6, 16  ;;  %v3631_v0 = vshll.u32 %v10206_v6, 16  ;;  %3749 = vrot.lane.b32.xlu1 %v10206_v6, %s8583_s23  ;;  %v10225_v38 = vadd.f32 %v10078_v56, %v2585_v61 }
 0x30b   : > { %v3802_v15 = vsel %vm8996_vm14, %v3800_v13, %v3801_v28  ;;  %v3804_v4 = vor.u32 %v3803_v58, %v3801_v28  ;;  %v3557_v8 = vmul.f32 %v3545_v7, %v9014_v35  ;;  %v3616_v60 = vsel %vm9043_vm15, %v3608_v23, %v3615_v59 }
 0x30c   : > { %11835 = vst [vmem:[#allocation6_spill] sm:$0xff] %v10218_v14  ;;  %3870 = vst.msk [vmem:[#allocation3 + $0x2c] sm:$0xf] %vm3721_vm7, %v3802_v15  ;;  %v3546_v26 = vmax.f32 %v10218_v14, 0.0  ;;  %v10234_v17 = vrot.slane %v3628_v16, 7  ;;  %v3806_v49 = vrot.slane %v3631_v0, 5  ;;  %v3624_v6 = vor.u32 %v3622_v2, %v10214_v10 }
 0x30d   : > { %v3808_v43 = vrot.slane %v3628_v16, 4  ;;  %v2569_v33 = vpop.f32.mrb[44].mxu1  ;;  %3727 = vst.msk [vmem:[#allocation3 + $0x28] sm:$0xf] %vm3721_vm7, %v3616_v60  ;;  %v3805_v56 = vrot.slane %v3804_v4, 4  ;;  %v7888_v29 = vpack.c.bf16 %v3557_v8, %v3557_v8  ;;  %v3617_v27 = vrot.slane %v10194_v19, 4 }
 0x30e   : > { %v2586_v61 = vadd.f32 %v2569_v33, %v10041_v52  ;;  %v2571_v3 = vpop.f32.mrb[45].mxu1  ;;  %v3518_v23 = vpop.f32.mrb[84].mxu0  ;;  %v3558_v11 = vmul.f32 %v3546_v26, %v9027_v46  ;;  %v3626_v53 = vrot.slane %v10214_v10, 4  ;;  %vm11846_vm5 = vcmask 523264  }
 0x30f   : > { %v3809_v13 = vor.u32 %v3808_v43, %v3806_v49  ;;  %v2572_v59 = vpop.f32.mrb[46].mxu1  ;;  %v3807_v7 = vsel %vm8996_vm14, %v3805_v56, %v3806_v49  ;;  %v10245_v28 = vadd.f32 %v10119_v63, %v3518_v23  ;;  %v3520_v58 = vpop.f32.mrb[85].mxu0  ;;  %v3637_v36 = vshrl.u32 %v7888_v29, 16  ;;  %3751 = vrot.lane.b32.xlu0 %v7888_v29, %s8583_s23  ;;  %vm11847_vm8 = vmmov %vm11846_vm5 }
 0x310   : > { %v2587_v52 = vadd.f32 %v2572_v59, %v10045_v32  ;;  %v2574_v19 = vpop.f32.mrb[47].mxu1  ;;  %3871 = vst.msk [vmem:[#allocation3 + $0x34] sm:$0xf] %vm3721_vm7, %v3807_v7  ;;  %v3640_v15 = vshll.u32 %v7888_v29, 16  ;;  %v3521_v2 = vpop.f32.mrb[86].mxu0  ;;  %v7889_v4 = vpack.c.bf16 %v3558_v11, %v3558_v11  ;;  %v10251_v10 = vadd.f32 %v10094_v40, %v2586_v61  ;;  %vm11848_vm2 = vmmov %vm11846_vm5 }
 0x311   : > { %11836 = vst [vmem:[#allocation7_spill] sm:$0xff] %v10245_v28  ;;  %v3810_v16 = vrot.slane %v3809_v13, 4  ;;  %v3547_v8 = vmax.f32 %v10245_v28, 0.0  ;;  %v10254_v60 = vrot.slane %v3637_v36, 7  ;;  %v3813_v26 = vrot.slane %v3637_v36, 4  ;;  %v3523_v49 = vpop.f32.mrb[87].mxu0  ;;  %vm11849_vm4 = vmmov %vm11848_vm2 }
 0x312   : > { %v10257_v32 = vadd.f32 %v10119_v63, %v3521_v2  ;;  %v3811_v43 = vrot.slane %v3640_v15, 5  ;;  %v3646_v33 = vshrl.u32 %v7889_v4, 16  ;;  %v3649_v56 = vshll.u32 %v7889_v4, 16  ;;  %3753 = vrot.lane.b32.xlu1 %v7889_v4, %s8583_s23  ;;  %vm11850_vm1 = vmmov %vm11848_vm2 }
 0x313   : > { %v10261_v3 = vadd.f32 %v10103_v47, %v2587_v52  ;;  %v3559_v61 = vmul.f32 %v3547_v8, %v9082_v18  ;;  %v3625_v29 = vsel %vm9043_vm15, %v3617_v27, %v3624_v6  ;;  %v3633_v13 = vor.u32 %v3631_v0, %v10234_v17  ;;  %vm11852_vm6 = vmmov %vm11850_vm1 }
 0x314   : > { %11837 = vst [vmem:[#allocation8_spill] sm:$0xff] %v10257_v32  ;;  %v3548_v40 = vmax.f32 %v10257_v32, 0.0  ;;  %v3812_v23 = vsel %vm8996_vm14, %v3810_v16, %v3811_v43  ;;  %v3814_v59 = vor.u32 %v3813_v26, %v3811_v43  ;;  %v3816_v11 = vrot.slane %v3649_v56, 5  ;;  %3728 = vst.msk [vmem:[#allocation3 + $0x30] sm:$0xf] %vm3721_vm7, %v3625_v29 }
 0x315   : > { %3872 = vst.msk [vmem:[#allocation3 + $0x3c] sm:$0xf] %vm3721_vm7, %v3812_v23  ;;  %v3818_v47 = vrot.slane %v3646_v33, 4  ;;  %v7890_v7 = vpack.c.bf16 %v3559_v61, %v3559_v61  ;;  %v3634_v58 = vsel %vm9043_vm15, %v3626_v53, %v3633_v13  ;;  %v3648_v27 = vrot.slane %v3646_v33, 7 }
 0x316   : > { %v3560_v52 = vmul.f32 %v3548_v40, %v9090_v39  ;;  %v3815_v36 = vrot.slane %v3814_v59, 4  ;;  %v3526_v6 = vpop.f32.mrb[88].mxu0  ;;  %3729 = vst.msk [vmem:[#allocation3 + $0x38] sm:$0xf] %vm3721_vm7, %v3634_v58  ;;  %v3635_v0 = vrot.slane %v10234_v17, 4  ;;  %v3642_v19 = vor.u32 %v3640_v15, %v10254_v60 }
 0x317   : > { %v3819_v16 = vor.u32 %v3818_v47, %v3816_v11  ;;  %v10279_v2 = vadd.f32 %v10119_v63, %v3526_v6  ;;  %v3528_v4 = vpop.f32.mrb[89].mxu0  ;;  %v3655_v8 = vshrl.u32 %v7890_v7, 16  ;;  %v3658_v26 = vshll.u32 %v7890_v7, 16  ;;  %3755 = vrot.lane.b32.xlu0 %v7890_v7, %s8583_s23 }
 0x318   : > { %v3817_v53 = vsel %vm8996_vm14, %v3815_v36, %v3816_v11  ;;  %v3529_v49 = vpop.f32.mrb[90].mxu0  ;;  %v7891_v43 = vpack.c.bf16 %v3560_v52, %v3560_v52  ;;  %v3643_v33 = vsel %vm9043_vm15, %v3635_v0, %v3642_v19  ;;  %v3644_v52 = vrot.slane %v10254_v60, 4 }
 0x319   : > { %11838 = vst [vmem:[#allocation9_spill] sm:$0xff] %v10279_v2  ;;  %v3820_v17 = vrot.slane %v3819_v16, 4  ;;  %3873 = vst.msk [vmem:[#allocation3 + $0x44] sm:$0xf] %vm3721_vm7, %v3817_v53  ;;  %v3549_v15 = vmax.f32 %v10279_v2, 0.0  ;;  %v10288_v40 = vrot.slane %v3655_v8, 7  ;;  %v10292_v23 = vadd.f32 %v10119_v63, %v3529_v49 }
 0x31a   : > { %v3821_v61 = vrot.slane %v3658_v26, 5  ;;  %v3531_v29 = vpop.f32.mrb[91].mxu0  ;;  %3730 = vst.msk [vmem:[#allocation3 + $0x40] sm:$0xf] %vm3721_vm7, %v3643_v33  ;;  %v3823_v13 = vrot.slane %v3655_v8, 4  ;;  %v3664_v59 = vshrl.u32 %v7891_v43, 16  ;;  %3757 = vrot.lane.b32.xlu1 %v7891_v43, %s8583_s23  ;;  %v3651_v58 = vor.u32 %v3649_v56, %v3648_v27 }
 0x31b   : > { %11839 = vst [vmem:[#allocation10_spill] sm:$0xff] %v10292_v23  ;;  %v3667_v11 = vshll.u32 %v7891_v43, 16  ;;  %v3561_v7 = vmul.f32 %v3549_v15, %v9129_v20  ;;  %v3550_v6 = vmax.f32 %v10292_v23, 0.0  ;;  %v3653_v60 = vrot.slane %v3648_v27, 4 }
 0x31c   : > { %v3822_v47 = vsel %vm8996_vm14, %v3820_v17, %v3821_v61  ;;  %v3824_v36 = vor.u32 %v3823_v13, %v3821_v61  ;;  %v10301_v19 = vrot.slane %v3664_v59, 7  ;;  %v3828_v16 = vrot.slane %v3664_v59, 4 }
 0x31d   : > { %3874 = vst.msk [vmem:[#allocation3 + $0x4c] sm:$0xf] %vm3721_vm7, %v3822_v47  ;;  %v3826_v0 = vrot.slane %v3667_v11, 5  ;;  %v10303_v4 = vpack.c.bf16 %v3561_v7, %v3561_v7  ;;  %v3652_v8 = vsel %vm9043_vm15, %v3644_v52, %v3651_v58  ;;  %v3562_v43 = vmul.f32 %v3550_v6, %v9139_v34 }
 0x31e   : > { %v3825_v53 = vrot.slane %v3824_v36, 4  ;;  %v3534_v49 = vpop.f32.mrb[92].mxu0  ;;  %3731 = vst.msk [vmem:[#allocation3 + $0x48] sm:$0xf] %vm3721_vm7, %v3652_v8  ;;  %v3660_v56 = vor.u32 %v3658_v26, %v10288_v40 }
 0x31f   : > { %v3829_v33 = vor.u32 %v3828_v16, %v3826_v0  ;;  %v10311_v17 = vadd.f32 %v10119_v63, %v3534_v49  ;;  %v3536_v15 = vpop.f32.mrb[93].mxu0  ;;  %v3673_v61 = vshrl.u32 %v10303_v4, 16  ;;  %v3676_v29 = vshll.u32 %v10303_v4, 16  ;;  %3759 = vrot.lane.b32.xlu0 %v10303_v4, %s8583_s23 }
 0x320   : > { %v3827_v13 = vsel %vm8996_vm14, %v3825_v53, %v3826_v0  ;;  %v3157_v59 = vpop.f32.mrb[48].mxu1  ;;  %v3537_v47 = vpop.f32.mrb[94].mxu0  ;;  %v10319_v27 = vpack.c.bf16 %v3562_v43, %v3562_v43  ;;  %v3661_v26 = vsel %vm9043_vm15, %v3653_v60, %v3660_v56  ;;  %v3669_v16 = vor.u32 %v3667_v11, %v10301_v19 }
 0x321   : > { %11840 = vst [vmem:[#allocation11_spill] sm:$0xff] %v10311_v17  ;;  %v3830_v7 = vrot.slane %v3829_v33, 4  ;;  %3875 = vst.msk [vmem:[#allocation3 + $0x54] sm:$0xf] %vm3721_vm7, %v3827_v13  ;;  %v3551_v52 = vmax.f32 %v10311_v17, 0.0  ;;  %v3831_v58 = vrot.slane %v3676_v29, 5  ;;  %v10328_v4 = vadd.f32 %v3157_v59, %v10070_v51 }
 0x322   : > { %v3159_v36 = vpop.f32.mrb[49].mxu1  ;;  %v3539_v6 = vpop.f32.mrb[95].mxu0  ;;  %3732 = vst.msk [vmem:[#allocation3 + $0x50] sm:$0xf] %vm3721_vm7, %v3661_v26  ;;  %v3833_v0 = vrot.slane %v3673_v61, 4  ;;  %v10331_v8 = vadd.f32 %v10119_v63, %v3537_v47  ;;  %v3682_v53 = vshrl.u32 %v10319_v27, 16  ;;  %3761 = vrot.lane.b32.xlu1 %v10319_v27, %s8583_s23 }
 0x323   : > { %v3160_v49 = vpop.f32.mrb[50].mxu1  ;;  %v3832_v43 = vsel %vm8996_vm14, %v3830_v7, %v3831_v58  ;;  %v3685_v60 = vshll.u32 %v10319_v27, 16  ;;  %v3563_v51 = vmul.f32 %v3551_v52, %v9179_v21  ;;  %v3662_v15 = vrot.slane %v10288_v40, 4 }
 0x324   : > { %11841 = vst [vmem:[#allocation12_spill] sm:$0xff] %v10331_v8  ;;  %v10340_v11 = vadd.f32 %v3160_v49, %v10083_v12  ;;  %v3162_v56 = vpop.f32.mrb[51].mxu1  ;;  %v3834_v33 = vor.u32 %v3833_v0, %v3831_v58  ;;  %3876 = vst.msk [vmem:[#allocation3 + $0x5c] sm:$0xf] %vm3721_vm7, %v3832_v43  ;;  %v3552_v63 = vmax.f32 %v10331_v8, 0.0  ;;  %v3838_v59 = vrot.slane %v3682_v53, 4 }
 0x325   : > { %v3836_v13 = vrot.slane %v3685_v60, 5  ;;  %v7894_v47 = vpack.c.bf16 %v3563_v51, %v3563_v51  ;;  %v3670_v12 = vsel %vm9043_vm15, %v3662_v15, %v3669_v16  ;;  %v3675_v27 = vrot.slane %v3673_v61, 7  ;;  %v8456_v8 = vld [vmem:[%s11773_s7 + $0x110] sm:$0xff]  }
 0x326   : > { %v3835_v26 = vrot.slane %v3834_v33, 4  ;;  %v3564_v7 = vmul.f32 %v3552_v63, %v9188_v37  ;;  %3733 = vst.msk [vmem:[#allocation3 + $0x58] sm:$0xf] %vm3721_vm7, %v3670_v12  ;;  %v3684_v49 = vrot.slane %v3682_v53, 7 }
 0x327   : > { %v3839_v36 = vor.u32 %v3838_v59, %v3836_v13  ;;  %v3691_v6 = vshrl.u32 %v7894_v47, 16  ;;  %v3694_v52 = vshll.u32 %v7894_v47, 16  ;;  %3763 = vrot.lane.b32.xlu0 %v7894_v47, %s8583_s23  ;;  %v3671_v47 = vrot.slane %v10301_v19, 4 }
 0x328   : > { %v3837_v40 = vsel %vm8996_vm14, %v3835_v26, %v3836_v13  ;;  %v3165_v58 = vpop.f32.mrb[52].mxu1  ;;  %v7895_v0 = vpack.c.bf16 %v3564_v7, %v3564_v7  ;;  %v3678_v26 = vor.u32 %v3676_v29, %v3675_v27 }
 0x329   : > { %v3840_v43 = vrot.slane %v3839_v36, 4  ;;  %3877 = vst.msk [vmem:[#allocation3 + $0x64] sm:$0xf] %vm3721_vm7, %v3837_v40  ;;  %v3841_v56 = vrot.slane %v3694_v52, 5  ;;  %v3167_v51 = vpop.f32.mrb[53].mxu1  ;;  %v3843_v61 = vrot.slane %v3691_v6, 4  ;;  %v10355_v16 = vadd.f32 %v3165_v58, %v10098_v50 }
 0x32a   : > { %v3700_v33 = vshrl.u32 %v7895_v0, 16  ;;  %v3703_v63 = vshll.u32 %v7895_v0, 16  ;;  %3765 = vrot.lane.b32.xlu1 %v7895_v0, %s8583_s23  ;;  %v3168_v15 = vpop.f32.mrb[54].mxu1  ;;  %v3693_v7 = vrot.slane %v3691_v6, 7  ;;  %v3740_v40 = vld [vmem:[#allocation3 + $0x80] sm:$0x1]  ;;  %v3679_v0 = vsel %vm9043_vm15, %v3671_v47, %v3678_v26 }
 0x32b   : > { %v3842_v13 = vsel %vm8996_vm14, %v3840_v43, %v3841_v56  ;;  %v10361_v53 = vadd.f32 %v3168_v15, %v10108_v45  ;;  %v3170_v59 = vpop.f32.mrb[55].mxu1  ;;  %v3844_v12 = vor.u32 %v3843_v61, %v3841_v56  ;;  %v3680_v45 = vrot.slane %v3675_v27, 4  ;;  %3734 = vst.msk [vmem:[#allocation3 + $0x60] sm:$0xf] %vm3721_vm7, %v3679_v0  ;;  %v3881_v27 = vld [vmem:[#allocation3 + $0x7c] sm:$0xf] }
 0x32c   : > { %3878 = vst.msk [vmem:[#allocation3 + $0x6c] sm:$0xf] %vm3721_vm7, %v3842_v13  ;;  %v3702_v50 = vrot.slane %v3700_v33, 7  ;;  %v3846_v36 = vrot.slane %v3703_v63, 5  ;;  %v3848_v58 = vrot.slane %v3700_v33, 4  ;;  %v3687_v43 = vor.u32 %v3685_v60, %v3684_v49 }
 0x32d   : > { %v3845_v51 = vrot.slane %v3844_v12, 4  ;;  %v3689_v33 = vrot.slane %v3684_v49, 4  ;;  %v3696_v59 = vor.u32 %v3694_v52, %v3693_v7  ;;  %v3698_v12 = vrot.slane %v3693_v7, 4 }
 0x32e   : > { %v3707_v15 = vrot.slane %v3702_v50, 4  ;;  %v3705_v19 = vor.u32 %v3703_v63, %v3702_v50  ;;  %v3849_v29 = vor.u32 %v3848_v58, %v3846_v36  ;;  %v3688_v6 = vsel %vm9043_vm15, %v3680_v45, %v3687_v43 }
 0x32f   : > { %v3847_v61 = vsel %vm8996_vm14, %v3845_v51, %v3846_v36  ;;  %3735 = vst.msk [vmem:[#allocation3 + $0x68] sm:$0xf] %vm3721_vm7, %v3688_v6  ;;  %v3697_v52 = vsel %vm9043_vm15, %v3689_v33, %v3696_v59 }
 0x330   : > { %v3741_v56 = vsel %vm3739_vm9, %v3707_v15, %v3740_v40  ;;  %v3173_v13 = vpop.f32.mrb[56].mxu1  ;;  %v3850_v63 = vrot.slane %v3849_v29, 4  ;;  %3879 = vst.msk [vmem:[#allocation3 + $0x74] sm:$0xf] %vm3721_vm7, %v3847_v61  ;;  %3736 = vst.msk [vmem:[#allocation3 + $0x70] sm:$0xf] %vm3721_vm7, %v3697_v52  ;;  %v3706_v40 = vsel %vm9043_vm15, %v3698_v12, %v3705_v19 }
 0x331   : > { %3742 = vst [vmem:[#allocation3 + $0x80] sm:$0x1] %v3741_v56  ;;  %v10383_v47 = vadd.f32 %v3173_v13, %v10132_v24  ;;  %v3175_v26 = vpop.f32.mrb[57].mxu1  ;;  %3737 = vst.msk [vmem:[#allocation3 + $0x78] sm:$0xf] %vm3721_vm7, %v3706_v40 }
 0x332   : > { %v3176_v50 = vpop.f32.mrb[58].mxu1  ;;  %v3882_v58 = vsel %vm10377_vm13, %v3850_v63, %v3881_v27  ;;  %v8433_v27 = vld [vmem:[#allocation3 + $0x10] ss:$8 sps:$4 sm:$0xfc]   ;;  %v8430_v12 = vld [vmem:[#allocation3 + $0x24] ss:$8 sps:$4 sm:$0xff]   ;;  %vm11851_vm9 = vmmov %vm11850_vm1 }
 0x333   : > { %v10388_v49 = vadd.f32 %v3176_v50, %v10143_v62  ;;  %v3178_v36 = vpop.f32.mrb[59].mxu1  ;;  %3883 = vst [vmem:[#allocation3 + $0x7c] sm:$0xf] %v3882_v58  ;;  %v8435_v63 = vld [vmem:[#allocation3 + $0x14] ss:$8 sps:$4 sm:$0xfc]   ;;  %7534 = vmatprep.mubr.msk.bf16.mxu1 %vm11846_vm5, %v8430_v12  ;;  %vm11853_vm13 = vmmov %vm11850_vm1 }
 0x334   : > { %v4249_v50 = vrot.slane %v8435_v63, 2  ;;  %v4250_v52 = vrot.slane %v8430_v12, 2  ;;  %v4246_v36 = vrot.slane %v8433_v27, 2  ;;  %v8440_v27 = vld [vmem:[%s11773_s7 + $0xd8] sm:$0xff]   ;;  %vm11854_vm5 = vmmov %vm11850_vm1 }
 0x336   : > { %v4251_v58 = vsel %vm1854_vm0, %v4249_v50, %v4250_v52  ;;  %v8443_v50 = vld [vmem:[%s11773_s7 + $0xe0] sm:$0xff]  }
 0x337   : > { %7556 = vmatprep.mubr.msk.bf16.mxu0 %vm11847_vm8, %v4251_v58  ;;  %vm11855_vm8 = vmmov %vm11850_vm1 }
 0x338   : > { %v3181_v24 = vpop.f32.mrb[60].mxu1 }
 0x339   : > { %v10397_v7 = vadd.f32 %v3181_v24, %v10173_v44  ;;  %v3183_v0 = vpop.f32.mrb[61].mxu1 }
 0x33a   : > { %v3184_v45 = vpop.f32.mrb[62].mxu1  ;;  %v8436_v0 = vld [vmem:[%s11773_s7 + $0xc8] sm:$0xff]  }
 0x33b   : > { %v10400_v62 = vadd.f32 %v3184_v45, %v10182_v5  ;;  %v3186_v43 = vpop.f32.mrb[63].mxu1 }
 0x33c   : > { %v10428_v43 = vld [vmem:[#allocation4] sm:$0xff] }
 0x340   : > { %v3189_v51 = vpop.f32.mrb[64].mxu1 }
 0x341   : > { %v10403_v15 = vadd.f32 %v3189_v51, %v10209_v48  ;;  %v3191_v19 = vpop.f32.mrb[65].mxu1 }
 0x342   : > { %v3192_v29 = vpop.f32.mrb[66].mxu1 }
 0x343   : > { %v10406_v6 = vadd.f32 %v3192_v29, %v10225_v38  ;;  %v3194_v56 = vpop.f32.mrb[67].mxu1 }
 0x348   : > { %v3197_v61 = vpop.f32.mrb[68].mxu1 }
 0x349   : > { %v10409_v44 = vadd.f32 %v3197_v61, %v10251_v10  ;;  %v3199_v13 = vpop.f32.mrb[69].mxu1  ;;  %v8432_v10 = vld [vmem:[%s11773_s7 + $0xc0] sm:$0xff]  }
 0x34a   : > { %v3200_v33 = vpop.f32.mrb[70].mxu1  ;;  %v8439_v13 = vld [vmem:[%s11773_s7 + $0xd0] sm:$0xff]  }
 0x34b   : > { %v10412_v5 = vadd.f32 %v3200_v33, %v10261_v3  ;;  %v3202_v59 = vpop.f32.mrb[71].mxu1 }
 0x371   : > { %v3744_v60 = vpop.permute.xlu0 %3743 }
 0x372   : > { %3780 = vst.msk [vmem:[#allocation3 + $0x20] sm:$0xf] %vm3779_vm12, %v3744_v60 }
 0x374   : > { %v3746_v48 = vpop.permute.xlu1 %3745 }
 0x375   : > { %3781 = vst.msk [vmem:[#allocation3 + $0x28] sm:$0xf] %vm3779_vm12, %v3746_v48 }
 0x379   : > { %v3748_v38 = vpop.permute.xlu0 %3747 }
 0x37a   : > { %3782 = vst.msk [vmem:[#allocation3 + $0x30] sm:$0xf] %vm3779_vm12, %v3748_v38 }
 0x37c   : > { %v3750_v26 = vpop.permute.xlu1 %3749  ;;  %v8428_v3 = vld [vmem:[#allocation3 + $0x20] ss:$8 sps:$4 sm:$0xff]  }
 0x37d   : > { %3783 = vst.msk [vmem:[#allocation3 + $0x38] sm:$0xf] %vm3779_vm12, %v3750_v26  ;;  %v4247_v40 = vrot.slane %v8428_v3, 2  ;;  %4185 = vmatmul.mubr.bf16.vlgmr.msra.gmra.mrb[72].mxu1 %v8428_v3 }
 0x37e   : > { %4663 = vmatpush1.bf16.msra.mxu1 %v8432_v10 }
 0x37f   : > { %v4248_v24 = vsel %vm1854_vm0, %v4246_v36, %v4247_v40  ;;  %4664 = vmatprep.subr.bf16.mxu1 %v10428_v43 }
 0x380   : > { %4401 = vmatmul.mubr.bf16.vlgmr.msra.gmra.mrb[96].mxu0 %v4248_v24 }
 0x381   : > { %v3752_v45 = vpop.permute.xlu0 %3751  ;;  %v10432_v19 = vld [vmem:[#allocation3 + $0x30] sm:$0xff] }
 0x382   : > { %3784 = vst.msk [vmem:[#allocation3 + $0x40] sm:$0xf] %vm3779_vm12, %v3752_v45  ;;  %4665 = vmatpush1.bf16.msra.mxu1 %v8436_v0  ;;  %v8444_v0 = vld [vmem:[%s11773_s7 + $0xe8] sm:$0xff]  }
 0x383   : > { %4666 = vmatprep.subr.bf16.mxu1 %v10428_v43 }
 0x384   : > { %v3754_v51 = vpop.permute.xlu1 %3753  ;;  %v10434_v29 = vld [vmem:[#allocation3 + $0x38] sm:$0xff] }
 0x385   : > { %3785 = vst.msk [vmem:[#allocation3 + $0x48] sm:$0xf] %vm3779_vm12, %v3754_v51  ;;  %v7513_v56 = vcombine.high %v10432_v19, %v10434_v29  ;;  %v7512_v61 = vcombine.low %v10432_v19, %v10434_v29 }
 0x386   : > { %4667 = vmatpush1.bf16.msra.mxu1 %v8439_v13 }
 0x387   : > { %7535 = vmatprep.mubr.msk.bf16.mxu1 %vm11848_vm2, %v7513_v56  ;;  %v4252_v33 = vrot.slane %v7512_v61, 2  ;;  %v4254_v59 = vrot.slane %v7513_v56, 2  ;;  %4668 = vmatprep.subr.bf16.mxu1 %v10428_v43  ;;  %vm11856_vm2 = vmmov %vm11850_vm1 }
 0x388   : > { %4193 = vmatmul.mubr.bf16.gmra.mrb[76].mxu1 %v7512_v61 }
 0x389   : > { %v3756_v60 = vpop.permute.xlu0 %3755  ;;  %v4255_v48 = vsel %vm1854_vm0, %v4250_v52, %v4254_v59  ;;  %v4253_v38 = vsel %vm1854_vm0, %v4247_v40, %v4252_v33  ;;  %v10454_v10 = vld [vmem:[#allocation3 + $0x40] sm:$0xff] }
 0x38a   : > { %3786 = vst.msk [vmem:[#allocation3 + $0x50] sm:$0xf] %vm3779_vm12, %v3756_v60  ;;  %7557 = vmatprep.mubr.msk.bf16.mxu0 %vm11849_vm4, %v4255_v48  ;;  %4669 = vmatpush1.bf16.msra.mxu1 %v8440_v27  ;;  %vm11857_vm4 = vmmov %vm11850_vm1 }
 0x38b   : > { %4409 = vmatmul.mubr.bf16.gmra.mrb[100].mxu0 %v4253_v38  ;;  %4670 = vmatprep.subr.bf16.mxu1 %v10428_v43 }
 0x38c   : > { %v3758_v63 = vpop.permute.xlu1 %3757  ;;  %v10456_v26 = vld [vmem:[#allocation3 + $0x48] sm:$0xff] }
 0x38d   : > { %3787 = vst.msk [vmem:[#allocation3 + $0x58] sm:$0xf] %vm3779_vm12, %v3758_v63  ;;  %v7515_v3 = vcombine.high %v10454_v10, %v10456_v26  ;;  %v7514_v12 = vcombine.low %v10454_v10, %v10456_v26  ;;  %v8448_v63 = vld [vmem:[%s11773_s7 + $0xf8] sm:$0xff]  }
 0x38e   : > { %4671 = vmatpush1.bf16.msra.mxu1 %v8443_v50 }
 0x38f   : > { %7536 = vmatprep.mubr.msk.bf16.mxu1 %vm11850_vm1, %v7515_v3  ;;  %v4256_v52 = vrot.slane %v7514_v12, 2  ;;  %v4258_v36 = vrot.slane %v7515_v3, 2  ;;  %4672 = vmatprep.subr.bf16.mxu1 %v10428_v43 }
 0x390   : > { %4201 = vmatmul.mubr.bf16.gmra.mrb[80].mxu1 %v7514_v12 }
 0x391   : > { %v3760_v40 = vpop.permute.xlu0 %3759  ;;  %v4259_v58 = vsel %vm1854_vm0, %v4254_v59, %v4258_v36  ;;  %v4257_v24 = vsel %vm1854_vm0, %v4252_v33, %v4256_v52  ;;  %v10476_v51 = vld [vmem:[#allocation3 + $0x50] sm:$0xff]  ;;  %v8447_v33 = vld [vmem:[%s11773_s7 + $0xf0] sm:$0xff]  }
 0x392   : > { %3788 = vst.msk [vmem:[#allocation3 + $0x60] sm:$0xf] %vm3779_vm12, %v3760_v40  ;;  %7558 = vmatprep.mubr.msk.bf16.mxu0 %vm11851_vm9, %v4259_v58  ;;  %4673 = vmatpush1.bf16.msra.mxu1 %v8444_v0  ;;  %v8451_v40 = vld [vmem:[%s11773_s7 + $0x100] sm:$0xff]   ;;  %v7589_v0 = vcombine.high %v10434_v29, %v10454_v10  ;;  %vm11858_vm9 = vmmov %vm11850_vm1 }
 0x393   : > { %4417 = vmatmul.mubr.bf16.gmra.mrb[104].mxu0 %v4257_v24  ;;  %4674 = vmatprep.subr.bf16.mxu1 %v10428_v43 }
 0x394   : > { %v3762_v45 = vpop.permute.xlu1 %3761  ;;  %v10478_v56 = vld [vmem:[#allocation3 + $0x58] sm:$0xff] }
 0x395   : > { %3789 = vst.msk [vmem:[#allocation3 + $0x68] sm:$0xf] %vm3779_vm12, %v3762_v45  ;;  %v7517_v61 = vcombine.high %v10476_v51, %v10478_v56  ;;  %v7516_v13 = vcombine.low %v10476_v51, %v10478_v56 }
 0x396   : > { %4675 = vmatpush1.bf16.msra.mxu1 %v8447_v33 }
 0x397   : > { %7537 = vmatprep.mubr.msk.bf16.mxu1 %vm11852_vm6, %v7517_v61  ;;  %v4260_v59 = vrot.slane %v7516_v13, 2  ;;  %v4262_v60 = vrot.slane %v7517_v61, 2  ;;  %4676 = vmatprep.subr.bf16.mxu1 %v10428_v43  ;;  %vm11859_vm6 = vmmov %vm11850_vm1 }
 0x398   : > { %4209 = vmatmul.mubr.bf16.gmra.mrb[84].mxu1 %v7516_v13  ;;  %v8452_v13 = vld [vmem:[%s11773_s7 + $0x108] sm:$0xff]  }
 0x399   : > { %v3764_v48 = vpop.permute.xlu0 %3763  ;;  %v4263_v38 = vsel %vm1854_vm0, %v4258_v36, %v4262_v60  ;;  %v4261_v27 = vsel %vm1854_vm0, %v4256_v52, %v4260_v59  ;;  %v10498_v12 = vld [vmem:[#allocation3 + $0x60] sm:$0xff] }
 0x39a   : > { %3790 = vst.msk [vmem:[#allocation3 + $0x70] sm:$0xf] %vm3779_vm12, %v3764_v48  ;;  %7559 = vmatprep.mubr.msk.bf16.mxu0 %vm11853_vm13, %v4263_v38  ;;  %4677 = vmatpush1.bf16.msra.mxu1 %v8448_v63  ;;  %v4449_v48 = vld [vmem:[#allocation3 + $0x28] sm:$0xcc]  ;;  %vm11860_vm13 = vmmov %vm11850_vm1 }
 0x39b   : > { %4425 = vmatmul.mubr.bf16.gmra.mrb[108].mxu0 %v4261_v27  ;;  %4678 = vmatprep.subr.bf16.mxu1 %v10428_v43  ;;  %v7587_v27 = vcombine.high %v4449_v48, %v10432_v19 }
 0x39c   : > { %v3766_v3 = vpop.permute.xlu1 %3765  ;;  %v10500_v50 = vld [vmem:[#allocation3 + $0x68] sm:$0xff] }
 0x39d   : > { %3791 = vst.msk [vmem:[#allocation3 + $0x78] sm:$0xf] %vm3779_vm12, %v3766_v3  ;;  %v7519_v52 = vcombine.high %v10498_v12, %v10500_v50  ;;  %v7518_v36 = vcombine.low %v10498_v12, %v10500_v50  ;;  %v4543_v17 = vrot.slane %v7587_v27, 2 }
 0x39e   : > { %4679 = vmatpush1.bf16.msra.mxu1 %v8451_v40 }
 0x39f   : > { %7538 = vmatprep.mubr.msk.bf16.mxu1 %vm11854_vm5, %v7519_v52  ;;  %v4264_v58 = vrot.slane %v7518_v36, 2  ;;  %v4266_v24 = vrot.slane %v7519_v52, 2  ;;  %4680 = vmatprep.subr.bf16.mxu1 %v10428_v43  ;;  %vm11861_vm5 = vmmov %vm11850_vm1 }
 0x3a0   : > { %4217 = vmatmul.mubr.bf16.gmra.mrb[88].mxu1 %v7518_v36  ;;  %v4544_v36 = vrot.slane %v7589_v0, 2  ;;  %v7588_v0 = vcombine.low %v10434_v29, %v10454_v10 }
 0x3a1   : > { %v4267_v45 = vsel %vm1854_vm0, %v4262_v60, %v4266_v24  ;;  %v4265_v61 = vsel %vm1854_vm0, %v4260_v59, %v4264_v58  ;;  %v3956_v33 = vld [vmem:[#allocation3 + $0x70] sm:$0x33] }
 0x3a2   : > { %7560 = vmatprep.mubr.msk.bf16.mxu0 %vm11855_vm8, %v4267_v45  ;;  %v7543_v38 = vcombine.high %v3956_v33, %v3956_v33  ;;  %v7542_v63 = vcombine.low %v3956_v33, %v3956_v33  ;;  %v3981_v3 = vld [vmem:[#allocation3 + $0x70] sm:$0xff]  ;;  %4681 = vmatpush1.bf16.msra.mxu1 %v8452_v13  ;;  %v7591_v13 = vcombine.high %v10456_v26, %v10476_v51  ;;  %v4541_v29 = vrot.slane %v7588_v0, 2  ;;  %v4460_v0 = vld [vmem:[#allocation3 + $0x80] sm:$0xff]  ;;  %vm11862_vm8 = vmmov %vm11850_vm1 }
 0x3a3   : > { %4433 = vmatmul.mubr.bf16.gmra.mrb[112].mxu0 %v4265_v61  ;;  %4682 = vmatprep.subr.bf16.mxu1 %v10428_v43  ;;  %v4545_v61 = vsel %vm1854_vm0, %v4543_v17, %v4544_v36  ;;  %v7586_v33 = vcombine.low %v4449_v48, %v10432_v19  ;;  %v7593_v48 = vcombine.high %v10478_v56, %v10498_v12 }
 0x3a4   : > { %v3982_v52 = vld [vmem:[#allocation3 + $0x78] sm:$0xff]  ;;  %v4270_v60 = vrot.slane %v7543_v38, 2  ;;  %v4268_v23 = vrot.slane %v7542_v63, 2  ;;  %v4548_v10 = vrot.slane %v7591_v13, 2 }
 0x3a5   : > { %v7521_v59 = vcombine.high %v3981_v3, %v3982_v52  ;;  %v7520_v40 = vcombine.low %v3981_v3, %v3982_v52  ;;  %v4540_v17 = vrot.slane %v7586_v33, 2  ;;  %v7597_v13 = vcombine.high %v3982_v52, %v4460_v0  ;;  %v4461_v33 = vld [vmem:[#allocation3 + $0x88] sm:$0x33] }
 0x3a6   : > { %v4271_v45 = vsel %vm1854_vm0, %v4266_v24, %v4270_v60  ;;  %4683 = vmatpush1.bf16.msra.mxu1 %v8456_v8  ;;  %v8458_v24 = vld [vmem:[%s11773_s7 + $0x118] sm:$0xff]   ;;  %v4269_v38 = vsel %vm1854_vm0, %v4264_v58, %v4268_v23  ;;  %v7590_v8 = vcombine.low %v10456_v26, %v10476_v51  ;;  %v4549_v19 = vsel %vm1854_vm0, %v4544_v36, %v4548_v10 }
 0x3a7   : > { %7539 = vmatprep.mubr.msk.bf16.mxu1 %vm11856_vm2, %v7521_v59  ;;  %7561 = vmatprep.mubr.msk.bf16.mxu0 %vm11857_vm4, %v4271_v45  ;;  %v4542_v27 = vsel %vm1854_vm0, %v4540_v17, %v4541_v29  ;;  %v4552_v58 = vrot.slane %v7593_v48, 2  ;;  %v7592_v60 = vcombine.low %v10478_v56, %v10498_v12  ;;  %v7595_v26 = vcombine.high %v10500_v50, %v3981_v3 }
 0x3a8   : > { %4225 = vmatmul.mubr.bf16.gmra.mrb[92].mxu1 %v7520_v40  ;;  %4684 = vmatprep.subr.bf16.mxu1 %v10428_v43  ;;  %v4546_v23 = vrot.slane %v7590_v8, 2  ;;  %v7594_v45 = vcombine.low %v10500_v50, %v3981_v3  ;;  %v4560_v12 = vrot.slane %v7597_v13, 2  ;;  %vm512_vm2 = vcmask 253952  }
 0x3a9   : > { %7612 = vmatprep.mubr.msk.bf16.mxu1 %vm11850_vm1, %v4545_v61  ;;  %v4553_v59 = vsel %vm1854_vm0, %v4548_v10, %v4552_v58  ;;  %v4550_v51 = vrot.slane %v7592_v60, 2  ;;  %v4556_v36 = vrot.slane %v7595_v26, 2  ;;  %v7599_v10 = vcombine.high %v4461_v33, %v4461_v33  ;;  %513 = vst.msk [vmem:[#allocation4 + $0x38] sm:$0x1] %vm512_vm2, %v10428_v43 }
 0x3aa   : > { %4685 = vmatpush1.bf16.msra.mxu1 %v8458_v24  ;;  %v4547_v63 = vsel %vm1854_vm0, %v4541_v29, %v4546_v23  ;;  %v4554_v56 = vrot.slane %v7594_v45, 2  ;;  %vm11863_vm4 = vsmask.f32 7938  ;;  %vm11864_vm1 = vcmask 781312  }
 0x3ab   : > { %4441 = vmatmul.mubr.bf16.gmra.mrb[116].mxu0 %v4269_v38  ;;  %v4551_v40 = vsel %vm1854_vm0, %v4546_v23, %v4550_v51  ;;  %v4557_v61 = vsel %vm1854_vm0, %v4552_v58, %v4556_v36  ;;  %v7596_v38 = vcombine.low %v3982_v52, %v4460_v0  ;;  %v4561_v29 = vsel %vm1854_vm0, %v4556_v36, %v4560_v12  ;;  %vm11871_vm2 = vmmov %vm11864_vm1 }
 0x3ac   : > { %v4555_v24 = vsel %vm1854_vm0, %v4550_v51, %v4554_v56  ;;  %v4564_v3 = vrot.slane %v7599_v10, 2 }
 0x3ad   : > { %v4558_v50 = vrot.slane %v7596_v38, 2 }
 0x3ae   : > { %v4565_v8 = vsel %vm1854_vm0, %v4560_v12, %v4564_v3 }
 0x3af   : > { %v4559_v17 = vsel %vm1854_vm0, %v4554_v56, %v4558_v50 }
 0x3b0   : > { %4695 = vmatmul.mubr.bf16.vlgmr.msra.gmra.mrb[96].mxu1 %v4542_v27  ;;  %v7598_v27 = vcombine.low %v4461_v33, %v4461_v33 }
 0x3b1   : > { %7613 = vmatprep.mubr.msk.bf16.mxu1 %vm11858_vm9, %v4549_v19  ;;  %vm10649_vm9 = vmand %vm11864_vm1, %vm11863_vm4 }
 0x3b2   : > { %v4562_v19 = vrot.slane %v7598_v27, 2  ;;  %vm11872_vm4 = vmmov %vm11864_vm1 }
 0x3b4   : > { %v4563_v48 = vsel %vm1854_vm0, %v4558_v50, %v4562_v19 }
 0x3b8   : > { %4703 = vmatmul.mubr.bf16.gmra.mrb[100].mxu1 %v4547_v63 }
 0x3b9   : > { %7614 = vmatprep.mubr.msk.bf16.mxu1 %vm11859_vm6, %v4553_v59  ;;  %vm11867_vm6 = vmmov %vm11864_vm1 }
 0x3c0   : > { %4711 = vmatmul.mubr.bf16.gmra.mrb[104].mxu1 %v4551_v40 }
 0x3c1   : > { %7615 = vmatprep.mubr.msk.bf16.mxu1 %vm11860_vm13, %v4557_v61  ;;  %vm11868_vm13 = vmmov %vm11864_vm1 }
 0x3c8   : > { %4719 = vmatmul.mubr.bf16.gmra.mrb[108].mxu1 %v4555_v24 }
 0x3c9   : > { %7616 = vmatprep.mubr.msk.bf16.mxu1 %vm11861_vm5, %v4561_v29  ;;  %vm11869_vm5 = vmmov %vm11864_vm1 }
 0x3d0   : > { %4727 = vmatmul.mubr.bf16.gmra.mrb[112].mxu1 %v4559_v17 }
 0x3d1   : > { %7617 = vmatprep.mubr.msk.bf16.mxu1 %vm11862_vm8, %v4565_v8  ;;  %vm11870_vm8 = vmmov %vm11864_vm1 }
 0x3d8   : > { %4735 = vmatmul.mubr.bf16.gmra.mrb[116].mxu1 %v4563_v48 }
 0x450   : > { %v4186_v52 = vpop.f32.mrb[72].mxu1 }
 0x451   : > { %v4188_v23 = vpop.f32.mrb[73].mxu1 }
 0x452   : > { %v4189_v58 = vpop.f32.mrb[74].mxu1 }
 0x453   : > { %v4191_v63 = vpop.f32.mrb[75].mxu1  ;;  %v4402_v60 = vpop.f32.mrb[96].mxu0 }
 0x454   : > { %v10565_v59 = vadd.f32 %v4402_v60, %v4186_v52  ;;  %v4404_v26 = vpop.f32.mrb[97].mxu0 }
 0x455   : > { %v4405_v51 = vpop.f32.mrb[98].mxu0  ;;  %v8465_v26 = vld [vmem:[%s11775_s9 + $0xd0] sm:$0xff]  }
 0x456   : > { %v10567_v36 = vadd.f32 %v4405_v51, %v4189_v58  ;;  %v4407_v40 = vpop.f32.mrb[99].mxu0  ;;  %v8466_v51 = vld [vmem:[%s11775_s9 + $0x90] sm:$0xff]   ;;  %7932 = vmatprep.subr.bf16.mxu0 %v8465_v26  ;;  %v8470_v26 = vld [vmem:[%s11775_s9 + $0xa0] sm:$0xff]  }
 0x457   : > { %7933 = vmatpush3.bf16.msra.mxu0 %v8466_v51  ;;  %v8471_v51 = vld [vmem:[%s11775_s9 + $0x110] sm:$0xff]  }
 0x458   : > { %8112 = vmatprep.subr.bf16.mxu1 %v8471_v51 }
 0x459   : > { %8113 = vmatpush3.bf16.msra.mxu1 %v8471_v51 }
 0x45b   : > { %v4194_v45 = vpop.f32.mrb[76].mxu1 }
 0x45c   : > { %v4196_v0 = vpop.f32.mrb[77].mxu1 }
 0x45d   : > { %v4197_v61 = vpop.f32.mrb[78].mxu1 }
 0x45e   : > { %v4199_v13 = vpop.f32.mrb[79].mxu1  ;;  %v4410_v56 = vpop.f32.mrb[100].mxu0 }
 0x45f   : > { %v10569_v12 = vadd.f32 %v4410_v56, %v4194_v45  ;;  %v4412_v33 = vpop.f32.mrb[101].mxu0 }
 0x460   : > { %v4413_v24 = vpop.f32.mrb[102].mxu0 }
 0x461   : > { %v10571_v38 = vadd.f32 %v4413_v24, %v4197_v61  ;;  %v4415_v29 = vpop.f32.mrb[103].mxu0 }
 0x462   : > { %v8467_v29 = vld [vmem:[%s11775_s9 + $0xd8] sm:$0xff]  }
 0x463   : > { %v4202_v10 = vpop.f32.mrb[80].mxu1  ;;  %7934 = vmatprep.subr.bf16.mxu0 %v8467_v29 }
 0x464   : > { %v4204_v50 = vpop.f32.mrb[81].mxu1 }
 0x465   : > { %v4205_v3 = vpop.f32.mrb[82].mxu1 }
 0x466   : > { %v4207_v17 = vpop.f32.mrb[83].mxu1  ;;  %v4418_v27 = vpop.f32.mrb[104].mxu0 }
 0x467   : > { %v10573_v8 = vadd.f32 %v4418_v27, %v4202_v10  ;;  %v4420_v19 = vpop.f32.mrb[105].mxu0 }
 0x468   : > { %v4421_v48 = vpop.f32.mrb[106].mxu0 }
 0x469   : > { %v10575_v52 = vadd.f32 %v4421_v48, %v4205_v3  ;;  %v4423_v23 = vpop.f32.mrb[107].mxu0  ;;  %v8468_v3 = vld [vmem:[%s11775_s9 + $0x98] sm:$0xff]  }
 0x46a   : > { %7935 = vmatpush3.bf16.msra.mxu0 %v8468_v3 }
 0x46b   : > { %v4210_v58 = vpop.f32.mrb[84].mxu1 }
 0x46c   : > { %v4212_v63 = vpop.f32.mrb[85].mxu1 }
 0x46d   : > { %v4213_v60 = vpop.f32.mrb[86].mxu1 }
 0x46e   : > { %v4215_v40 = vpop.f32.mrb[87].mxu1  ;;  %v4426_v45 = vpop.f32.mrb[108].mxu0 }
 0x46f   : > { %v10583_v0 = vadd.f32 %v4426_v45, %v4210_v58  ;;  %v4428_v61 = vpop.f32.mrb[109].mxu0 }
 0x470   : > { %v4429_v13 = vpop.f32.mrb[110].mxu0 }
 0x471   : > { %v10585_v56 = vadd.f32 %v4429_v13, %v4213_v60  ;;  %v4431_v33 = vpop.f32.mrb[111].mxu0  ;;  %v8469_v60 = vld [vmem:[%s11775_s9 + $0xe0] sm:$0xff]  }
 0x472   : > { %7936 = vmatprep.subr.bf16.mxu0 %v8469_v60  ;;  %v8473_v60 = vld [vmem:[%s11775_s9 + $0xa8] sm:$0xff]  }
 0x473   : > { %v4218_v24 = vpop.f32.mrb[88].mxu1  ;;  %7937 = vmatpush3.bf16.msra.mxu0 %v8470_v26 }
 0x474   : > { %v4220_v10 = vpop.f32.mrb[89].mxu1 }
 0x475   : > { %v4221_v50 = vpop.f32.mrb[90].mxu1  ;;  %v8472_v10 = vld [vmem:[%s11775_s9 + $0xe8] sm:$0xff]  }
 0x476   : > { %v4223_v17 = vpop.f32.mrb[91].mxu1  ;;  %v4434_v27 = vpop.f32.mrb[112].mxu0  ;;  %7938 = vmatprep.subr.bf16.mxu0 %v8472_v10 }
 0x477   : > { %v10593_v19 = vadd.f32 %v4434_v27, %v4218_v24  ;;  %v4436_v48 = vpop.f32.mrb[113].mxu0  ;;  %7939 = vmatpush3.bf16.msra.mxu0 %v8473_v60 }
 0x478   : > { %v4437_v23 = vpop.f32.mrb[114].mxu0  ;;  %v10616_v48 = vld [vmem:[%s11774_s8] ss:$0 sm:$0xff] }
 0x479   : > { %v10595_v58 = vadd.f32 %v4437_v23, %v4221_v50  ;;  %v4439_v63 = vpop.f32.mrb[115].mxu0 }
 0x47b   : > { %v4226_v40 = vpop.f32.mrb[92].mxu1 }
 0x47c   : > { %v4228_v45 = vpop.f32.mrb[93].mxu1 }
 0x47d   : > { %v4229_v61 = vpop.f32.mrb[94].mxu1 }
 0x47e   : > { %v4231_v13 = vpop.f32.mrb[95].mxu1  ;;  %v4442_v33 = vpop.f32.mrb[116].mxu0 }
 0x47f   : > { %v10606_v24 = vadd.f32 %v4442_v33, %v4226_v40  ;;  %v4444_v29 = vpop.f32.mrb[117].mxu0 }
 0x480   : > { %v4445_v50 = vpop.f32.mrb[118].mxu0 }
 0x481   : > { %v10611_v3 = vadd.f32 %v4445_v50, %v4229_v61  ;;  %v4447_v17 = vpop.f32.mrb[119].mxu0  ;;  %v8474_v61 = vld [vmem:[%s11775_s9 + $0xf0] sm:$0xff]  }
 0x482   : > { %7940 = vmatprep.subr.bf16.mxu0 %v8474_v61 }
 0x483   : > { %v4696_v27 = vpop.f32.mrb[96].mxu1 }
 0x484   : > { %v4743_v23 = vadd.f32 %v4696_v27, %v10565_v59  ;;  %v4698_v63 = vpop.f32.mrb[97].mxu1  ;;  %v8475_v59 = vld [vmem:[%s11775_s9 + $0xb0] sm:$0xff]  }
 0x485   : > { %v4699_v26 = vpop.f32.mrb[98].mxu1  ;;  %7941 = vmatpush3.bf16.msra.mxu0 %v8475_v59  ;;  %v8476_v63 = vld [vmem:[%s11775_s9 + $0xf8] sm:$0xff]  }
 0x486   : > { %v4762_v51 = vadd.f32 %v10616_v48, %v4743_v23  ;;  %v4744_v40 = vadd.f32 %v4699_v26, %v10567_v36  ;;  %v4701_v45 = vpop.f32.mrb[99].mxu1  ;;  %7942 = vmatprep.subr.bf16.mxu0 %v8476_v63  ;;  %v8477_v59 = vld [vmem:[%s11775_s9 + $0xb8] sm:$0xff]  }
 0x488   : > { %v4774_v13 = vmax.f32 %v4762_v51, 0.0  ;;  %v4763_v33 = vadd.f32 %v10616_v48, %v4744_v40 }
 0x489   : > { %7943 = vmatpush3.bf16.msra.mxu0 %v8477_v59  ;;  %v8478_v59 = vld [vmem:[%s11775_s9 + $0x100] sm:$0xff]  }
 0x48a   : > { %v4775_v29 = vmax.f32 %v4763_v33, 0.0  ;;  %v4786_v10 = vmul.f32 %v4774_v13, %v8891_v9  ;;  %7944 = vmatprep.subr.bf16.mxu0 %v8478_v59 }
 0x48b   : > { %v4704_v50 = vpop.f32.mrb[100].mxu1 }
 0x48c   : > { %v4745_v36 = vadd.f32 %v4704_v50, %v10569_v12  ;;  %v4706_v17 = vpop.f32.mrb[101].mxu1  ;;  %v7896_v27 = vpack.c.bf16 %v4786_v10, %v4786_v10  ;;  %v4787_v23 = vmul.f32 %v4775_v29, %v8911_v25 }
 0x48d   : > { %v4707_v60 = vpop.f32.mrb[102].mxu1 }
 0x48e   : > { %v4764_v26 = vadd.f32 %v10616_v48, %v4745_v36  ;;  %v4746_v9 = vadd.f32 %v4707_v60, %v10571_v38  ;;  %4975 = vrot.lane.b32.xlu0 %v7896_v27, %s8580_s24  ;;  %v4835_v51 = vshrl.u32 %v7896_v27, 16  ;;  %v4838_v12 = vshll.u32 %v7896_v27, 16  ;;  %v4709_v40 = vpop.f32.mrb[103].mxu1  ;;  %v4956_v36 = vld [vmem:[#allocation4 + $0x30] sm:$0xf] }
 0x48f   : > { %v7897_v45 = vpack.c.bf16 %v4787_v23, %v4787_v23 }
 0x490   : > { %v4776_v25 = vmax.f32 %v4764_v26, 0.0  ;;  %v4765_v61 = vadd.f32 %v10616_v48, %v4746_v9  ;;  %v4837_v13 = vrot.slane %v4835_v51, 7  ;;  %v10642_v33 = vrot.slane %v4838_v12, 5 }
 0x491   : > { %4977 = vrot.lane.b32.xlu1 %v7897_v45, %s8580_s24  ;;  %v4843_v29 = vshrl.u32 %v7897_v45, 16  ;;  %v4846_v10 = vshll.u32 %v7897_v45, 16  ;;  %v5049_v50 = vrot.slane %v4835_v51, 4 }
 0x492   : > { %v4777_v17 = vmax.f32 %v4765_v61, 0.0  ;;  %v4840_v27 = vor.u32 %v4838_v12, %v4837_v13  ;;  %v4788_v23 = vmul.f32 %v4776_v25, %v8919_v30  ;;  %v4841_v25 = vrot.slane %v4837_v13, 4 }
 0x493   : > { %v4845_v63 = vrot.slane %v4843_v29, 7  ;;  %v4712_v60 = vpop.f32.mrb[104].mxu1  ;;  %v5050_v26 = vor.u32 %v5049_v50, %v10642_v33  ;;  %v5052_v9 = vrot.slane %v4846_v10, 5  ;;  %v5054_v40 = vrot.slane %v4843_v29, 4 }
 0x494   : > { %v4747_v2 = vadd.f32 %v4712_v60, %v10573_v8  ;;  %v4714_v32 = vpop.f32.mrb[105].mxu1  ;;  %v7898_v28 = vpack.c.bf16 %v4788_v23, %v4788_v23  ;;  %v4789_v14 = vmul.f32 %v4777_v17, %v8953_v57  ;;  %v4957_v51 = vsel %vm10649_vm9, %v4840_v27, %v4956_v36  ;;  %v8480_v57 = vld [vmem:[%s11775_s9 + $0x118] sm:$0xff]   ;;  %vm11873_vm9 = vmmov %vm11864_vm1 }
 0x495   : > { %v4715_v45 = vpop.f32.mrb[106].mxu1  ;;  %v4848_v12 = vor.u32 %v4846_v10, %v4845_v63  ;;  %v5051_v61 = vrot.slane %v5050_v26, 4  ;;  %v5055_v30 = vor.u32 %v5054_v40, %v5052_v9  ;;  %4958 = vst [vmem:[#allocation4 + $0x30] sm:$0xf] %v4957_v51  ;;  %v8479_v32 = vld [vmem:[%s11775_s9 + $0xc0] sm:$0xff]   ;;  %8114 = vmatprep.subr.bf16.mxu1 %v8480_v57 }
 0x496   : > { %v4766_v8 = vadd.f32 %v10616_v48, %v4747_v2  ;;  %v4748_v38 = vadd.f32 %v4715_v45, %v10575_v52  ;;  %4979 = vrot.lane.b32.xlu0 %v7898_v28, %s8580_s24  ;;  %v4852_v29 = vshrl.u32 %v7898_v28, 16  ;;  %v4717_v13 = vpop.f32.mrb[107].mxu1  ;;  %v4855_v10 = vshll.u32 %v7898_v28, 16  ;;  %7945 = vmatpush3.bf16.msra.mxu0 %v8479_v32 }
 0x497   : > { %v5053_v50 = vsel %vm8996_vm14, %v5051_v61, %v5052_v9  ;;  %v5056_v36 = vrot.slane %v5055_v30, 4  ;;  %v7899_v17 = vpack.c.bf16 %v4789_v14, %v4789_v14  ;;  %v4849_v27 = vsel %vm9043_vm15, %v4841_v25, %v4848_v12  ;;  %8115 = vmatpush3.bf16.msra.mxu1 %v8480_v57  ;;  %v8481_v14 = vld [vmem:[%s11775_s9 + $0x108] sm:$0xff]  }
 0x498   : > { %v4778_v23 = vmax.f32 %v4766_v8, 0.0  ;;  %v4767_v2 = vadd.f32 %v10616_v48, %v4748_v38  ;;  %v4854_v60 = vrot.slane %v4852_v29, 7  ;;  %v5057_v52 = vrot.slane %v4855_v10, 5  ;;  %4959 = vst.msk [vmem:[#allocation4 + $0x3c] sm:$0xf] %vm11867_vm6, %v4849_v27  ;;  %7946 = vmatprep.subr.bf16.mxu0 %v8481_v14 }
 0x499   : > { %v4861_v28 = vshrl.u32 %v7899_v17, 16  ;;  %v4864_v26 = vshll.u32 %v7899_v17, 16  ;;  %v5059_v40 = vrot.slane %v4852_v29, 4  ;;  %v4850_v9 = vrot.slane %v4845_v63, 4 }
 0x49a   : > { %v4779_v51 = vmax.f32 %v4767_v2, 0.0  ;;  %5109 = vrot.lane.b32.xlu0 %v5053_v50, %s8583_s23  ;;  %v5058_v45 = vsel %vm8996_vm14, %v5056_v36, %v5057_v52  ;;  %v4857_v12 = vor.u32 %v4855_v10, %v4854_v60  ;;  %v4790_v61 = vmul.f32 %v4778_v23, %v9014_v35  ;;  %v8482_v35 = vld [vmem:[%s11775_s9 + $0xc8] sm:$0xff]  }
 0x49b   : > { %5111 = vrot.lane.b32.xlu1 %v5058_v45, %s8583_s23  ;;  %v4720_v30 = vpop.f32.mrb[108].mxu1  ;;  %v4863_v25 = vrot.slane %v4861_v28, 7  ;;  %v5060_v59 = vor.u32 %v5059_v40, %v5057_v52  ;;  %v5062_v32 = vrot.slane %v4864_v26, 5  ;;  %v5064_v63 = vrot.slane %v4861_v28, 4  ;;  %7947 = vmatpush3.bf16.msra.mxu0 %v8482_v35 }
 0x49c   : > { %v4749_v57 = vadd.f32 %v4720_v30, %v10583_v0  ;;  %v4722_v8 = vpop.f32.mrb[109].mxu1  ;;  %v7900_v38 = vpack.c.bf16 %v4790_v61, %v4790_v61  ;;  %v4791_v29 = vmul.f32 %v4779_v51, %v9027_v46  ;;  %v4858_v13 = vsel %vm9043_vm15, %v4850_v9, %v4857_v12 }
 0x49d   : > { %v4723_v10 = vpop.f32.mrb[110].mxu1  ;;  %v4866_v50 = vor.u32 %v4864_v26, %v4863_v25  ;;  %v5061_v36 = vrot.slane %v5060_v59, 4  ;;  %v5065_v27 = vor.u32 %v5064_v63, %v5062_v32  ;;  %4960 = vst.msk [vmem:[#allocation4 + $0x48] sm:$0xf] %vm11868_vm13, %v4858_v13  ;;  %v4868_v23 = vrot.slane %v4863_v25, 4 }
 0x49e   : > { %v4768_v0 = vadd.f32 %v10616_v48, %v4749_v57  ;;  %v4750_v2 = vadd.f32 %v4723_v10, %v10585_v56  ;;  %4983 = vrot.lane.b32.xlu0 %v7900_v38, %s8580_s24  ;;  %v4870_v46 = vshrl.u32 %v7900_v38, 16  ;;  %v4725_v52 = vpop.f32.mrb[111].mxu1  ;;  %v4873_v28 = vshll.u32 %v7900_v38, 16 }
 0x49f   : > { %4981 = vrot.lane.b32.xlu1 %v7899_v17, %s8580_s24  ;;  %v5063_v26 = vsel %vm8996_vm14, %v5061_v36, %v5062_v32  ;;  %v5066_v40 = vrot.slane %v5065_v27, 4  ;;  %v7901_v9 = vpack.c.bf16 %v4791_v29, %v4791_v29  ;;  %v4859_v14 = vrot.slane %v4854_v60, 4  ;;  %v8487_v17 = vld [vmem:[%s11775_s9 + $0x160] sm:$0xff]  }
 0x4a0   : > { %v4780_v51 = vmax.f32 %v4768_v0, 0.0  ;;  %v4769_v45 = vadd.f32 %v10616_v48, %v4750_v2  ;;  %v4872_v12 = vrot.slane %v4870_v46, 7  ;;  %v5067_v61 = vrot.slane %v4873_v28, 5  ;;  %8052 = vmatprep.subr.bf16.mxu0 %v8487_v17 }
 0x4a1   : > { %v4879_v56 = vshrl.u32 %v7901_v9, 16  ;;  %v4882_v30 = vshll.u32 %v7901_v9, 16  ;;  %v5069_v25 = vrot.slane %v4870_v46, 4  ;;  %v4867_v59 = vsel %vm9043_vm15, %v4859_v14, %v4866_v50 }
 0x4a2   : > { %v4781_v63 = vmax.f32 %v4769_v45, 0.0  ;;  %5113 = vrot.lane.b32.xlu0 %v5063_v26, %s8583_s23  ;;  %v5068_v60 = vsel %vm8996_vm14, %v5066_v40, %v5067_v61  ;;  %v4875_v32 = vor.u32 %v4873_v28, %v4872_v12  ;;  %v4792_v57 = vmul.f32 %v4780_v51, %v9082_v18  ;;  %4961 = vst.msk [vmem:[#allocation4 + $0x54] sm:$0xf] %vm11869_vm5, %v4867_v59  ;;  %vm11874_vm5 = vmmov %vm11864_vm1 }
 0x4a3   : > { %5115 = vrot.lane.b32.xlu1 %v5068_v60, %s8583_s23  ;;  %v4728_v8 = vpop.f32.mrb[112].mxu1  ;;  %v4881_v38 = vrot.slane %v4879_v56, 7  ;;  %v5070_v29 = vor.u32 %v5069_v25, %v5067_v61  ;;  %v5072_v13 = vrot.slane %v4882_v30, 5  ;;  %v5074_v35 = vrot.slane %v4879_v56, 4 }
 0x4a4   : > { %v4751_v10 = vadd.f32 %v4728_v8, %v10593_v19  ;;  %v4730_v50 = vpop.f32.mrb[113].mxu1  ;;  %v7902_v36 = vpack.c.bf16 %v4792_v57, %v4792_v57  ;;  %v4793_v27 = vmul.f32 %v4781_v63, %v9090_v39  ;;  %v4876_v0 = vsel %vm9043_vm15, %v4868_v23, %v4875_v32 }
 0x4a5   : > { %v4731_v18 = vpop.f32.mrb[114].mxu1  ;;  %v4884_v2 = vor.u32 %v4882_v30, %v4881_v38  ;;  %v5071_v46 = vrot.slane %v5070_v29, 4  ;;  %v5075_v52 = vor.u32 %v5074_v35, %v5072_v13  ;;  %4962 = vst.msk [vmem:[#allocation4 + $0x60] sm:$0xf] %vm11870_vm8, %v4876_v0  ;;  %v4886_v28 = vrot.slane %v4881_v38, 4 }
 0x4a6   : > { %v4770_v26 = vadd.f32 %v10616_v48, %v4751_v10  ;;  %v4752_v40 = vadd.f32 %v4731_v18, %v10595_v58  ;;  %4987 = vrot.lane.b32.xlu0 %v7902_v36, %s8580_s24  ;;  %v4888_v19 = vshrl.u32 %v7902_v36, 16  ;;  %v4733_v14 = vpop.f32.mrb[115].mxu1  ;;  %v4891_v51 = vshll.u32 %v7902_v36, 16 }
 0x4a7   : > { %4985 = vrot.lane.b32.xlu1 %v7901_v9, %s8580_s24  ;;  %v5073_v39 = vsel %vm8996_vm14, %v5071_v46, %v5072_v13  ;;  %v5076_v23 = vrot.slane %v5075_v52, 4  ;;  %v7903_v45 = vpack.c.bf16 %v4793_v27, %v4793_v27  ;;  %v4877_v61 = vrot.slane %v4872_v12, 4 }
 0x4a8   : > { %v4782_v56 = vmax.f32 %v4770_v26, 0.0  ;;  %v4771_v30 = vadd.f32 %v10616_v48, %v4752_v40  ;;  %v4890_v25 = vrot.slane %v4888_v19, 7  ;;  %v5077_v59 = vrot.slane %v4891_v51, 5  ;;  %v8494_v26 = vld [vmem:[%s11775_s9 + $0x40] sm:$0xff]  }
 0x4a9   : > { %v4897_v17 = vshrl.u32 %v7903_v45, 16  ;;  %v4900_v58 = vshll.u32 %v7903_v45, 16  ;;  %v5079_v63 = vrot.slane %v4888_v19, 4  ;;  %v4885_v60 = vsel %vm9043_vm15, %v4877_v61, %v4884_v2  ;;  %7992 = vmatprep.subr.bf16.mxu1 %v8494_v26 }
 0x4aa   : > { %v4794_v32 = vmul.f32 %v4782_v56, %v9129_v20  ;;  %v4783_v9 = vmax.f32 %v4771_v30, 0.0  ;;  %5117 = vrot.lane.b32.xlu0 %v5073_v39, %s8583_s23  ;;  %v5078_v57 = vsel %vm8996_vm14, %v5076_v23, %v5077_v59  ;;  %v4893_v12 = vor.u32 %v4891_v51, %v4890_v25  ;;  %4963 = vst.msk [vmem:[#allocation4 + $0x6c] sm:$0xf] %vm11871_vm2, %v4885_v60 }
 0x4ab   : > { %5119 = vrot.lane.b32.xlu1 %v5078_v57, %s8583_s23  ;;  %v4736_v8 = vpop.f32.mrb[116].mxu1  ;;  %v4899_v38 = vrot.slane %v4897_v17, 7  ;;  %v5080_v29 = vor.u32 %v5079_v63, %v5077_v59  ;;  %v5082_v13 = vrot.slane %v4900_v58, 5  ;;  %v5084_v35 = vrot.slane %v4897_v17, 4 }
 0x4ac   : > { %v7904_v10 = vpack.c.bf16 %v4794_v32, %v4794_v32  ;;  %v4753_v50 = vadd.f32 %v4736_v8, %v10606_v24  ;;  %v4738_v20 = vpop.f32.mrb[117].mxu1  ;;  %v4795_v36 = vmul.f32 %v4783_v9, %v9139_v34  ;;  %v4894_v27 = vsel %vm9043_vm15, %v4886_v28, %v4893_v12 }
 0x4ad   : > { %v4739_v0 = vpop.f32.mrb[118].mxu1  ;;  %v5081_v18 = vrot.slane %v5080_v29, 4  ;;  %v4902_v2 = vor.u32 %v4900_v58, %v4899_v38  ;;  %v5085_v46 = vor.u32 %v5084_v35, %v5082_v13  ;;  %4964 = vst.msk [vmem:[#allocation4 + $0x78] sm:$0xf] %vm11872_vm4, %v4894_v27  ;;  %v4895_v52 = vrot.slane %v4890_v25, 4 }
 0x4ae   : > { %v4906_v40 = vshrl.u32 %v7904_v10, 16  ;;  %v4772_v24 = vadd.f32 %v10616_v48, %v4753_v50  ;;  %v4754_v19 = vadd.f32 %v4739_v0, %v10611_v3  ;;  %v4741_v34 = vpop.f32.mrb[119].mxu1  ;;  %v4909_v14 = vshll.u32 %v7904_v10, 16 }
 0x4af   : > { %4989 = vrot.lane.b32.xlu1 %v7903_v45, %s8580_s24  ;;  %v5083_v28 = vsel %vm8996_vm14, %v5081_v18, %v5082_v13  ;;  %v5086_v51 = vrot.slane %v5085_v46, 4  ;;  %v7905_v39 = vpack.c.bf16 %v4795_v36, %v4795_v36  ;;  %v4903_v23 = vsel %vm9043_vm15, %v4895_v52, %v4902_v2 }
 0x4b0   : > { %v4908_v61 = vrot.slane %v4906_v40, 7  ;;  %v4784_v56 = vmax.f32 %v4772_v24, 0.0  ;;  %v4773_v30 = vadd.f32 %v10616_v48, %v4754_v19  ;;  %5121 = vrot.lane.b32.xlu0 %v5083_v28, %s8583_s23  ;;  %v5087_v3 = vrot.slane %v4909_v14, 5  ;;  %4965 = vst.msk [vmem:[#allocation4 + $0x84] sm:$0xf] %vm11864_vm1, %v4903_v23 }
 0x4b1   : > { %v4915_v25 = vshrl.u32 %v7905_v39, 16  ;;  %v4918_v45 = vshll.u32 %v7905_v39, 16  ;;  %v5089_v59 = vrot.slane %v4906_v40, 4  ;;  %v4904_v17 = vrot.slane %v4899_v38, 4  ;;  %v4972_v28 = vld [vmem:[#allocation4 + $0xc0] sm:$0x1] }
 0x4b2   : > { %v4796_v58 = vmul.f32 %v4784_v56, %v9179_v21  ;;  %v4785_v63 = vmax.f32 %v4773_v30, 0.0  ;;  %v5088_v60 = vsel %vm8996_vm14, %v5086_v51, %v5087_v3  ;;  %v4911_v32 = vor.u32 %v4909_v14, %v4908_v61  ;;  %v8569_v14 = vld [vmem:[#allocation4] sm:$0xff] }
 0x4b3   : > { %5123 = vrot.lane.b32.xlu1 %v5088_v60, %s8583_s23  ;;  %v4917_v9 = vrot.slane %v4915_v25, 7  ;;  %v5090_v48 = vor.u32 %v5089_v59, %v5087_v3  ;;  %v5092_v57 = vrot.slane %v4918_v45, 5  ;;  %v5094_v12 = vrot.slane %v4915_v25, 4 }
 0x4b4   : > { %v7906_v8 = vpack.c.bf16 %v4796_v58, %v4796_v58  ;;  %4993 = vrot.lane.b32.xlu0 %v7905_v39, %s8580_s24  ;;  %v4797_v29 = vmul.f32 %v4785_v63, %v9188_v37  ;;  %v4912_v38 = vsel %vm9043_vm15, %v4904_v17, %v4911_v32  ;;  %v4913_v50 = vrot.slane %v4908_v61, 4 }
 0x4b5   : > { %v5091_v21 = vrot.slane %v5090_v48, 4  ;;  %v4920_v13 = vor.u32 %v4918_v45, %v4917_v9  ;;  %v5095_v35 = vor.u32 %v5094_v12, %v5092_v57  ;;  %4966 = vst.msk [vmem:[#allocation4 + $0x90] sm:$0xf] %vm11873_vm9, %v4912_v38  ;;  %vm515_vm6 = vcmask 257027   ;;  %vm11876_vm9 = vmmov %vm11864_vm1 }
 0x4b6   : > { %v4924_v20 = vshrl.u32 %v7906_v8, 16  ;;  %v7907_v36 = vpack.c.bf16 %v4797_v29, %v4797_v29  ;;  %v4927_v27 = vshll.u32 %v7906_v8, 16  ;;  %vm4970_vm13 = vcmask 778240   ;;  %516 = vst.msk [vmem:[#allocation4 + $0xbc] sm:$0x8] %vm515_vm6, %v10428_v43 }
 0x4b7   : > { %4991 = vrot.lane.b32.xlu1 %v7904_v10, %s8580_s24  ;;  %v5093_v0 = vsel %vm8996_vm14, %v5091_v21, %v5092_v57  ;;  %v5096_v37 = vrot.slane %v5095_v35, 4  ;;  %v4921_v18 = vsel %vm9043_vm15, %v4913_v50, %v4920_v13  ;;  %vm503_vm8 = vcmask 257024   ;;  %v10770_v10 = vld [vmem:[%s11772_s6] ss:$0 sm:$0xff] }
 0x4b8   : > { %v4926_v2 = vrot.slane %v4924_v20, 7  ;;  %4997 = vrot.lane.b32.xlu0 %v7907_v36, %s8580_s24  ;;  %v4933_v46 = vshrl.u32 %v7907_v36, 16  ;;  %v4936_v52 = vshll.u32 %v7907_v36, 16  ;;  %v5097_v26 = vrot.slane %v4927_v27, 5  ;;  %4967 = vst.msk [vmem:[#allocation4 + $0x9c] sm:$0xf] %vm11874_vm5, %v4921_v18 }
 0x4b9   : > { %v5099_v40 = vrot.slane %v4924_v20, 4  ;;  %v4922_v34 = vrot.slane %v4917_v9, 4  ;;  %508 = vst.msk [vmem:[#allocation4 + $0x20] sm:$0xf] %vm503_vm8, %v8569_v14  ;;  %510 = vst.msk [vmem:[#allocation4 + $0x2c] sm:$0xf] %vm503_vm8, %v8569_v14  ;;  %v3223_v25 = vadd.f32 %v10770_v10, %v10328_v4  ;;  %v3224_v63 = vadd.f32 %v10770_v10, %v10340_v11 }
 0x4ba   : > { %v4935_v24 = vrot.slane %v4933_v46, 7  ;;  %v4929_v19 = vor.u32 %v4927_v27, %v4926_v2  ;;  %v5098_v43 = vsel %vm8996_vm14, %v5096_v37, %v5097_v26  ;;  %518 = vst.msk [vmem:[#allocation4 + $0xc8] sm:$0xf] %vm503_vm8, %v8569_v14  ;;  %520 = vst.msk [vmem:[#allocation4 + $0xd4] sm:$0xf] %vm503_vm8, %v8569_v14  ;;  %v5102_v39 = vrot.slane %v4936_v52, 5 }
 0x4bb   : > { %vm11875_vm2 = vsmask.f32 256  ;;  %5125 = vrot.lane.b32.xlu1 %v5093_v0, %s8583_s23  ;;  %v5100_v51 = vor.u32 %v5099_v40, %v5097_v26  ;;  %v5104_v23 = vrot.slane %v4933_v46, 4  ;;  %v4931_v61 = vrot.slane %v4926_v2, 4  ;;  %v11881_v26 = vld [vmem:[#allocation6_spill] sm:$0xff]  ;;  %v11882_v40 = vld [vmem:[#allocation7_spill] sm:$0xff] }
 0x4bc   : > { %vm4971_vm4 = vmand %vm4970_vm13, %vm11875_vm2  ;;  %v4938_v56 = vor.u32 %v4936_v52, %v4935_v24  ;;  %v4940_v30 = vrot.slane %v4935_v24, 4  ;;  %5127 = vrot.lane.b32.xlu0 %v5098_v43, %s8583_s23  ;;  %v4930_v3 = vsel %vm9043_vm15, %v4922_v34, %v4929_v19  ;;  %v3235_v4 = vmax.f32 %v3223_v25, 0.0  ;;  %v6851_v24 = vld [vmem:[%s11779_s13 + $0x8] sm:$0xff]  ;;  %v6852_v19 = vld [vmem:[%s11779_s13 + $0x10] sm:$0xff] }
 0x4bd   : > { %v5105_v45 = vor.u32 %v5104_v23, %v5102_v39  ;;  %v5101_v59 = vrot.slane %v5100_v51, 4  ;;  %4968 = vst.msk [vmem:[#allocation4 + $0xa8] sm:$0xf] %vm11864_vm1, %v4930_v3  ;;  %v3225_v9 = vadd.f32 %v10770_v10, %v10355_v16  ;;  %v3236_v54 = vmax.f32 %v3224_v63, 0.0  ;;  %v6853_v43 = vld [vmem:[%s11779_s13 + $0x18] sm:$0xff]  ;;  %v6854_v34 = vld [vmem:[%s11779_s13 + $0x20] sm:$0xff] }
 0x4be   : > { %v4973_v17 = vsel %vm4971_vm4, %v4940_v30, %v4972_v28  ;;  %v4939_v58 = vsel %vm9043_vm15, %v4931_v61, %v4938_v56  ;;  %v3226_v48 = vadd.f32 %v10770_v10, %v10361_v53  ;;  %v7872_v11 = vpack.c.bf16 %v3235_v4, %v3235_v4  ;;  %v6855_v14 = vld [vmem:[%s11779_s13 + $0x28] sm:$0xff]  ;;  %v6856_v51 = vld [vmem:[%s11779_s13 + $0x30] sm:$0xff]  ;;  %v6857_v61 = vld [vmem:[%s11779_s13 + $0x38] sm:$0xff] }
 0x4bf   : > { %4974 = vst [vmem:[#allocation4 + $0xc0] sm:$0x1] %v4973_v17  ;;  %4995 = vrot.lane.b32.xlu1 %v7906_v8, %s8580_s24  ;;  %v5106_v60 = vrot.slane %v5105_v45, 4  ;;  %v5103_v32 = vsel %vm8996_vm14, %v5101_v59, %v5102_v39  ;;  %4969 = vst.msk [vmem:[#allocation4 + $0xb4] sm:$0xf] %vm11876_vm9, %v4939_v58  ;;  %v3237_v57 = vmax.f32 %v3225_v9, 0.0  ;;  %v3227_v22 = vadd.f32 %v10770_v10, %v10383_v47 }
 0x4c0   : > { %v7873_v12 = vpack.c.bf16 %v3236_v54, %v3236_v54  ;;  %v3238_v8 = vmax.f32 %v3226_v48, 0.0  ;;  %v3228_v16 = vadd.f32 %v10770_v10, %v10388_v49  ;;  %v3229_v53 = vadd.f32 %v10770_v10, %v10397_v7  ;;  %v6858_v25 = vld [vmem:[%s11779_s13 + $0x40] sm:$0xff]  ;;  %v6859_v59 = vld [vmem:[%s11779_s13 + $0x48] sm:$0xff]  ;;  %v6860_v58 = vld [vmem:[%s11779_s13 + $0x50] sm:$0xff] }
 0x4c1   : > { %5131 = vrot.lane.b32.xlu0 %v5106_v60, %s8583_s23  ;;  %v7874_v29 = vpack.c.bf16 %v3237_v57, %v3237_v57  ;;  %v3239_v38 = vmax.f32 %v3227_v22, 0.0  ;;  %v3230_v47 = vadd.f32 %v10770_v10, %v10400_v62  ;;  %v3231_v49 = vadd.f32 %v10770_v10, %v10403_v15  ;;  %v6861_v60 = vld [vmem:[%s11779_s13 + $0x58] sm:$0xff]  ;;  %v11169_v39 = vld [vmem:[%s11775_s9 + $0x1a0] sm:$0xff]  }
 0x4c2   : > { %v7875_v21 = vpack.c.bf16 %v3238_v8, %v3238_v8  ;;  %v3240_v13 = vmax.f32 %v3228_v16, 0.0  ;;  %v3241_v35 = vmax.f32 %v3229_v53, 0.0  ;;  %v3232_v7 = vadd.f32 %v10770_v10, %v10406_v6 }
 0x4c3   : > { %5129 = vrot.lane.b32.xlu1 %v5103_v32, %s8583_s23  ;;  %v3242_v50 = vmax.f32 %v3230_v47, 0.0  ;;  %v3243_v62 = vmax.f32 %v3231_v49, 0.0  ;;  %v3233_v27 = vadd.f32 %v10770_v10, %v10409_v44  ;;  %v3234_v15 = vadd.f32 %v10770_v10, %v10412_v5  ;;  %v11887_v10 = vld [vmem:[#allocation12_spill] sm:$0xff] }
 0x4c4   : > { %v7877_v20 = vpack.c.bf16 %v3240_v13, %v3240_v13  ;;  %v7878_v36 = vpack.c.bf16 %v3241_v35, %v3241_v35  ;;  %v3244_v37 = vmax.f32 %v3232_v7, 0.0  ;;  %vm528_vm14 = vcmask 517120   ;;  %v8488_v49 = vld [vmem:[%s11775_s9 + $0x120] sm:$0xff]  }
 0x4c5   : > { %5107 = vrot.lane.b32.xlu0 %v10642_v33, %s8583_s23  ;;  %v7876_v33 = vpack.c.bf16 %v3239_v38, %v3239_v38  ;;  %v7879_v0 = vpack.c.bf16 %v3242_v50, %v3242_v50  ;;  %v8584_v18 = vmov 0.0   ;;  %vm11877_vm15 = vcmask 523264  }
 0x4c6   : > { %526 = vst.msk [vmem:[#allocation5 + $0x10] sm:$0xff] %vm11877_vm15, %v8584_v18  ;;  %vm11878_vm6 = vmmov %vm11877_vm15  ;;  %v7880_v6 = vpack.c.bf16 %v3243_v62, %v3243_v62  ;;  %v3245_v44 = vmax.f32 %v3233_v27, 0.0  ;;  %v7881_v2 = vpack.c.bf16 %v3244_v37, %v3244_v37  ;;  %v3246_v46 = vmax.f32 %v3234_v15, 0.0  ;;  %v8492_v37 = vld [vmem:[%s11775_s9 + $0x168] sm:$0xff]  }
 0x4c7   : > { %3283 = vrot.lane.b32.xlu1 %v7872_v11, %s8580_s24  ;;  %527 = vst.msk [vmem:[#allocation5 + $0x18] sm:$0xff] %vm11878_vm6, %v8584_v18  ;;  %vm11879_vm13 = vmmov %vm11878_vm6  ;;  %vm11888_vm8 = vcmask 1044224   ;;  %vm11889_vm2 = vcmask 523268   ;;  %vm3343_vm1 = vcmask 261124  }
 0x4c8   : > { %529 = vst.msk [vmem:[#allocation5 + $0x20] sm:$0x3] %vm528_vm14, %v8584_v18  ;;  %vm11880_vm5 = vmmov %vm11878_vm6  ;;  %v7882_v5 = vpack.c.bf16 %v3245_v44, %v3245_v44  ;;  %v7883_v52 = vpack.c.bf16 %v3246_v46, %v3246_v46 }
 0x4c9   : > { %3285 = vrot.lane.b32.xlu0 %v7873_v12, %s8580_s24  ;;  %530 = vst.msk [vmem:[#allocation5 + $0x7e] sm:$0xff] %vm11879_vm13, %v8584_v18  ;;  %vm10878_vm4 = vmor %vm11889_vm2, %vm11888_vm8 }
 0x4ca   : > { %531 = vst.msk [vmem:[#allocation5 + $0x86] sm:$0xff] %vm11880_vm5, %v8584_v18  ;;  %vm10908_vm9 = vmor %vm3343_vm1, %vm3779_vm12 }
 0x4cb   : > { %3287 = vrot.lane.b32.xlu1 %v7874_v29, %s8580_s24  ;;  %vm11894_vm14 = vmmov %vm11880_vm5 }
 0x4cc   : > { %vm11895_vm15 = vmmov %vm11880_vm5 }
 0x4cd   : > { %3289 = vrot.lane.b32.xlu0 %v7875_v21, %s8580_s24  ;;  %vm11896_vm6 = vmmov %vm11880_vm5 }
 0x4ce   : > { %vm11897_vm13 = vmmov %vm11880_vm5 }
 0x4cf   : > { %3291 = vrot.lane.b32.xlu1 %v7876_v33, %s8580_s24  ;;  %vm11898_vm8 = vmmov %vm11880_vm5 }
 0x4d0   : > { %vm11899_vm2 = vmmov %vm11880_vm5 }
 0x4d1   : > { %3293 = vrot.lane.b32.xlu0 %v7877_v20, %s8580_s24 }
 0x4d3   : > { %3295 = vrot.lane.b32.xlu1 %v7878_v36, %s8580_s24 }
 0x4d5   : > { %3297 = vrot.lane.b32.xlu0 %v7879_v0, %s8580_s24 }
 0x4d7   : > { %3299 = vrot.lane.b32.xlu1 %v7880_v6, %s8580_s24 }
 0x4d9   : > { %3301 = vrot.lane.b32.xlu0 %v7881_v2, %s8580_s24  ;;  %v8493_v2 = vld [vmem:[%s11775_s9 + $0x128] sm:$0xff]  }
 0x4db   : > { %3303 = vrot.lane.b32.xlu1 %v7882_v5, %s8580_s24 }
 0x4dd   : > { %3305 = vrot.lane.b32.xlu0 %v7883_v52, %s8580_s24  ;;  %v8495_v52 = vld [vmem:[%s11775_s9 + $0x170] sm:$0xff]  }
 0x4df   : > { %3896 = vrot.lane.b32.xlu1 %v10128_v1, %s8583_s23  ;;  %v11883_v1 = vld [vmem:[#allocation8_spill] sm:$0xff] }
 0x4e1   : > { %3898 = vrot.lane.b32.xlu0 %v10140_v31, %s8583_s23  ;;  %v11884_v31 = vld [vmem:[#allocation9_spill] sm:$0xff] }
 0x4e3   : > { %3900 = vrot.lane.b32.xlu1 %v10159_v41, %s8583_s23  ;;  %v11885_v41 = vld [vmem:[#allocation10_spill] sm:$0xff] }
 0x4e5   : > { %3902 = vrot.lane.b32.xlu0 %v10178_v55, %s8583_s23  ;;  %v11886_v55 = vld [vmem:[#allocation11_spill] sm:$0xff] }
 0x4e7   : > { %3904 = vrot.lane.b32.xlu1 %v10202_v42, %s8583_s23  ;;  %v6850_v42 = vld [vmem:[%s11779_s13] sm:$0xff] }
 0x4e9   : > { %3906 = vrot.lane.b32.xlu0 %v11881_v26, %s8583_s23 }
 0x4eb   : > { %3908 = vrot.lane.b32.xlu1 %v11882_v40, %s8583_s23  ;;  %v8498_v40 = vld [vmem:[%s11775_s9] sm:$0xff]  }
 0x4ed   : > { %3910 = vrot.lane.b32.xlu0 %v11883_v1, %s8583_s23  ;;  %v8501_v1 = vld [vmem:[%s11775_s9 + $0x48] sm:$0xff]  }
 0x4ef   : > { %3912 = vrot.lane.b32.xlu1 %v11884_v31, %s8583_s23 }
 0x4f1   : > { %3914 = vrot.lane.b32.xlu0 %v11885_v41, %s8583_s23 }
 0x4f3   : > { %3916 = vrot.lane.b32.xlu1 %v11886_v55, %s8583_s23 }
 0x4f5   : > { %3918 = vrot.lane.b32.xlu0 %v11887_v10, %s8583_s23 }
 0x4f7   : > { %6864 = vperm.xlu1 %8238, %v6850_v42  }
 0x4f9   : > { %6869 = vperm.xlu0 %8237, %v6851_v24  }
 0x4fb   : > { %6874 = vperm.xlu1 %8238, %v6852_v19  }
 0x4fd   : > { %6879 = vperm.xlu0 %8237, %v6853_v43  }
 0x4ff   : > { %6884 = vperm.xlu1 %8238, %v6854_v34   ;;  %v8499_v34 = vld [vmem:[%s11775_s9 + $0x130] sm:$0xff]  }
 0x500   : > { %v4976_v28 = vpop.permute.xlu0 %4975 }
 0x501   : > { %v4999_v23 = vrot.slane %v4976_v28, 4  ;;  %6889 = vperm.xlu0 %8237, %v6855_v14  }
 0x503   : > { %v5011_v56 = vsel %vm1682_vm11, %v4999_v23, %v4976_v28  ;;  %v4978_v30 = vpop.permute.xlu1 %4977  ;;  %6894 = vperm.xlu1 %8238, %v6856_v51   ;;  %v8503_v51 = vld [vmem:[%s11775_s9 + $0x178] sm:$0xff]  }
 0x504   : > { %5036 = vst.msk [vmem:[#allocation4 + $0x30] sm:$0xff] %vm10878_vm4, %v5011_v56  ;;  %v5000_v3 = vrot.slane %v4978_v30, 4 }
 0x505   : > { %6899 = vperm.xlu0 %8237, %v6857_v61  }
 0x506   : > { %v5012_v45 = vsel %vm1682_vm11, %v5000_v3, %v4978_v30  ;;  %v8502_v30 = vld [vmem:[%s11775_s9 + $0x8] sm:$0xff]  }
 0x507   : > { %5037 = vst.msk [vmem:[#allocation4 + $0x3c] sm:$0xff] %vm10878_vm4, %v5012_v45  ;;  %6904 = vperm.xlu1 %8238, %v6858_v25   ;;  %v8505_v25 = vld [vmem:[%s11775_s9 + $0x50] sm:$0xff]  }
 0x508   : > { %v4980_v17 = vpop.permute.xlu0 %4979 }
 0x509   : > { %v5001_v63 = vrot.slane %v4980_v17, 4  ;;  %6909 = vperm.xlu0 %8237, %v6859_v59  }
 0x50b   : > { %v5013_v32 = vsel %vm1682_vm11, %v5001_v63, %v4980_v17  ;;  %6914 = vperm.xlu1 %8238, %v6860_v58   ;;  %v8504_v58 = vld [vmem:[%s11775_s9 + $0x138] sm:$0xff]  }
 0x50c   : > { %5038 = vst.msk [vmem:[#allocation4 + $0x48] sm:$0xff] %vm10878_vm4, %v5013_v32  ;;  %v5110_v4 = vpop.permute.xlu0 %5109  ;;  %v8508_v32 = vld [vmem:[%s11775_s9 + $0x10] sm:$0xff]  }
 0x50d   : > { %v5134_v54 = vrot.slane %v5110_v4, 4  ;;  %6919 = vperm.xlu0 %8237, %v6861_v60   ;;  %v5112_v48 = vpop.permute.xlu1 %5111 }
 0x50e   : > { %v5135_v11 = vrot.slane %v5112_v48, 4  ;;  %v10931_v7 = vld [vmem:[#allocation4 + $0x30] ss:$12 sps:$4 sm:$0xff]  }
 0x50f   : > { %v5148_v57 = vsel %vm11894_vm14, %v5134_v54, %v5110_v4  ;;  %v8510_v4 = vld [vmem:[%s11775_s9 + $0x58] sm:$0xff]   ;;  %v8511_v54 = vld [vmem:[%s11775_s9 + $0x180] sm:$0xff]   ;;  %vm11900_vm14 = vmmov %vm11899_vm2 }
 0x510   : > { %5183 = vst.msk [vmem:[#allocation4 + $0x34] sm:$0xff] %vm10908_vm9, %v5148_v57  ;;  %v5149_v22 = vsel %vm11895_vm15, %v5135_v11, %v5112_v48  ;;  %v4984_v12 = vpop.permute.xlu0 %4983  ;;  %vm11901_vm15 = vsmask.f32 3328 }
 0x511   : > { %5184 = vst.msk [vmem:[#allocation4 + $0x40] sm:$0xff] %vm10908_vm9, %v5149_v22  ;;  %v5003_v8 = vrot.slane %v4984_v12, 4  ;;  %v4982_v16 = vpop.permute.xlu1 %4981 }
 0x512   : > { %v5002_v29 = vrot.slane %v4982_v16, 4 }
 0x513   : > { %v5015_v38 = vsel %vm1682_vm11, %v5003_v8, %v4984_v12 }
 0x514   : > { %5040 = vst.msk [vmem:[#allocation4 + $0x60] sm:$0xff] %vm10878_vm4, %v5015_v38  ;;  %v5014_v53 = vsel %vm1682_vm11, %v5002_v29, %v4982_v16  ;;  %v5114_v47 = vpop.permute.xlu0 %5113 }
 0x515   : > { %5039 = vst.msk [vmem:[#allocation4 + $0x54] sm:$0xff] %vm10878_vm4, %v5014_v53  ;;  %v5136_v21 = vrot.slane %v5114_v47, 4  ;;  %v5116_v13 = vpop.permute.xlu1 %5115  ;;  %v8513_v53 = vld [vmem:[%s11775_s9 + $0x140] sm:$0xff]  }
 0x516   : > { %v5137_v33 = vrot.slane %v5116_v13, 4 }
 0x517   : > { %v5150_v35 = vsel %vm11896_vm6, %v5136_v21, %v5114_v47  ;;  %vm11075_vm6 = vmand %vm3779_vm12, %vm11901_vm15 }
 0x518   : > { %5185 = vst.msk [vmem:[#allocation4 + $0x4c] sm:$0xff] %vm10908_vm9, %v5150_v35  ;;  %v5151_v50 = vsel %vm11897_vm13, %v5137_v33, %v5116_v13  ;;  %v4988_v20 = vpop.permute.xlu0 %4987  ;;  %v10933_v36 = vld [vmem:[#allocation4 + $0x34] ss:$12 sps:$4 sm:$0xff]   ;;  %v10937_v0 = vld [vmem:[#allocation4 + $0x38] ss:$12 sps:$4 sm:$0xff]   ;;  %vm11904_vm12 = vmmov %vm11899_vm2 }
 0x519   : > { %5186 = vst.msk [vmem:[#allocation4 + $0x58] sm:$0xff] %vm10908_vm9, %v5151_v50  ;;  %v5005_v62 = vrot.slane %v4988_v20, 4  ;;  %v4986_v27 = vpop.permute.xlu1 %4985  ;;  %5555 = vmatprep.mubr.bf16.mxu0 %v10933_v36  ;;  %8116 = vmatprep.mubr.msk.bf16.mxu1 %vm1185_vm10, %v10937_v0  ;;  %v11798_v23 = vrot.slane %v10937_v0, 2  ;;  %v8518_v13 = vld [vmem:[%s11775_s9 + $0x188] sm:$0xff]   ;;  %vm5197_vm13 = vsmask.f32 7424 }
 0x51a   : > { %v5004_v15 = vrot.slane %v4986_v27, 4  ;;  %5556 = vmatmul.mubr.bf16.vlgmr.msra.gmra.mrb[120].mxu0 %v10931_v7  ;;  %vm11105_vm15 = vmand %vm3343_vm1, %vm5197_vm13 }
 0x51b   : > { %v5017_v18 = vsel %vm1682_vm11, %v5005_v62, %v4988_v20  ;;  %8053 = vmatpush3.bf16.msra.mxu0 %v8488_v49  ;;  %v8512_v49 = vld [vmem:[%s11775_s9 + $0x18] sm:$0xff]   ;;  %v8514_v20 = vld [vmem:[%s11775_s9 + $0x60] sm:$0xff]  }
 0x51c   : > { %5042 = vst.msk [vmem:[#allocation4 + $0x78] sm:$0xff] %vm10878_vm4, %v5017_v18  ;;  %v5016_v6 = vsel %vm1682_vm11, %v5004_v15, %v4986_v27  ;;  %v5118_v44 = vpop.permute.xlu0 %5117  ;;  %8054 = vmatprep.subr.bf16.mxu0 %v8492_v37  ;;  %v8520_v37 = vld [vmem:[%s11775_s9 + $0x148] sm:$0xff]  }
 0x51d   : > { %5041 = vst.msk [vmem:[#allocation4 + $0x6c] sm:$0xff] %vm10878_vm4, %v5016_v6  ;;  %v5138_v46 = vrot.slane %v5118_v44, 4  ;;  %v5120_v5 = vpop.permute.xlu1 %5119  ;;  %v8530_v6 = vld [vmem:[%s11775_s9 + $0x38] sm:$0xff]  }
 0x51e   : > { %v5139_v26 = vrot.slane %v5120_v5, 4 }
 0x51f   : > { %v5152_v31 = vsel %vm11880_vm5, %v5138_v46, %v5118_v44  ;;  %v10965_v41 = vld [vmem:[#allocation4 + $0x48] sm:$0xff]  ;;  %8055 = vmatpush3.bf16.msra.mxu0 %v8493_v2  ;;  %vm5173_vm5 = vcmask 1043971   ;;  %v8524_v44 = vld [vmem:[%s11775_s9 + $0x190] sm:$0xff]  }
 0x520   : > { %5187 = vst.msk [vmem:[#allocation4 + $0x64] sm:$0xff] %vm10908_vm9, %v5152_v31  ;;  %v5153_v55 = vsel %vm11898_vm8, %v5139_v26, %v5120_v5  ;;  %v10970_v42 = vld [vmem:[#allocation4 + $0x54] sm:$0xff]  ;;  %v10972_v10 = vld [vmem:[#allocation4 + $0x50] ss:$12 sps:$4 sm:$0xff]   ;;  %8056 = vmatprep.subr.bf16.mxu0 %v8495_v52  ;;  %vm5176_vm8 = vsmask.f32 7966  ;;  %vm11126_vm13 = vmand %vm5173_vm5, %vm1583_vm3 }
 0x521   : > { %5188 = vst.msk [vmem:[#allocation4 + $0x70] sm:$0xff] %vm10908_vm9, %v5153_v55  ;;  %v4990_v24 = vpop.permute.xlu1 %4989  ;;  %v10978_v19 = vcombine.high %v10965_v41, %v10970_v42  ;;  %v10982_v43 = vcombine.low %v10965_v41, %v10970_v42  ;;  %8117 = vmatmul.mubr.msk.bf16.vlgmr.msra.gmra.mrb[120].mxu1 %vm1185_vm10, %v10972_v10  ;;  %v5719_v61 = vrot.slane %v10972_v10, 2  ;;  %v8515_v52 = vld [vmem:[%s11775_s9 + $0x20] sm:$0xff]   ;;  %v8521_v26 = vld [vmem:[%s11775_s9 + $0x68] sm:$0xff]   ;;  %vm5199_vm3 = vmor %vm11105_vm15, %vm11075_vm6  ;;  %vm11915_vm6 = vcmask 1044224  }
 0x522   : > { %v5006_v14 = vrot.slane %v4990_v24, 4  ;;  %v5122_v28 = vpop.permute.xlu0 %5121  ;;  %7993 = vmatpush3.bf16.msra.mxu1 %v8498_v40 }
 0x523   : > { %v5140_v56 = vrot.slane %v5122_v28, 4  ;;  %5563 = vmatprep.mubr.bf16.mxu0 %v10978_v19  ;;  %7994 = vmatprep.subr.bf16.mxu1 %v8501_v1  ;;  %v11008_v45 = vsel %vm1854_vm0, %v11798_v23, %v5719_v61 }
 0x524   : > { %v5018_v3 = vsel %vm1682_vm11, %v5006_v14, %v4990_v24  ;;  %5564 = vmatmul.mubr.bf16.gmra.mrb[124].mxu0 %v10982_v43 }
 0x525   : > { %5043 = vst.msk [vmem:[#allocation4 + $0x84] sm:$0xff] %vm10878_vm4, %v5018_v3  ;;  %v5154_v59 = vsel %vm11899_vm2, %v5140_v56, %v5122_v28  ;;  %v5124_v17 = vpop.permute.xlu1 %5123  ;;  %8057 = vmatpush3.bf16.msra.mxu0 %v8499_v34  ;;  %vm5175_vm2 = vcmask 261127   ;;  %v8528_v28 = vld [vmem:[%s11775_s9 + $0x150] sm:$0xff]   ;;  %v8534_v56 = vld [vmem:[%s11775_s9 + $0x198] sm:$0xff]  }
 0x526   : > { %5189 = vst.msk [vmem:[#allocation4 + $0x7c] sm:$0xff] %vm10908_vm9, %v5154_v59  ;;  %v5141_v63 = vrot.slane %v5124_v17, 4  ;;  %v4994_v60 = vpop.permute.xlu0 %4993  ;;  %8058 = vmatprep.subr.bf16.mxu0 %v8503_v51  ;;  %7995 = vmatpush3.bf16.msra.mxu1 %v8502_v30  ;;  %v8522_v59 = vld [vmem:[%s11775_s9 + $0x28] sm:$0xff]  }
 0x527   : > { %v5008_v48 = vrot.slane %v4994_v60, 4  ;;  %v11027_v11 = vld [vmem:[#allocation4 + $0x60] sm:$0xff]  ;;  %7996 = vmatprep.subr.bf16.mxu1 %v8505_v25 }
 0x528   : > { %v5155_v57 = vsel %vm11900_vm14, %v5141_v63, %v5124_v17  ;;  %v11030_v22 = vld [vmem:[#allocation4 + $0x6c] sm:$0xff]  ;;  %v11032_v12 = vld [vmem:[#allocation4 + $0x68] ss:$12 sps:$4 sm:$0xff]   ;;  %vm11905_vm14 = vmmov %vm11904_vm12 }
 0x529   : > { %5190 = vst.msk [vmem:[#allocation4 + $0x88] sm:$0xff] %vm10908_vm9, %v5155_v57  ;;  %v5020_v8 = vsel %vm1682_vm11, %v5008_v48, %v4994_v60  ;;  %v4992_v16 = vpop.permute.xlu1 %4991  ;;  %v11039_v29 = vcombine.high %v11027_v11, %v11030_v22  ;;  %v11043_v38 = vcombine.low %v11027_v11, %v11030_v22  ;;  %8059 = vmatpush3.bf16.msra.mxu0 %v8504_v58  ;;  %v5725_v33 = vrot.slane %v11032_v12, 2  ;;  %v8523_v63 = vld [vmem:[%s11775_s9 + $0x70] sm:$0xff]   ;;  %vm11912_vm5 = vmmov %vm11905_vm14 }
 0x52a   : > { %5045 = vst.msk [vmem:[#allocation4 + $0x9c] sm:$0xff] %vm10878_vm4, %v5020_v8  ;;  %v5007_v47 = vrot.slane %v4992_v16, 4  ;;  %v4998_v21 = vpop.permute.xlu0 %4997  ;;  %8120 = vmatprep.mubr.msk.bf16.mxu1 %vm1185_vm10, %v11032_v12  ;;  %8060 = vmatprep.subr.bf16.mxu0 %v8511_v54  ;;  %v8535_v54 = vld [vmem:[%s11775_s9 + $0x158] sm:$0xff]  }
 0x52b   : > { %v5010_v35 = vrot.slane %v4998_v21, 4  ;;  %5571 = vmatprep.mubr.bf16.mxu0 %v11039_v29  ;;  %7997 = vmatpush3.bf16.msra.mxu1 %v8508_v32  ;;  %v11085_v2 = vsel %vm1854_vm0, %v5719_v61, %v5725_v33  ;;  %v5179_v8 = vld [vmem:[#allocation4 + $0x28] sm:$0x88] }
 0x52c   : > { %v5019_v50 = vsel %vm1682_vm11, %v5007_v47, %v4992_v16  ;;  %5572 = vmatmul.mubr.bf16.gmra.mrb[128].mxu0 %v11043_v38  ;;  %7998 = vmatprep.subr.bf16.mxu1 %v8510_v4  ;;  %v8529_v47 = vld [vmem:[%s11775_s9 + $0x78] sm:$0xff]  }
 0x52d   : > { %5044 = vst.msk [vmem:[#allocation4 + $0x90] sm:$0xff] %vm10878_vm4, %v5019_v50  ;;  %v5022_v62 = vsel %vm1682_vm11, %v5010_v35, %v4998_v21  ;;  %v5126_v27 = vpop.permute.xlu1 %5125  ;;  %8061 = vmatpush3.bf16.msra.mxu0 %v8513_v53  ;;  %v11087_v5 = vld [vmem:[#allocation4 + $0x78] sm:$0xff]  ;;  %v8527_v53 = vld [vmem:[%s11775_s9 + $0x30] sm:$0xff]  }
 0x52e   : > { %5047 = vst.msk [vmem:[#allocation4 + $0xb4] sm:$0xff] %vm10878_vm4, %v5022_v62  ;;  %v5142_v15 = vrot.slane %v5126_v27, 4  ;;  %v5128_v18 = vpop.permute.xlu0 %5127  ;;  %8062 = vmatprep.subr.bf16.mxu0 %v8518_v13 }
 0x52f   : > { %v5143_v46 = vrot.slane %v5128_v18, 4  ;;  %7999 = vmatpush3.bf16.msra.mxu1 %v8512_v49 }
 0x530   : > { %v5156_v40 = vsel %vm11904_vm12, %v5142_v15, %v5126_v27  ;;  %v11096_v1 = vld [vmem:[#allocation4 + $0x84] sm:$0xff]  ;;  %v11098_v31 = vld [vmem:[#allocation4 + $0x80] ss:$12 sps:$4 sm:$0xff]   ;;  %8000 = vmatprep.subr.bf16.mxu1 %v8514_v20  ;;  %vm11137_vm12 = vmand %vm5175_vm2, %vm5176_vm8 }
 0x531   : > { %5191 = vst.msk [vmem:[#allocation4 + $0x94] sm:$0xff] %vm10908_vm9, %v5156_v40  ;;  %v5157_v55 = vsel %vm11905_vm14, %v5143_v46, %v5128_v18  ;;  %v4996_v10 = vpop.permute.xlu1 %4995  ;;  %v11111_v34 = vcombine.high %v11087_v5, %v11096_v1  ;;  %v11115_v14 = vcombine.low %v11087_v5, %v11096_v1  ;;  %8063 = vmatpush3.bf16.msra.mxu0 %v8520_v37  ;;  %v5731_v30 = vrot.slane %v11098_v31, 2  ;;  %vm5178_vm8 = vmor %vm11137_vm12, %vm11126_vm13 }
 0x532   : > { %5192 = vst.msk [vmem:[#allocation4 + $0xa0] sm:$0xff] %vm10908_vm9, %v5157_v55  ;;  %v5009_v51 = vrot.slane %v4996_v10, 4  ;;  %8121 = vmatmul.mubr.msk.bf16.gmra.mrb[124].mxu1 %vm1185_vm10, %v11098_v31  ;;  %8064 = vmatprep.subr.bf16.mxu0 %v8524_v44  ;;  %vm11193_vm2 = vmor %vm3343_vm1, %vm11915_vm6  ;;  %v7779_v31 = vcombine.high %v10970_v42, %v11027_v11 }
 0x533   : > { %v5132_v3 = vpop.permute.xlu0 %5131  ;;  %5579 = vmatprep.mubr.bf16.mxu0 %v11111_v34  ;;  %8001 = vmatpush3.bf16.msra.mxu1 %v8515_v52  ;;  %v11154_v60 = vsel %vm1854_vm0, %v5725_v33, %v5731_v30  ;;  %v5729_v20 = vrot.slane %v11111_v34, 2 }
 0x534   : > { %v5021_v17 = vsel %vm1682_vm11, %v5009_v51, %v4996_v10  ;;  %v5145_v58 = vrot.slane %v5132_v3, 4  ;;  %5580 = vmatmul.mubr.bf16.gmra.mrb[132].mxu0 %v11115_v14  ;;  %8002 = vmatprep.subr.bf16.mxu1 %v8521_v26  ;;  %v11223_v26 = vld [vmem:[%s11775_s9 + $0x80] sm:$0xff]  }
 0x535   : > { %5046 = vst.msk [vmem:[#allocation4 + $0xa8] sm:$0xff] %vm10878_vm4, %v5021_v17  ;;  %v5200_v32 = vld [vmem:[#allocation4 + $0xb8] sm:$0xff]  ;;  %v5130_v4 = vpop.permute.xlu1 %5129  ;;  %8065 = vmatpush3.bf16.msra.mxu0 %v8528_v28  ;;  %vm11913_vm4 = vmmov %vm11912_vm5 }
 0x536   : > { %v5159_v48 = vsel %vm11912_vm5, %v5145_v58, %v5132_v3  ;;  %v5144_v57 = vrot.slane %v5130_v4, 4  ;;  %8066 = vmatprep.subr.bf16.mxu0 %v8534_v56  ;;  %vm11918_vm14 = vmmov %vm11913_vm4  ;;  %v6045_v28 = vld [vmem:[#allocation4 + $0x3c] sm:$0xcc] }
 0x537   : > { %v5201_v12 = vsel %vm5199_vm3, %v5159_v48, %v5200_v32  ;;  %v5108_v16 = vpop.permute.xlu0 %5107  ;;  %8003 = vmatpush3.bf16.msra.mxu1 %v8522_v59  ;;  %v7776_v56 = vcombine.high %v6045_v28, %v10965_v41  ;;  %vm11919_vm1 = vmmov %vm11913_vm4 }
 0x538   : > { %5202 = vst [vmem:[#allocation4 + $0xb8] sm:$0xff] %v5201_v12  ;;  %v5158_v21 = vsel %vm11913_vm4, %v5144_v57, %v5130_v4  ;;  %v5133_v13 = vrot.slane %v5108_v16, 4  ;;  %v11183_v33 = vld [vmem:[#allocation4 + $0x90] sm:$0xff]  ;;  %8004 = vmatprep.subr.bf16.mxu1 %v8523_v63  ;;  %v6198_v63 = vrot.slane %v7779_v31, 2  ;;  %vm11922_vm15 = vmmov %vm11919_vm1 }
 0x539   : > { %5193 = vst.msk [vmem:[#allocation4 + $0xac] sm:$0xff] %vm10908_vm9, %v5158_v21  ;;  %v3284_v35 = vpop.permute.xlu1 %3283  ;;  %v11187_v49 = vld [vmem:[#allocation4 + $0x9c] sm:$0xff]  ;;  %v11189_v50 = vld [vmem:[#allocation4 + $0x98] ss:$12 sps:$4 sm:$0xff]   ;;  %8067 = vmatpush3.bf16.msra.mxu0 %v8535_v54  ;;  %v6197_v57 = vrot.slane %v7776_v56, 2  ;;  %vm11920_vm9 = vmmov %vm11919_vm1 }
 0x53a   : > { %11914 = vst [vmem:[#allocation6_spill] sm:$0xff] %v11189_v50  ;;  %v5147_v62 = vsel %vm11918_vm14, %v5133_v13, %v5108_v16  ;;  %v3307_v27 = vrot.slane %v3284_v35, 4  ;;  %v11200_v9 = vcombine.high %v11183_v33, %v11187_v49  ;;  %v11204_v37 = vcombine.low %v11183_v33, %v11187_v49  ;;  %8144 = vmatprep.subr.bf16.mxu0 %v11169_v39  ;;  %v8531_v12 = vld [vmem:[#allocation4 + $0x18] ss:$12 sps:$4 sm:$0xfc]   ;;  %vm11923_vm13 = vmmov %vm11919_vm1 }
 0x53b   : > { %v5180_v15 = vsel %vm5178_vm8, %v5147_v62, %v5179_v8  ;;  %v3286_v18 = vpop.permute.xlu0 %3285  ;;  %8124 = vmatprep.mubr.msk.bf16.mxu1 %vm1185_vm10, %v11189_v50  ;;  %8005 = vmatpush3.bf16.msra.mxu1 %v8527_v53  ;;  %v11797_v44 = vrot.slane %v11189_v50, 2  ;;  %v5710_v8 = vrot.slane %v10933_v36, 2  ;;  %v6199_v62 = vsel %vm1854_vm0, %v6197_v57, %v6198_v63  ;;  %vm11924_vm12 = vmmov %vm11919_vm1  ;;  %v11492_v50 = vld [vmem:[#allocation4 + $0x8c] ss:$12 sps:$4 sm:$0xff]  }
 0x53c   : > { %5181 = vst [vmem:[#allocation4 + $0x28] sm:$0x88] %v5180_v15  ;;  %v3319_v46 = vsel %vm1682_vm11, %v3307_v27, %v3284_v35  ;;  %v3308_v52 = vrot.slane %v3286_v18, 4  ;;  %5587 = vmatprep.mubr.bf16.mxu0 %v11200_v9  ;;  %8006 = vmatprep.subr.bf16.mxu1 %v8529_v47  ;;  %v7778_v47 = vcombine.low %v10970_v42, %v11027_v11  ;;  %v5706_v27 = vrot.slane %v8531_v12, 2  ;;  %vm11925_vm3 = vmmov %vm11919_vm1 }
 0x53d   : > { %3345 = vst.msk [vmem:[%s8901_s22] sm:$0xff] %vm11193_vm2, %v3319_v46  ;;  %5588 = vmatmul.mubr.bf16.gmra.mrb[136].mxu0 %v11204_v37  ;;  %v3288_v40 = vpop.permute.xlu1 %3287  ;;  %v11234_v55 = vsel %vm1854_vm0, %v5731_v30, %v11797_v44  ;;  %v7775_v35 = vcombine.low %v6045_v28, %v10965_v41  ;;  %v7782_v36 = vcombine.high %v11030_v22, %v11087_v5  ;;  %v5717_v15 = vrot.slane %v10978_v19, 2  ;;  %v8538_v19 = vld [vmem:[%s11775_s9 + $0x88] sm:$0xff]   ;;  %vm11926_vm5 = vmmov %vm11919_vm1 }
 0x53e   : > { %v3320_v10 = vsel %vm1682_vm11, %v3308_v52, %v3286_v18  ;;  %v3309_v24 = vrot.slane %v3288_v40, 4  ;;  %v7785_v57 = vcombine.high %v11096_v1, %v11183_v33  ;;  %v5723_v12 = vrot.slane %v11039_v29, 2  ;;  %vm11927_vm8 = vmmov %vm11919_vm1 }
 0x53f   : > { %3346 = vst.msk [vmem:[%s8901_s22 + $0xc] sm:$0xff] %vm11193_vm2, %v3320_v10  ;;  %v3290_v51 = vpop.permute.xlu0 %3289  ;;  %v11240_v61 = vld [vmem:[#allocation4 + $0xb4] sm:$0xff]  ;;  %8007 = vmatpush3.bf16.msra.mxu1 %v8530_v6  ;;  %v5707_v6 = vrot.slane %v10931_v7, 2  ;;  %vm11928_vm4 = vmmov %vm11919_vm1 }
 0x540   : > { %v3321_v3 = vsel %vm1682_vm11, %v3309_v24, %v3288_v40  ;;  %v3310_v25 = vrot.slane %v3290_v51, 4  ;;  %v11244_v59 = vld [vmem:[#allocation4 + $0xa8] sm:$0xff]  ;;  %v8526_v30 = vld [vmem:[#allocation4 + $0xb0] ss:$12 sps:$4 sm:$0xff]   ;;  %8128 = vmatprep.subr.bf16.mxu1 %v11223_v26  ;;  %v6195_v40 = vrot.slane %v7778_v47, 2  ;;  %v6205_v24 = vrot.slane %v7782_v36, 2  ;;  %vm11929_vm6 = vmmov %vm11919_vm1 }
 0x541   : > { %3347 = vst.msk [vmem:[%s8901_s22 + $0x18] sm:$0xff] %vm11193_vm2, %v3321_v3  ;;  %v3292_v17 = vpop.permute.xlu1 %3291  ;;  %v7683_v58 = vcombine.high %v11244_v59, %v11240_v61  ;;  %8125 = vmatmul.mubr.msk.bf16.gmra.mrb[128].mxu1 %vm1185_vm10, %v8526_v30  ;;  %v7682_v48 = vcombine.low %v11244_v59, %v11240_v61  ;;  %v5708_v10 = vsel %vm1854_vm0, %v5706_v27, %v5707_v6  ;;  %v8539_v30 = vld [vmem:[%s11775_s9 + $0x1a8] sm:$0xff]   ;;  %v6211_v47 = vrot.slane %v7785_v57, 2 }
 0x542   : > { %v3322_v32 = vsel %vm1682_vm11, %v3310_v25, %v3290_v51  ;;  %v3311_v4 = vrot.slane %v3292_v17, 4  ;;  %v6194_v51 = vrot.slane %v7775_v35, 2  ;;  %v5718_v3 = vsel %vm1854_vm0, %v5710_v8, %v5717_v15 }
 0x543   : > { %3348 = vst.msk [vmem:[%s8901_s22 + $0x24] sm:$0xff] %vm11193_vm2, %v3322_v32  ;;  %v3294_v54 = vpop.permute.xlu0 %3293  ;;  %5595 = vmatprep.mubr.bf16.mxu0 %v7683_v58  ;;  %v8533_v21 = vld [vmem:[#allocation4 + $0x1c] ss:$12 sps:$4 sm:$0xfc]   ;;  %v5721_v27 = vrot.slane %v11043_v38, 2 }
 0x544   : > { %v3323_v16 = vsel %vm1682_vm11, %v3311_v4, %v3292_v17  ;;  %v3312_v53 = vrot.slane %v3294_v54, 4  ;;  %v5709_v11 = vrot.slane %v8533_v21, 2  ;;  %v6196_v32 = vsel %vm1854_vm0, %v6194_v51, %v6195_v40 }
 0x545   : > { %3349 = vst.msk [vmem:[%s8901_s22 + $0x30] sm:$0xff] %vm11193_vm2, %v3323_v16  ;;  %v3296_v13 = vpop.permute.xlu1 %3295  ;;  %5596 = vmatmul.mubr.bf16.gmra.mrb[140].mxu0 %v7682_v48  ;;  %v7781_v4 = vcombine.low %v11030_v22, %v11087_v5  ;;  %v6206_v48 = vsel %vm1854_vm0, %v6198_v63, %v6205_v24  ;;  %v5724_v21 = vsel %vm1854_vm0, %v5717_v15, %v5723_v12 }
 0x546   : > { %v3324_v18 = vsel %vm1682_vm11, %v3312_v53, %v3294_v54  ;;  %v3313_v42 = vrot.slane %v3296_v13, 4  ;;  %6403 = vmatprep.mubr.bf16.mxu0 %v6199_v62  ;;  %v5711_v31 = vsel %vm1854_vm0, %v5709_v11, %v5710_v8  ;;  %v5715_v54 = vrot.slane %v10982_v43, 2  ;;  %v6685_v11 = vld [vmem:[#allocation5 + $0x14] sm:$0xff] }
 0x547   : > { %3350 = vst.msk [vmem:[%s8901_s22 + $0x3c] sm:$0xff] %vm11193_vm2, %v3324_v18  ;;  %v3298_v41 = vpop.permute.xlu0 %3297  ;;  %5915 = vmatprep.mubr.bf16.mxu1 %v5711_v31  ;;  %v6203_v63 = vrot.slane %v7781_v4, 2  ;;  %v7784_v62 = vcombine.low %v11096_v1, %v11183_v33  ;;  %v6212_v18 = vsel %vm1854_vm0, %v6205_v24, %v6211_v47  ;;  %v7788_v15 = vcombine.high %v11187_v49, %v11244_v59  ;;  %v6709_v31 = vld [vmem:[#allocation5 + $0x15] sm:$0xff] }
 0x548   : > { %v3325_v46 = vsel %vm1682_vm11, %v3313_v42, %v3296_v13  ;;  %v3314_v52 = vrot.slane %v3298_v41, 4  ;;  %v5716_v53 = vsel %vm1854_vm0, %v5707_v6, %v5715_v54  ;;  %v6661_v42 = vld [vmem:[#allocation5 + $0x13] sm:$0xff]  ;;  %v5722_v33 = vsel %vm1854_vm0, %v5715_v54, %v5721_v27 }
 0x549   : > { %3351 = vst.msk [vmem:[%s8901_s22 + $0x48] sm:$0xff] %vm11193_vm2, %v3325_v46  ;;  %v3300_v7 = vpop.permute.xlu1 %3299  ;;  %5916 = vmatmul.mubr.bf16.vlgmr.msra.gmra.mrb[132].mxu1 %v5708_v10  ;;  %v6204_v35 = vsel %vm1854_vm0, %v6195_v40, %v6203_v63  ;;  %v11333_v1 = vrot.slane %v7784_v62, 2  ;;  %v6697_v46 = vadd.f32 %v6685_v11, %v6661_v42  ;;  %v5730_v40 = vsel %vm1854_vm0, %v5723_v12, %v5729_v20 }
 0x54a   : > { %v3326_v28 = vsel %vm1682_vm11, %v3314_v52, %v3298_v41  ;;  %v3315_v56 = vrot.slane %v3300_v7, 4  ;;  %8129 = vmatpush3.bf16.msra.mxu1 %v11223_v26  ;;  %5923 = vmatprep.mubr.bf16.mxu1 %v5718_v3  ;;  %v11336_v41 = vrot.slane %v7788_v15, 2  ;;  %v5727_v24 = vrot.slane %v11115_v14, 2 }
 0x54b   : > { %3352 = vst.msk [vmem:[%s8901_s22 + $0x54] sm:$0xff] %vm11193_vm2, %v3326_v28  ;;  %v3302_v25 = vpop.permute.xlu0 %3301  ;;  %8130 = vmatprep.subr.bf16.mxu1 %v8538_v19  ;;  %v6210_v28 = vsel %vm1854_vm0, %v6203_v63, %v11333_v1  ;;  %v7787_v51 = vcombine.low %v11187_v49, %v11244_v59  ;;  %v11360_v59 = vld [vmem:[#allocation4 + $0xa8] sm:$0x33] }
 0x54c   : > { %v3327_v17 = vsel %vm1682_vm11, %v3315_v56, %v3300_v7  ;;  %v3316_v58 = vrot.slane %v3302_v25, 4 }
 0x54d   : > { %3353 = vst.msk [vmem:[%s8901_s22 + $0x60] sm:$0xff] %vm11193_vm2, %v3327_v17  ;;  %v3304_v26 = vpop.permute.xlu1 %3303  ;;  %6404 = vmatmul.mubr.bf16.vlgmr.msra.gmra.mrb[144].mxu0 %v6196_v32  ;;  %v11350_v17 = vld [vmem:[#allocation4 + $0xc0] sm:$0xff]  ;;  %v11370_v63 = vrot.slane %v7787_v51, 2 }
 0x54e   : > { %v3328_v8 = vsel %vm1682_vm11, %v3316_v58, %v3302_v25  ;;  %v3317_v16 = vrot.slane %v3304_v26, 4  ;;  %6411 = vmatprep.mubr.bf16.mxu0 %v6206_v48  ;;  %8145 = vmatpush3.bf16.msra.mxu0 %v11169_v39  ;;  %v6721_v58 = vadd.f32 %v6709_v31, %v6697_v46  ;;  %v7791_v49 = vcombine.high %v11240_v61, %v11350_v17 }
 0x54f   : > { %3354 = vst.msk [vmem:[%s8901_s22 + $0x6c] sm:$0xff] %vm11193_vm2, %v3328_v8  ;;  %v3306_v43 = vpop.permute.xlu0 %3305  ;;  %8131 = vmatpush3.bf16.msra.mxu1 %v8538_v19  ;;  %8146 = vmatprep.subr.bf16.mxu0 %v8539_v30  ;;  %v6069_v8 = vld [vmem:[#allocation4 + $0xcc] sm:$0x33] }
 0x550   : > { %v3329_v22 = vsel %vm1682_vm11, %v3317_v16, %v3304_v26  ;;  %v3318_v5 = vrot.slane %v3306_v43, 4  ;;  %v5735_v26 = vrot.slane %v11200_v9, 2  ;;  %v11388_v15 = vrot.slane %v7791_v49, 2 }
 0x551   : > { %3355 = vst.msk [vmem:[%s8901_s22 + $0x78] sm:$0xff] %vm11193_vm2, %v3329_v22  ;;  %v3897_v29 = vpop.permute.xlu1 %3896  ;;  %5924 = vmatmul.mubr.bf16.gmra.mrb[136].mxu1 %v5716_v53  ;;  %v7794_v42 = vcombine.high %v6069_v8, %v6069_v8  ;;  %v7793_v11 = vcombine.low %v6069_v8, %v6069_v8 }
 0x552   : > { %v3330_v39 = vsel %vm1682_vm11, %v3318_v5, %v3306_v43  ;;  %3932 = vst.msk [vmem:[#allocation5 + $0x20] sm:$0xff] %vm11919_vm1, %v3897_v29  ;;  %8147 = vmatpush3.bf16.msra.mxu0 %v8539_v30  ;;  %5931 = vmatprep.mubr.bf16.mxu1 %v5724_v21  ;;  %vm11921_vm11 = vmmov %vm11919_vm1  ;;  %v6218_v30 = vsel %vm1854_vm0, %v6211_v47, %v11336_v41 }
 0x553   : > { %3356 = vst.msk [vmem:[%s8901_s22 + $0x84] sm:$0xff] %vm11193_vm2, %v3330_v39  ;;  %v3899_v13 = vpop.permute.xlu0 %3898  ;;  %v5728_v5 = vsel %vm1854_vm0, %v5721_v27, %v5727_v24  ;;  %v7713_v39 = vcombine.high %v11360_v59, %v11360_v59  ;;  %v5736_v27 = vsel %vm1854_vm0, %v5729_v20, %v5735_v26  ;;  %vm11930_vm2 = vmmov %vm11919_vm1 }
 0x554   : > { %3933 = vst.msk [vmem:[#allocation5 + $0x28] sm:$0xff] %vm11920_vm9, %v3899_v13 }
 0x555   : > { %v3901_v36 = vpop.permute.xlu1 %3900  ;;  %6412 = vmatmul.mubr.bf16.gmra.mrb[148].mxu0 %v6204_v35 }
 0x556   : > { %3934 = vst.msk [vmem:[#allocation5 + $0x30] sm:$0xff] %vm11921_vm11, %v3901_v36  ;;  %6419 = vmatprep.mubr.bf16.mxu0 %v6212_v18 }
 0x557   : > { %v3903_v6 = vpop.permute.xlu0 %3902 }
 0x558   : > { %3935 = vst.msk [vmem:[#allocation5 + $0x38] sm:$0xff] %vm11922_vm15, %v3903_v6 }
 0x559   : > { %v3905_v38 = vpop.permute.xlu1 %3904  ;;  %v6662_v52 = vld [vmem:[#allocation5 + $0x1b] sm:$0xff]  ;;  %5932 = vmatmul.mubr.bf16.gmra.mrb[140].mxu1 %v5722_v33 }
 0x55a   : > { %3936 = vst.msk [vmem:[#allocation5 + $0x40] sm:$0xff] %vm11923_vm13, %v3905_v38  ;;  %v6686_v19 = vld [vmem:[#allocation5 + $0x1c] sm:$0xff]  ;;  %5939 = vmatprep.mubr.bf16.mxu1 %v5730_v40 }
 0x55b   : > { %v3907_v7 = vpop.permute.xlu0 %3906  ;;  %v6698_v10 = vadd.f32 %v6686_v19, %v6662_v52  ;;  %v6663_v56 = vld [vmem:[#allocation5 + $0x23] sm:$0xff] }
 0x55c   : > { %3937 = vst.msk [vmem:[#allocation5 + $0x48] sm:$0xff] %vm11924_vm12, %v3907_v7  ;;  %v6687_v3 = vld [vmem:[#allocation5 + $0x24] sm:$0xff]  ;;  %v11395_v40 = vld [vmem:[#allocation4 + $0x44] ss:$12 sps:$4 sm:$0xfc]   ;;  %v11799_v7 = vrot.slane %v11204_v37, 2 }
 0x55d   : > { %v3909_v25 = vpop.permute.xlu1 %3908  ;;  %6420 = vmatmul.mubr.bf16.gmra.mrb[152].mxu0 %v6210_v28  ;;  %v11352_v32 = vld [vmem:[#allocation5 + $0x2b] sm:$0xff]  ;;  %v6699_v54 = vadd.f32 %v6687_v3, %v6663_v56  ;;  %v6733_v48 = vld [vmem:[#allocation5 + $0x1f] sm:$0xff]  ;;  %v7790_v28 = vcombine.low %v11240_v61, %v11350_v17  ;;  %v6229_v61 = vrot.slane %v7794_v42, 2  ;;  %v7712_v42 = vcombine.low %v11360_v59, %v11360_v59 }
 0x55e   : > { %v11354_v4 = vld [vmem:[#allocation5 + $0x2c] sm:$0xff]  ;;  %3938 = vst.msk [vmem:[#allocation5 + $0x50] sm:$0xff] %vm11925_vm3, %v3909_v25  ;;  %6427 = vmatprep.mubr.bf16.mxu0 %v6218_v30  ;;  %v6710_v57 = vld [vmem:[#allocation5 + $0x1d] sm:$0xff]  ;;  %v6745_v21 = vadd.f32 %v6733_v48, %v6721_v58  ;;  %v6224_v30 = vsel %vm1854_vm0, %v11336_v41, %v11388_v15  ;;  %v5741_v58 = vrot.slane %v7713_v39, 2 }
 0x55f   : > { %v3911_v12 = vpop.permute.xlu0 %3910  ;;  %v6700_v16 = vadd.f32 %v11354_v4, %v11352_v32  ;;  %v11364_v43 = vld [vmem:[#allocation5 + $0x33] sm:$0xff]  ;;  %v6722_v22 = vadd.f32 %v6710_v57, %v6698_v10  ;;  %v6711_v53 = vld [vmem:[#allocation5 + $0x25] sm:$0xff]  ;;  %v6216_v10 = vsel %vm1854_vm0, %v11333_v1, %v11370_v63  ;;  %v11419_v1 = vrot.slane %v7793_v11, 2 }
 0x560   : > { %3939 = vst.msk [vmem:[#allocation5 + $0x58] sm:$0xff] %vm11926_vm5, %v3911_v12  ;;  %v11372_v29 = vld [vmem:[#allocation5 + $0x34] sm:$0xff]  ;;  %v6734_v62 = vld [vmem:[#allocation5 + $0x27] sm:$0xff]  ;;  %v6723_v18 = vadd.f32 %v6711_v53, %v6699_v54  ;;  %v5742_v59 = vsel %vm1854_vm0, %v5735_v26, %v5741_v58 }
 0x561   : > { %v3913_v47 = vpop.permute.xlu1 %3912  ;;  %v11376_v13 = vld [vmem:[#allocation5 + $0x2d] sm:$0xff]  ;;  %v6701_v35 = vadd.f32 %v11372_v29, %v11364_v43  ;;  %v11380_v36 = vld [vmem:[#allocation5 + $0x3b] sm:$0xff]  ;;  %5940 = vmatmul.mubr.bf16.gmra.mrb[144].mxu1 %v5728_v5  ;;  %v6746_v34 = vadd.f32 %v6734_v62, %v6722_v22 }
 0x562   : > { %3940 = vst.msk [vmem:[#allocation5 + $0x60] sm:$0xff] %vm11927_vm8, %v3913_v47  ;;  %v11390_v6 = vld [vmem:[#allocation5 + $0x35] sm:$0xff]  ;;  %5947 = vmatprep.mubr.bf16.mxu1 %v5736_v27  ;;  %v6724_v52 = vadd.f32 %v11376_v13, %v6700_v16  ;;  %v6757_v51 = vld [vmem:[#allocation5 + $0x20] sm:$0xff]  ;;  %v6758_v12 = vld [vmem:[#allocation5 + $0x28] sm:$0xff]  ;;  %v11434_v27 = vrot.slane %v7790_v28, 2 }
 0x563   : > { %v11392_v38 = vld [vmem:[#allocation5 + $0x3c] sm:$0xff]  ;;  %v6735_v33 = vld [vmem:[#allocation5 + $0x2f] sm:$0xff]  ;;  %v3915_v46 = vpop.permute.xlu0 %3914  ;;  %v6725_v31 = vadd.f32 %v11390_v6, %v6701_v35  ;;  %v11409_v3 = vld [vmem:[#allocation5 + $0x44] sm:$0xff]  ;;  %v6769_v54 = vadd.f32 %v6757_v51, %v6745_v21  ;;  %v6770_v35 = vadd.f32 %v6758_v12, %v6746_v34 }
 0x564   : > { %v6702_v20 = vadd.f32 %v11392_v38, %v11380_v36  ;;  %v11400_v19 = vld [vmem:[#allocation5 + $0x43] sm:$0xff]  ;;  %3941 = vst.msk [vmem:[#allocation5 + $0x68] sm:$0xff] %vm11928_vm4, %v3915_v46  ;;  %v6747_v48 = vadd.f32 %v6735_v33, %v6723_v18  ;;  %v6736_v17 = vld [vmem:[#allocation5 + $0x37] sm:$0xff]  ;;  %v6222_v14 = vsel %vm1854_vm0, %v11370_v63, %v11434_v27 }
 0x565   : > { %v6737_v56 = vld [vmem:[#allocation5 + $0x3f] sm:$0xff]  ;;  %v3917_v25 = vpop.permute.xlu1 %3916  ;;  %6428 = vmatmul.mubr.bf16.gmra.mrb[156].mxu0 %v6216_v10  ;;  %v11416_v57 = vld [vmem:[#allocation5 + $0x4b] sm:$0xff]  ;;  %v6703_v41 = vadd.f32 %v11409_v3, %v11400_v19  ;;  %v6748_v53 = vadd.f32 %v6736_v17, %v6724_v52  ;;  %v5734_v10 = vsel %vm1854_vm0, %v5727_v24, %v11799_v7 }
 0x566   : > { %v11414_v49 = vld [vmem:[#allocation5 + $0x3d] sm:$0xff]  ;;  %3942 = vst.msk [vmem:[#allocation5 + $0x70] sm:$0xff] %vm11929_vm6, %v3917_v25  ;;  %6435 = vmatprep.mubr.bf16.mxu0 %v6224_v30  ;;  %v11424_v16 = vld [vmem:[#allocation5 + $0x4c] sm:$0xff]  ;;  %v6749_v21 = vadd.f32 %v6737_v56, %v6725_v31 }
 0x567   : > { %v6726_v8 = vadd.f32 %v11414_v49, %v6702_v20  ;;  %v3919_v22 = vpop.permute.xlu0 %3918  ;;  %v11426_v5 = vld [vmem:[#allocation4 + $0x20] ss:$12 sps:$4 sm:$0xfc]   ;;  %v11431_v18 = vld [vmem:[#allocation5 + $0x53] sm:$0xff]  ;;  %v6704_v31 = vadd.f32 %v11424_v16, %v11416_v57  ;;  %v6761_v24 = vld [vmem:[#allocation5 + $0x40] sm:$0xff] }
 0x568   : > { %v6781_v47 = vld [vmem:[#allocation5 + $0x21] sm:$0xff]  ;;  %3943 = vst.msk [vmem:[#allocation5 + $0x78] sm:$0xff] %vm11930_vm2, %v3919_v22  ;;  %v6782_v33 = vld [vmem:[#allocation5 + $0x29] sm:$0xff]  ;;  %v11443_v34 = vld [vmem:[#allocation5 + $0x54] sm:$0xff] }
 0x569   : > { %v11429_v62 = vld [vmem:[#allocation5 + $0x45] sm:$0xff]  ;;  %v6759_v46 = vld [vmem:[#allocation5 + $0x30] sm:$0xff]  ;;  %v6793_v28 = vadd.f32 %v6781_v47, %v6769_v54  ;;  %v11457_v17 = vld [vmem:[#allocation5 + $0x5b] sm:$0xff]  ;;  %5948 = vmatmul.mubr.bf16.gmra.mrb[148].mxu1 %v5734_v10  ;;  %v6705_v26 = vadd.f32 %v11443_v34, %v11431_v18  ;;  %v6794_v22 = vadd.f32 %v6782_v33, %v6770_v35 }
 0x56a   : > { %v11438_v11 = vld [vmem:[#allocation4 + $0x5c] ss:$12 sps:$4 sm:$0xff]   ;;  %v6727_v20 = vadd.f32 %v11429_v62, %v6703_v41  ;;  %v6771_v51 = vadd.f32 %v6759_v46, %v6747_v48  ;;  %v6739_v56 = vld [vmem:[#allocation5 + $0x4f] sm:$0xff]  ;;  %v11465_v58 = vld [vmem:[#allocation5 + $0x5c] sm:$0xff]  ;;  %5955 = vmatprep.mubr.bf16.mxu1 %v5742_v59  ;;  %v6773_v48 = vadd.f32 %v6761_v24, %v6749_v21  ;;  %v5712_v21 = vrot.slane %v11426_v5, 2 }
 0x56b   : > { %v6738_v52 = vld [vmem:[#allocation5 + $0x47] sm:$0xff]  ;;  %v11453_v25 = vld [vmem:[#allocation4 + $0x74] ss:$12 sps:$4 sm:$0xff]   ;;  %v6706_v63 = vadd.f32 %v11465_v58, %v11457_v17  ;;  %v6808_v35 = vadd.f32 %v6793_v28, %v11352_v32  ;;  %v6809_v32 = vadd.f32 %v6794_v22, %v11364_v43  ;;  %v11931_v43 = vrot.slane %v11204_v37, 2 }
 0x56c   : > { %v11455_v30 = vld [vmem:[#allocation5 + $0x4d] sm:$0xff]  ;;  %v6760_v12 = vld [vmem:[#allocation5 + $0x38] sm:$0xff]  ;;  %v6750_v41 = vadd.f32 %v6738_v52, %v6726_v8  ;;  %v11471_v10 = vld [vmem:[#allocation5 + $0x63] sm:$0xff]  ;;  %v6230_v8 = vsel %vm1854_vm0, %v11388_v15, %v6229_v61  ;;  %v5739_v52 = vrot.slane %v7712_v42, 2  ;;  %v6751_v44 = vadd.f32 %v6739_v56, %v6727_v20 }
 0x56d   : > { %v6728_v9 = vadd.f32 %v11455_v30, %v6704_v31  ;;  %v6772_v54 = vadd.f32 %v6760_v12, %v6748_v53  ;;  %v6783_v47 = vld [vmem:[#allocation5 + $0x31] sm:$0xff]  ;;  %v6762_v31 = vld [vmem:[#allocation5 + $0x48] sm:$0xff]  ;;  %6436 = vmatmul.mubr.bf16.gmra.mrb[160].mxu0 %v6222_v14  ;;  %v6741_v12 = vld [vmem:[#allocation5 + $0x5f] sm:$0xff]  ;;  %v6201_v42 = vrot.slane %v11438_v11, 2  ;;  %v6823_v22 = vadd.f32 %v6808_v35, %v11354_v4 }
 0x56e   : > { %v11467_v46 = vld [vmem:[#allocation5 + $0x55] sm:$0xff]  ;;  %v11476_v53 = vld [vmem:[#allocation5 + $0x64] sm:$0xff]  ;;  %v6795_v33 = vadd.f32 %v6783_v47, %v6771_v51  ;;  %6443 = vmatprep.mubr.bf16.mxu0 %v6230_v8  ;;  %v6774_v20 = vadd.f32 %v6762_v31, %v6750_v41  ;;  %v11488_v23 = vld [vmem:[#allocation5 + $0x6c] sm:$0xff]  ;;  %v6207_v47 = vrot.slane %v11453_v25, 2  ;;  %v11932_v25 = vrot.slane %v10937_v0, 2 }
 0x56f   : > { %v6740_v39 = vld [vmem:[#allocation5 + $0x57] sm:$0xff]  ;;  %v6729_v59 = vadd.f32 %v11467_v46, %v6705_v26  ;;  %v6707_v15 = vadd.f32 %v11476_v53, %v11471_v10  ;;  %v11484_v61 = vld [vmem:[#allocation5 + $0x6b] sm:$0xff]  ;;  %v6785_v14 = vld [vmem:[#allocation5 + $0x41] sm:$0xff]  ;;  %v6228_v0 = vsel %vm1854_vm0, %v11434_v27, %v11419_v1  ;;  %v6824_v4 = vadd.f32 %v6809_v32, %v11372_v29 }
 0x570   : > { %v11480_v24 = vld [vmem:[#allocation5 + $0x5d] sm:$0xff]  ;;  %v6752_v26 = vadd.f32 %v6740_v39, %v6728_v9  ;;  %v6763_v28 = vld [vmem:[#allocation5 + $0x50] sm:$0xff]  ;;  %v6797_v7 = vadd.f32 %v6785_v14, %v6773_v48  ;;  %v11494_v8 = vld [vmem:[#allocation5 + $0x65] sm:$0xff]  ;;  %v5714_v48 = vsel %vm1854_vm0, %v5712_v21, %v11932_v25  ;;  %v11933_v1 = vrot.slane %v11395_v40, 2 }
 0x571   : > { %v6784_v56 = vld [vmem:[#allocation5 + $0x39] sm:$0xff]  ;;  %v6730_v5 = vadd.f32 %v11480_v24, %v6706_v63  ;;  %v6775_v11 = vadd.f32 %v6763_v28, %v6751_v44  ;;  %v6753_v31 = vadd.f32 %v6741_v12, %v6729_v59  ;;  %v6786_v39 = vld [vmem:[#allocation5 + $0x49] sm:$0xff]  ;;  %v6731_v9 = vadd.f32 %v11494_v8, %v6707_v15  ;;  %v6787_v35 = vld [vmem:[#allocation5 + $0x51] sm:$0xff] }
 0x572   : > { %v6796_v51 = vadd.f32 %v6784_v56, %v6772_v54  ;;  %v6764_v41 = vld [vmem:[#allocation5 + $0x58] sm:$0xff]  ;;  %v6708_v63 = vadd.f32 %v11488_v23, %v11484_v61  ;;  %v5740_v54 = vsel %vm1854_vm0, %v11931_v43, %v5739_v52  ;;  %v6810_v44 = vadd.f32 %v6795_v33, %v11380_v36  ;;  %v6742_v56 = vld [vmem:[#allocation5 + $0x67] sm:$0xff]  ;;  %v6743_v59 = vld [vmem:[#allocation5 + $0x6f] sm:$0xff] }
 0x573   : > { %v11507_v12 = vld [vmem:[#allocation5 + $0x6d] sm:$0xff]  ;;  %5956 = vmatmul.mubr.bf16.gmra.mrb[152].mxu1 %v5740_v54  ;;  %v6776_v15 = vadd.f32 %v6764_v41, %v6752_v26  ;;  %v6798_v14 = vadd.f32 %v6786_v39, %v6774_v20  ;;  %v6754_v28 = vadd.f32 %v6742_v56, %v6730_v5  ;;  %v6213_v52 = vrot.slane %v11492_v50, 2  ;;  %v6765_v21 = vld [vmem:[#allocation5 + $0x60] sm:$0xff] }
 0x574   : > { %v6732_v37 = vadd.f32 %v11507_v12, %v6708_v63  ;;  %8132 = vmatprep.mubr.msk.bf16.mxu1 %vm1185_vm10, %v5714_v48  ;;  %v6811_v36 = vadd.f32 %v6796_v51, %v11400_v19  ;;  %v6812_v33 = vadd.f32 %v6797_v7, %v11416_v57  ;;  %v6777_v20 = vadd.f32 %v6765_v21, %v6753_v31  ;;  %v11518_v41 = vld [vmem:[#allocation4 + $0xa4] ss:$12 sps:$4 sm:$0xff]   ;;  %v6744_v63 = vld [vmem:[#allocation5 + $0x77] sm:$0xff] }
 0x575   : > { %v6799_v26 = vadd.f32 %v6787_v35, %v6775_v11  ;;  %v6755_v5 = vadd.f32 %v6743_v59, %v6731_v9  ;;  %6444 = vmatmul.mubr.bf16.gmra.mrb[164].mxu0 %v6228_v0  ;;  %v6838_v39 = vadd.f32 %v6823_v22, %v11376_v13  ;;  %v6202_v29 = vsel %vm1854_vm0, %v11933_v1, %v6201_v42  ;;  %v6766_v32 = vld [vmem:[#allocation5 + $0x68] sm:$0xff]  ;;  %v6788_v51 = vld [vmem:[#allocation5 + $0x59] sm:$0xff]  ;;  %v6767_v54 = vld [vmem:[#allocation5 + $0x70] sm:$0xff] }
 0x576   : > { %v6825_v19 = vadd.f32 %v6810_v44, %v11392_v38  ;;  %v6208_v27 = vsel %vm1854_vm0, %v6201_v42, %v6207_v47  ;;  %v11529_v7 = vld [vmem:[%s11777_s11] ss:$0 sm:$0xff]  ;;  %v6865_v57 = vpop.permute.xlu1 %6864  ;;  %8148 = vmatprep.mubr.msk.bf16.mxu0 %vm1185_vm10, %v6202_v29  ;;  %v6813_v13 = vadd.f32 %v6798_v14, %v11431_v18  ;;  %v6778_v40 = vadd.f32 %v6766_v32, %v6754_v28  ;;  %v6789_v25 = vld [vmem:[#allocation5 + $0x61] sm:$0xff]  ;;  %v6768_v14 = vld [vmem:[#allocation5 + $0x78] sm:$0xff] }
 0x577   : > { %v6800_v11 = vadd.f32 %v6788_v51, %v6776_v15  ;;  %v6756_v31 = vadd.f32 %v6744_v63, %v6732_v37  ;;  %v6922_v9 = vmul.f32 %v6865_v57, %v6838_v39  ;;  %v6839_v38 = vadd.f32 %v6824_v4, %v11390_v6  ;;  %v6790_v28 = vld [vmem:[#allocation5 + $0x69] sm:$0xff]  ;;  %v6791_v35 = vld [vmem:[#allocation5 + $0x71] sm:$0xff]  ;;  %v6792_v29 = vld [vmem:[#allocation5 + $0x79] sm:$0xff] }
 0x578   : > { %v6826_v42 = vadd.f32 %v6811_v36, %v11409_v3  ;;  %v6214_v43 = vsel %vm1854_vm0, %v6207_v47, %v6213_v52  ;;  %v6870_v48 = vpop.permute.xlu0 %6869  ;;  %v6827_v22 = vadd.f32 %v6812_v33, %v11424_v16  ;;  %v6814_v44 = vadd.f32 %v6799_v26, %v11457_v17  ;;  %v8551_v51 = vld [vmem:[#allocation4 + $0xb0] ss:$0 sps:$4 sm:$0x33]  }
 0x579   : > { %v6779_v18 = vadd.f32 %v6767_v54, %v6755_v5  ;;  %v6801_v56 = vadd.f32 %v6789_v25, %v6777_v20  ;;  %v6941_v59 = vadd.f32 %v11529_v7, %v6922_v9  ;;  %v6923_v15 = vmul.f32 %v6870_v48, %v6839_v38  ;;  %v6820_v48 = vld [vmem:[#allocation5 + $0x74] sm:$0xff] }
 0x57a   : > { %v6840_v6 = vadd.f32 %v6825_v19, %v11414_v49  ;;  %v6219_v3 = vrot.slane %v11518_v41, 2  ;;  %v6875_v37 = vpop.permute.xlu1 %6874  ;;  %v6828_v47 = vadd.f32 %v6813_v13, %v11443_v34  ;;  %v6815_v16 = vadd.f32 %v6800_v11, %v11471_v10  ;;  %v11554_v10 = vld [vmem:[#allocation4 + $0xbc] ss:$12 sps:$4 sm:$0xff]  }
 0x57b   : > { %8133 = vmatmul.mubr.msk.bf16.vlgmr.msra.gmra.mrb[120].mxu1 %vm1185_vm10, %v11008_v45  ;;  %v6780_v17 = vadd.f32 %v6768_v14, %v6756_v31  ;;  %v6802_v0 = vadd.f32 %v6790_v28, %v6778_v40  ;;  %v6953_v4 = vmax.f32 %v6941_v59, 0.0  ;;  %v6942_v36 = vadd.f32 %v11529_v7, %v6923_v15  ;;  %v6806_v40 = vld [vmem:[#allocation5 + $0x7b] sm:$0xff]  ;;  %v6807_v11 = vld [vmem:[#allocation5 + $0x83] sm:$0xff] }
 0x57c   : > { %v6924_v21 = vmul.f32 %v6875_v37, %v6840_v6  ;;  %v6841_v49 = vadd.f32 %v6826_v42, %v11429_v62  ;;  %8136 = vmatprep.mubr.msk.bf16.mxu1 %vm1185_vm10, %v11085_v2  ;;  %v6880_v33 = vpop.permute.xlu0 %6879  ;;  %v6842_v20 = vadd.f32 %v6827_v22, %v11455_v30  ;;  %v6829_v45 = vadd.f32 %v6814_v44, %v11465_v58  ;;  %v6805_v2 = vld [vmem:[#allocation5 + $0x73] sm:$0xff]  ;;  %v6821_v14 = vld [vmem:[#allocation5 + $0x7c] sm:$0xff]  ;;  %v6822_v28 = vld [vmem:[#allocation5 + $0x84] sm:$0xff] }
 0x57d   : > { %v6816_v34 = vadd.f32 %v6801_v56, %v11484_v61  ;;  %v6803_v26 = vadd.f32 %v6791_v35, %v6779_v18  ;;  %v7920_v5 = vpack.c.bf16 %v6953_v4, %v6953_v4  ;;  %v6954_v39 = vmax.f32 %v6942_v36, 0.0  ;;  %8149 = vmatmul.mubr.msk.bf16.vlgmr.msra.gmra.mrb[168].mxu0 %vm1185_vm10, %v6208_v27 }
 0x57e   : > { %v6943_v1 = vadd.f32 %v11529_v7, %v6924_v21  ;;  %v6925_v62 = vmul.f32 %v6880_v33, %v6841_v49  ;;  %v6885_v19 = vpop.permute.xlu1 %6884  ;;  %8152 = vmatprep.mubr.msk.bf16.mxu0 %vm1185_vm10, %v6214_v43  ;;  %v6843_v30 = vadd.f32 %v6828_v47, %v11467_v46  ;;  %v6830_v58 = vadd.f32 %v6815_v16, %v11476_v53  ;;  %v6836_v33 = vld [vmem:[#allocation5 + $0x7d] sm:$0xff] }
 0x57f   : > { %v6817_v61 = vadd.f32 %v6805_v2, %v6802_v0  ;;  %v6804_v32 = vadd.f32 %v6792_v29, %v6780_v17  ;;  %7013 = vst.msk [vmem:[%s8901_s22 + $0x8] sm:$0xf] %vm3721_vm7, %v7920_v5  ;;  %v7921_v63 = vpack.c.bf16 %v6954_v39, %v6954_v39  ;;  %v6926_v27 = vmul.f32 %v6885_v19, %v6842_v20  ;;  %v6837_v20 = vld [vmem:[#allocation5 + $0x85] sm:$0xff] }
 0x580   : > { %v6955_v57 = vmax.f32 %v6943_v1, 0.0  ;;  %v6944_v13 = vadd.f32 %v11529_v7, %v6925_v62  ;;  %v6890_v31 = vpop.permute.xlu0 %6889  ;;  %v6844_v9 = vadd.f32 %v6829_v45, %v11480_v24  ;;  %v6831_v46 = vadd.f32 %v6816_v34, %v11488_v23 }
 0x581   : > { %v6225_v53 = vrot.slane %v11554_v10, 2  ;;  %v6818_v38 = vadd.f32 %v6806_v40, %v6803_v26  ;;  %7014 = vst.msk [vmem:[%s8901_s22 + $0x14] sm:$0xf] %vm3721_vm7, %v7921_v63  ;;  %v6945_v54 = vadd.f32 %v11529_v7, %v6926_v27  ;;  %v6927_v25 = vmul.f32 %v6890_v31, %v6843_v30  ;;  %v11934_v26 = vld [vmem:[#allocation6_spill] sm:$0xff] }
 0x582   : > { %v7922_v42 = vpack.c.bf16 %v6955_v57, %v6955_v57  ;;  %v6956_v43 = vmax.f32 %v6944_v13, 0.0  ;;  %v6895_v22 = vpop.permute.xlu1 %6894  ;;  %v6845_v44 = vadd.f32 %v6830_v58, %v11494_v8  ;;  %v6832_v24 = vadd.f32 %v6820_v48, %v6817_v61 }
 0x583   : > { %8137 = vmatmul.mubr.msk.bf16.gmra.mrb[124].mxu1 %vm1185_vm10, %v11154_v60  ;;  %v6819_v18 = vadd.f32 %v6807_v11, %v6804_v32  ;;  %v5743_v23 = vrot.slane %v8551_v51, 2  ;;  %v6957_v59 = vmax.f32 %v6945_v54, 0.0  ;;  %v6946_v15 = vadd.f32 %v11529_v7, %v6927_v25 }
 0x584   : > { %7015 = vst.msk [vmem:[%s8901_s22 + $0x20] sm:$0xf] %vm3721_vm7, %v7922_v42  ;;  %v7923_v56 = vpack.c.bf16 %v6956_v43, %v6956_v43  ;;  %v6928_v6 = vmul.f32 %v6895_v22, %v6844_v9  ;;  %8140 = vmatprep.mubr.msk.bf16.mxu1 %vm1185_vm10, %v11234_v55  ;;  %v6900_v8 = vpop.permute.xlu0 %6899  ;;  %v6220_v60 = vsel %vm1854_vm0, %v6213_v52, %v6219_v3  ;;  %v8552_v55 = vld [vmem:[#allocation4 + $0xd4] ss:$0 sps:$4 sm:$0x33]   ;;  %v6835_v52 = vld [vmem:[#allocation5 + $0x75] sm:$0xff] }
 0x585   : > { %v6846_v37 = vadd.f32 %v6831_v46, %v11507_v12  ;;  %v6226_v47 = vsel %vm1854_vm0, %v6219_v3, %v6225_v53  ;;  %v6833_v16 = vadd.f32 %v6821_v14, %v6818_v38  ;;  %v7924_v17 = vpack.c.bf16 %v6957_v59, %v6957_v59  ;;  %8153 = vmatmul.mubr.msk.bf16.gmra.mrb[172].mxu0 %vm1185_vm10, %v6220_v60 }
 0x586   : > { %7016 = vst.msk [vmem:[%s8901_s22 + $0x2c] sm:$0xf] %vm3721_vm7, %v7923_v56  ;;  %v6958_v0 = vmax.f32 %v6946_v15, 0.0  ;;  %v6947_v4 = vadd.f32 %v11529_v7, %v6928_v6  ;;  %v6929_v50 = vmul.f32 %v6900_v8, %v6845_v44  ;;  %v6905_v12 = vpop.permute.xlu1 %6904  ;;  %8156 = vmatprep.mubr.msk.bf16.mxu0 %vm1185_vm10, %v6226_v47  ;;  %v6847_v36 = vadd.f32 %v6835_v52, %v6832_v24 }
 0x587   : > { %v6834_v41 = vadd.f32 %v6822_v28, %v6819_v18  ;;  %7017 = vst.msk [vmem:[%s8901_s22 + $0x38] sm:$0xf] %vm3721_vm7, %v7924_v17  ;;  %v6930_v35 = vmul.f32 %v6905_v12, %v6846_v37  ;;  %v6848_v34 = vadd.f32 %v6836_v33, %v6833_v16  ;;  %v11935_v5 = vrot.slane %v11934_v26, 2 }
 0x588   : > { %v7925_v3 = vpack.c.bf16 %v6958_v0, %v6958_v0  ;;  %v6959_v21 = vmax.f32 %v6947_v4, 0.0  ;;  %v6948_v49 = vadd.f32 %v11529_v7, %v6929_v50  ;;  %v6910_v45 = vpop.permute.xlu0 %6909  ;;  %v6231_v1 = vrot.slane %v8552_v55, 2 }
 0x589   : > { %v5744_v39 = vsel %vm1854_vm0, %v11935_v5, %v5743_v23  ;;  %v6949_v29 = vadd.f32 %v11529_v7, %v6930_v35  ;;  %v6931_v19 = vmul.f32 %v6910_v45, %v6847_v36  ;;  %v6849_v58 = vadd.f32 %v6837_v20, %v6834_v41 }
 0x58a   : > { %7018 = vst.msk [vmem:[%s8901_s22 + $0x44] sm:$0xf] %vm3721_vm7, %v7925_v3  ;;  %v7926_v62 = vpack.c.bf16 %v6959_v21, %v6959_v21  ;;  %v6960_v2 = vmax.f32 %v6948_v49, 0.0  ;;  %v6915_v30 = vpop.permute.xlu1 %6914  ;;  %v6232_v13 = vsel %vm1854_vm0, %v6225_v53, %v6231_v1 }
 0x58b   : > { %8141 = vmatmul.mubr.msk.bf16.gmra.mrb[128].mxu1 %vm1185_vm10, %v5744_v39  ;;  %v6961_v32 = vmax.f32 %v6949_v29, 0.0  ;;  %v6950_v51 = vadd.f32 %v11529_v7, %v6931_v19  ;;  %v6932_v63 = vmul.f32 %v6915_v30, %v6848_v34 }
 0x58c   : > { %7019 = vst.msk [vmem:[%s8901_s22 + $0x50] sm:$0xf] %vm3721_vm7, %v7926_v62  ;;  %v7927_v61 = vpack.c.bf16 %v6960_v2, %v6960_v2  ;;  %v6920_v57 = vpop.permute.xlu0 %6919 }
 0x58d   : > { %v7928_v27 = vpack.c.bf16 %v6961_v32, %v6961_v32  ;;  %v6962_v40 = vmax.f32 %v6950_v51, 0.0  ;;  %v6951_v11 = vadd.f32 %v11529_v7, %v6932_v63  ;;  %v6933_v31 = vmul.f32 %v6920_v57, %v6849_v58  ;;  %8157 = vmatmul.mubr.msk.bf16.gmra.mrb[176].mxu0 %vm1185_vm10, %v6232_v13 }
 0x58e   : > { %7020 = vst.msk [vmem:[%s8901_s22 + $0x5c] sm:$0xf] %vm3721_vm7, %v7927_v61  ;;  %vm6648_vm10 = vcmask 1043712  }
 0x58f   : > { %7021 = vst.msk [vmem:[%s8901_s22 + $0x68] sm:$0xf] %vm3721_vm7, %v7928_v27  ;;  %v7929_v9 = vpack.c.bf16 %v6962_v40, %v6962_v40  ;;  %v6963_v46 = vmax.f32 %v6951_v11, 0.0  ;;  %v6952_v38 = vadd.f32 %v11529_v7, %v6933_v31 }
 0x591   : > { %7022 = vst.msk [vmem:[%s8901_s22 + $0x74] sm:$0xf] %vm3721_vm7, %v7929_v9  ;;  %v7930_v10 = vpack.c.bf16 %v6963_v46, %v6963_v46  ;;  %v6964_v53 = vmax.f32 %v6952_v38, 0.0 }
 0x593   : > { %7023 = vst.msk [vmem:[%s8901_s22 + $0x80] sm:$0xf] %vm3721_vm7, %v7930_v10  ;;  %v7931_v42 = vpack.c.bf16 %v6964_v53, %v6964_v53 }
 0x595   : > { %7024 = vst.msk [vmem:[%s8901_s22 + $0x8c] sm:$0xf] %vm3721_vm7, %v7931_v42 }
 0x5ed   : > { %v7948_v43 = vpop.f32.mrb[120].mxu0 }
 0x5ee   : > { %v7949_v54 = vpop.f32.mrb[121].mxu0 }
 0x5ef   : > { %v7950_v25 = vadd.f32 %v7949_v54, %v7948_v43  ;;  %v7951_v48 = vpop.f32.mrb[122].mxu0 }
 0x5f0   : > { %v7952_v22 = vpop.f32.mrb[123].mxu0 }
 0x5f1   : > { %v7953_v44 = vadd.f32 %v7952_v22, %v7951_v48 }
 0x5f7   : > { %v7954_v24 = vpop.f32.mrb[124].mxu0 }
 0x5f8   : > { %v7955_v18 = vpop.f32.mrb[125].mxu0 }
 0x5f9   : > { %v7956_v23 = vadd.f32 %v7955_v18, %v7954_v24  ;;  %v7957_v56 = vpop.f32.mrb[126].mxu0 }
 0x5fa   : > { %v7958_v7 = vpop.f32.mrb[127].mxu0 }
 0x5fb   : > { %v7959_v59 = vadd.f32 %v7958_v7, %v7957_v56 }
 0x5ff   : > { %v7960_v15 = vpop.f32.mrb[128].mxu0 }
 0x600   : > { %v7961_v6 = vpop.f32.mrb[129].mxu0 }
 0x601   : > { %v7962_v14 = vadd.f32 %v7961_v6, %v7960_v15  ;;  %v7963_v28 = vpop.f32.mrb[130].mxu0 }
 0x602   : > { %v7964_v8 = vpop.f32.mrb[131].mxu0 }
 0x603   : > { %v7965_v60 = vadd.f32 %v7964_v8, %v7963_v28 }
 0x607   : > { %v7966_v37 = vpop.f32.mrb[132].mxu0 }
 0x608   : > { %v7967_v47 = vpop.f32.mrb[133].mxu0 }
 0x609   : > { %v11623_v16 = vadd.f32 %v7967_v47, %v7966_v37  ;;  %v7969_v55 = vpop.f32.mrb[134].mxu0 }
 0x60a   : > { %v7970_v17 = vpop.f32.mrb[135].mxu0 }
 0x60b   : > { %v11625_v0 = vadd.f32 %v7970_v17, %v7969_v55 }
 0x610   : > { %v7972_v4 = vpop.f32.mrb[136].mxu0 }
 0x611   : > { %v7973_v50 = vpop.f32.mrb[137].mxu0 }
 0x612   : > { %v11627_v52 = vadd.f32 %v7973_v50, %v7972_v4  ;;  %v7975_v12 = vpop.f32.mrb[138].mxu0 }
 0x613   : > { %v7976_v36 = vpop.f32.mrb[139].mxu0 }
 0x614   : > { %v11629_v41 = vadd.f32 %v7976_v36, %v7975_v12 }
 0x618   : > { %v7978_v3 = vpop.f32.mrb[140].mxu0 }
 0x619   : > { %v7979_v21 = vpop.f32.mrb[141].mxu0 }
 0x61a   : > { %v11631_v49 = vadd.f32 %v7979_v21, %v7978_v3  ;;  %v7981_v35 = vpop.f32.mrb[142].mxu0 }
 0x61b   : > { %v7982_v33 = vpop.f32.mrb[143].mxu0 }
 0x61c   : > { %v11633_v20 = vadd.f32 %v7982_v33, %v7981_v35  ;;  %v8008_v45 = vpop.f32.mrb[132].mxu1 }
 0x61d   : > { %v8009_v34 = vpop.f32.mrb[133].mxu1 }
 0x61e   : > { %v8010_v26 = vadd.f32 %v8009_v34, %v8008_v45  ;;  %v8011_v5 = vpop.f32.mrb[134].mxu1 }
 0x61f   : > { %v8012_v1 = vpop.f32.mrb[135].mxu1 }
 0x620   : > { %v8068_v39 = vpop.f32.mrb[144].mxu0  ;;  %v8013_v62 = vadd.f32 %v8012_v1, %v8011_v5  ;;  %v11635_v29 = vadd.f32 %v8010_v26, %v7950_v25 }
 0x621   : > { %v8069_v2 = vpop.f32.mrb[145].mxu0 }
 0x622   : > { %v11637_v19 = vadd.f32 %v8069_v2, %v8068_v39  ;;  %v8071_v30 = vpop.f32.mrb[146].mxu0  ;;  %v11639_v61 = vadd.f32 %v8013_v62, %v7953_v44 }
 0x623   : > { %v8072_v58 = vpop.f32.mrb[147].mxu0 }
 0x624   : > { %v11641_v32 = vadd.f32 %v8072_v58, %v8071_v30  ;;  %v8014_v51 = vpop.f32.mrb[136].mxu1 }
 0x625   : > { %v8015_v63 = vpop.f32.mrb[137].mxu1 }
 0x626   : > { %v8016_v57 = vadd.f32 %v8015_v63, %v8014_v51  ;;  %v8017_v13 = vpop.f32.mrb[138].mxu1 }
 0x627   : > { %v8018_v40 = vpop.f32.mrb[139].mxu1 }
 0x628   : > { %v8074_v27 = vpop.f32.mrb[148].mxu0  ;;  %v8019_v11 = vadd.f32 %v8018_v40, %v8017_v13  ;;  %v11643_v9 = vadd.f32 %v8016_v57, %v7956_v23 }
 0x629   : > { %v8075_v31 = vpop.f32.mrb[149].mxu0 }
 0x62a   : > { %v11645_v46 = vadd.f32 %v8075_v31, %v8074_v27  ;;  %v8077_v38 = vpop.f32.mrb[150].mxu0  ;;  %v11647_v53 = vadd.f32 %v8019_v11, %v7959_v59 }
 0x62b   : > { %v8078_v10 = vpop.f32.mrb[151].mxu0 }
 0x62c   : > { %v11649_v42 = vadd.f32 %v8078_v10, %v8077_v38  ;;  %v8020_v43 = vpop.f32.mrb[140].mxu1 }
 0x62d   : > { %v8021_v54 = vpop.f32.mrb[141].mxu1 }
 0x62e   : > { %v8022_v25 = vadd.f32 %v8021_v54, %v8020_v43  ;;  %v8023_v48 = vpop.f32.mrb[142].mxu1 }
 0x62f   : > { %v8024_v44 = vpop.f32.mrb[143].mxu1 }
 0x630   : > { %v8080_v22 = vpop.f32.mrb[152].mxu0  ;;  %v8025_v24 = vadd.f32 %v8024_v44, %v8023_v48  ;;  %v11651_v56 = vadd.f32 %v8022_v25, %v7962_v14 }
 0x631   : > { %v8081_v18 = vpop.f32.mrb[153].mxu0 }
 0x632   : > { %v11653_v23 = vadd.f32 %v8081_v18, %v8080_v22  ;;  %v8083_v7 = vpop.f32.mrb[154].mxu0  ;;  %v11655_v6 = vadd.f32 %v8025_v24, %v7965_v60 }
 0x633   : > { %v8084_v15 = vpop.f32.mrb[155].mxu0 }
 0x634   : > { %v11657_v59 = vadd.f32 %v8084_v15, %v8083_v7  ;;  %v8026_v28 = vpop.f32.mrb[144].mxu1 }
 0x635   : > { %v8027_v8 = vpop.f32.mrb[145].mxu1 }
 0x636   : > { %v8028_v37 = vadd.f32 %v8027_v8, %v8026_v28  ;;  %v8029_v47 = vpop.f32.mrb[146].mxu1 }
 0x637   : > { %v8030_v17 = vpop.f32.mrb[147].mxu1 }
 0x638   : > { %v8086_v55 = vpop.f32.mrb[156].mxu0  ;;  %v8031_v4 = vadd.f32 %v8030_v17, %v8029_v47  ;;  %v8176_v12 = vadd.f32 %v8028_v37, %v11623_v16 }
 0x639   : > { %v8087_v50 = vpop.f32.mrb[157].mxu0 }
 0x63a   : > { %v11660_v14 = vadd.f32 %v8087_v50, %v8086_v55  ;;  %v8089_v36 = vpop.f32.mrb[158].mxu0  ;;  %v11663_v21 = vadd.f32 %v8031_v4, %v11625_v0 }
 0x63b   : > { %v8090_v3 = vpop.f32.mrb[159].mxu0 }
 0x63c   : > { %v11665_v60 = vadd.f32 %v8090_v3, %v8089_v36  ;;  %v8032_v35 = vpop.f32.mrb[148].mxu1 }
 0x63d   : > { %v8033_v33 = vpop.f32.mrb[149].mxu1 }
 0x63e   : > { %v8034_v45 = vadd.f32 %v8033_v33, %v8032_v35  ;;  %v8035_v34 = vpop.f32.mrb[150].mxu1 }
 0x63f   : > { %v8036_v5 = vpop.f32.mrb[151].mxu1 }
 0x640   : > { %v8092_v26 = vpop.f32.mrb[160].mxu0  ;;  %v8037_v39 = vadd.f32 %v8036_v5, %v8035_v34  ;;  %v11668_v62 = vadd.f32 %v8034_v45, %v11627_v52 }
 0x641   : > { %v8093_v1 = vpop.f32.mrb[161].mxu0 }
 0x642   : > { %v11670_v16 = vadd.f32 %v8093_v1, %v8092_v26  ;;  %v8095_v2 = vpop.f32.mrb[162].mxu0  ;;  %v11673_v0 = vadd.f32 %v8037_v39, %v11629_v41 }
 0x643   : > { %v8096_v30 = vpop.f32.mrb[163].mxu0 }
 0x644   : > { %v11675_v58 = vadd.f32 %v8096_v30, %v8095_v2 }
 0x646   : > { %v8038_v51 = vpop.f32.mrb[152].mxu1 }
 0x647   : > { %v8039_v63 = vpop.f32.mrb[153].mxu1 }
 0x648   : > { %v8040_v57 = vadd.f32 %v8039_v63, %v8038_v51  ;;  %v8041_v13 = vpop.f32.mrb[154].mxu1  ;;  %v8098_v27 = vpop.f32.mrb[164].mxu0 }
 0x649   : > { %v8042_v40 = vpop.f32.mrb[155].mxu1  ;;  %v8099_v31 = vpop.f32.mrb[165].mxu0 }
 0x64a   : > { %v8043_v11 = vadd.f32 %v8042_v40, %v8041_v13  ;;  %v11678_v52 = vadd.f32 %v8040_v57, %v11631_v49  ;;  %v11680_v38 = vadd.f32 %v8099_v31, %v8098_v27  ;;  %v8101_v10 = vpop.f32.mrb[166].mxu0 }
 0x64b   : > { %v8102_v43 = vpop.f32.mrb[167].mxu0 }
 0x64c   : > { %v11683_v41 = vadd.f32 %v8043_v11, %v11633_v20  ;;  %v11685_v54 = vadd.f32 %v8102_v43, %v8101_v10  ;;  %v11694_v20 = vld [vmem:[%s11776_s10] ss:$0 sm:$0xff] }
 0x64e   : > { %v8134_v25 = vpop.f32.mrb[120].mxu1 }
 0x64f   : > { %v8161_v48 = vadd.f32 %v11643_v9, %v8134_v25  ;;  %v5998_v22 = vpop.f32.mrb[121].mxu1 }
 0x650   : > { %v8165_v44 = vadd.f32 %v11635_v29, %v5998_v22  ;;  %v8135_v24 = vpop.f32.mrb[122].mxu1  ;;  %v8150_v49 = vpop.f32.mrb[168].mxu0 }
 0x651   : > { %v8169_v18 = vadd.f32 %v11647_v53, %v8135_v24  ;;  %v8162_v7 = vadd.f32 %v8161_v48, %v11645_v46  ;;  %v6001_v15 = vpop.f32.mrb[123].mxu1  ;;  %v6486_v8 = vpop.f32.mrb[169].mxu0 }
 0x652   : > { %v8173_v28 = vadd.f32 %v11639_v61, %v6001_v15  ;;  %v8166_v9 = vadd.f32 %v8165_v44, %v11637_v19  ;;  %v8151_v47 = vpop.f32.mrb[170].mxu0 }
 0x653   : > { %v8163_v37 = vadd.f32 %v8162_v7, %v8150_v49  ;;  %v8170_v29 = vadd.f32 %v8169_v18, %v11649_v42  ;;  %v6489_v53 = vpop.f32.mrb[171].mxu0 }
 0x654   : > { %v8167_v55 = vadd.f32 %v8166_v9, %v6486_v8  ;;  %v8174_v17 = vadd.f32 %v8173_v28, %v11641_v32 }
 0x655   : > { %v6554_v46 = vadd.f32 %v8163_v37, %v11694_v20  ;;  %v8171_v4 = vadd.f32 %v8170_v29, %v8151_v47 }
 0x656   : > { %v6552_v50 = vadd.f32 %v8167_v55, %v11694_v20  ;;  %v8175_v36 = vadd.f32 %v8174_v17, %v6489_v53  ;;  %v8138_v3 = vpop.f32.mrb[124].mxu1 }
 0x657   : > { %v6566_v35 = vmax.f32 %v6554_v46, 0.0  ;;  %v6555_v61 = vadd.f32 %v8171_v4, %v11694_v20  ;;  %v8177_v33 = vadd.f32 %v8176_v12, %v8138_v3  ;;  %v6014_v19 = vpop.f32.mrb[125].mxu1 }
 0x658   : > { %v6564_v45 = vmax.f32 %v6552_v50, 0.0  ;;  %v6553_v34 = vadd.f32 %v8175_v36, %v11694_v20  ;;  %v8181_v42 = vadd.f32 %v11651_v56, %v6014_v19  ;;  %v8139_v26 = vpop.f32.mrb[126].mxu1  ;;  %v8154_v1 = vpop.f32.mrb[172].mxu0 }
 0x659   : > { %v7910_v5 = vpack.c.bf16 %v6566_v35, %v6566_v35  ;;  %v6567_v32 = vmax.f32 %v6555_v61, 0.0  ;;  %v8185_v39 = vadd.f32 %v11663_v21, %v8139_v26  ;;  %v8178_v2 = vadd.f32 %v8177_v33, %v11660_v14  ;;  %v6017_v30 = vpop.f32.mrb[127].mxu1  ;;  %v6502_v63 = vpop.f32.mrb[173].mxu0 }
 0x65a   : > { %v8189_v51 = vadd.f32 %v11655_v6, %v6017_v30  ;;  %v8182_v12 = vadd.f32 %v8181_v42, %v11653_v23  ;;  %v6565_v13 = vmax.f32 %v6553_v34, 0.0  ;;  %v8155_v40 = vpop.f32.mrb[174].mxu0  ;;  %v7908_v10 = vpack.c.bf16 %v6564_v45, %v6564_v45 }
 0x65b   : > { %v7911_v57 = vpack.c.bf16 %v6567_v32, %v6567_v32  ;;  %v8179_v27 = vadd.f32 %v8178_v2, %v8154_v1  ;;  %v8186_v56 = vadd.f32 %v8185_v39, %v11665_v60  ;;  %6616 = vrot.lane.b32.xlu1 %v7910_v5, %s8579_s18  ;;  %v6505_v31 = vpop.f32.mrb[175].mxu0 }
 0x65c   : > { %v8183_v11 = vadd.f32 %v8182_v12, %v6502_v63  ;;  %v8190_v21 = vadd.f32 %v8189_v51, %v11657_v59  ;;  %v7909_v48 = vpack.c.bf16 %v6565_v13, %v6565_v13 }
 0x65d   : > { %v6558_v14 = vadd.f32 %v8179_v27, %v11694_v20  ;;  %v8187_v43 = vadd.f32 %v8186_v56, %v8155_v40  ;;  %6618 = vrot.lane.b32.xlu0 %v7911_v57, %s8579_s18 }
 0x65e   : > { %v6556_v23 = vadd.f32 %v8183_v11, %v11694_v20  ;;  %v8191_v6 = vadd.f32 %v8190_v21, %v6505_v31  ;;  %v8142_v25 = vpop.f32.mrb[128].mxu1 }
 0x65f   : > { %v6570_v22 = vmax.f32 %v6558_v14, 0.0  ;;  %v6559_v60 = vadd.f32 %v8187_v43, %v11694_v20  ;;  %v8193_v44 = vadd.f32 %v11678_v52, %v8142_v25  ;;  %v6030_v24 = vpop.f32.mrb[129].mxu1  ;;  %6612 = vrot.lane.b32.xlu1 %v7908_v10, %s8579_s18 }
 0x660   : > { %v6568_v59 = vmax.f32 %v6556_v23, 0.0  ;;  %v6557_v18 = vadd.f32 %v8191_v6, %v11694_v20  ;;  %v8197_v49 = vadd.f32 %v11668_v62, %v6030_v24  ;;  %v8143_v7 = vpop.f32.mrb[130].mxu1  ;;  %v8158_v9 = vpop.f32.mrb[176].mxu0 }
 0x661   : > { %v7914_v15 = vpack.c.bf16 %v6570_v22, %v6570_v22  ;;  %v6571_v28 = vmax.f32 %v6559_v60, 0.0  ;;  %v8201_v8 = vadd.f32 %v11683_v41, %v8143_v7  ;;  %v8194_v37 = vadd.f32 %v8193_v44, %v11680_v38  ;;  %v6033_v47 = vpop.f32.mrb[131].mxu1  ;;  %6614 = vrot.lane.b32.xlu0 %v7909_v48, %s8579_s18  ;;  %v6518_v29 = vpop.f32.mrb[177].mxu0 }
 0x662   : > { %v8205_v52 = vadd.f32 %v11673_v0, %v6033_v47  ;;  %v8198_v55 = vadd.f32 %v8197_v49, %v11670_v16  ;;  %v6569_v17 = vmax.f32 %v6557_v18, 0.0  ;;  %v8159_v62 = vpop.f32.mrb[178].mxu0  ;;  %v7912_v36 = vpack.c.bf16 %v6568_v59, %v6568_v59 }
 0x663   : > { %v7915_v53 = vpack.c.bf16 %v6571_v28, %v6571_v28  ;;  %v8195_v46 = vadd.f32 %v8194_v37, %v8158_v9  ;;  %v8202_v4 = vadd.f32 %v8201_v8, %v11685_v54  ;;  %6624 = vrot.lane.b32.xlu1 %v7914_v15, %s8579_s18  ;;  %v6521_v50 = vpop.f32.mrb[179].mxu0 }
 0x664   : > { %v8199_v41 = vadd.f32 %v8198_v55, %v6518_v29  ;;  %v8206_v38 = vadd.f32 %v8205_v52, %v11675_v58  ;;  %v7913_v61 = vpack.c.bf16 %v6569_v17, %v6569_v17 }
 0x665   : > { %v8203_v3 = vadd.f32 %v8202_v4, %v8159_v62  ;;  %6626 = vrot.lane.b32.xlu0 %v7915_v53, %s8579_s18  ;;  %v6562_v0 = vadd.f32 %v8195_v46, %v11694_v20 }
 0x666   : > { %v6560_v16 = vadd.f32 %v8199_v41, %v11694_v20  ;;  %v8207_v35 = vadd.f32 %v8206_v38, %v6521_v50 }
 0x667   : > { %6620 = vrot.lane.b32.xlu1 %v7912_v36, %s8579_s18  ;;  %v6563_v54 = vadd.f32 %v8203_v3, %v11694_v20  ;;  %v6574_v58 = vmax.f32 %v6562_v0, 0.0 }
 0x668   : > { %v6572_v33 = vmax.f32 %v6560_v16, 0.0  ;;  %v6561_v19 = vadd.f32 %v8207_v35, %v11694_v20 }
 0x669   : > { %6622 = vrot.lane.b32.xlu0 %v7913_v61, %s8579_s18  ;;  %v6575_v42 = vmax.f32 %v6563_v54, 0.0  ;;  %v7918_v5 = vpack.c.bf16 %v6574_v58, %v6574_v58 }
 0x66a   : > { %v7916_v45 = vpack.c.bf16 %v6572_v33, %v6572_v33  ;;  %v6573_v34 = vmax.f32 %v6561_v19, 0.0 }
 0x66b   : > { %v7919_v32 = vpack.c.bf16 %v6575_v42, %v6575_v42 }
 0x66c   : > { %v7917_v26 = vpack.c.bf16 %v6573_v34, %v6573_v34  ;;  %6628 = vrot.lane.b32.xlu1 %v7916_v45, %s8579_s18 }
 0x66e   : > { %6630 = vrot.lane.b32.xlu0 %v7917_v26, %s8579_s18 }
 0x670   : > { %6632 = vrot.lane.b32.xlu1 %v7918_v5, %s8579_s18 }
 0x672   : > { %6634 = vrot.lane.b32.xlu0 %v7919_v32, %s8579_s18 }
 0x6cd   : > { %v6617_v20 = vpop.permute.xlu1 %6616 }
 0x6ce   : > { %6651 = vst.msk [vmem:[%s8901_s22 + $0x1c] sm:$0xf] %vm6648_vm10, %v6617_v20 }
 0x6cf   : > { %v6619_v39 = vpop.permute.xlu0 %6618 }
 0x6d0   : > { %6652 = vst.msk [vmem:[%s8901_s22 + $0x28] sm:$0xf] %vm6648_vm10, %v6619_v39 }
 0x6d1   : > { %v6613_v1 = vpop.permute.xlu1 %6612 }
 0x6d2   : > { %6649 = vst.msk [vmem:[%s8901_s22 + $0x4] sm:$0xf] %vm6648_vm10, %v6613_v1 }
 0x6d3   : > { %v6615_v2 = vpop.permute.xlu0 %6614 }
 0x6d4   : > { %6650 = vst.msk [vmem:[%s8901_s22 + $0x10] sm:$0xf] %vm6648_vm10, %v6615_v2 }
 0x6d5   : > { %v6625_v30 = vpop.permute.xlu1 %6624 }
 0x6d6   : > { %6655 = vst.msk [vmem:[%s8901_s22 + $0x4c] sm:$0xf] %vm6648_vm10, %v6625_v30 }
 0x6d7   : > { %v6627_v51 = vpop.permute.xlu0 %6626 }
 0x6d8   : > { %6656 = vst.msk [vmem:[%s8901_s22 + $0x58] sm:$0xf] %vm6648_vm10, %v6627_v51 }
 0x6d9   : > { %v6621_v63 = vpop.permute.xlu1 %6620 }
 0x6da   : > { %6653 = vst.msk [vmem:[%s8901_s22 + $0x34] sm:$0xf] %vm6648_vm10, %v6621_v63 }
 0x6db   : > { %v6623_v12 = vpop.permute.xlu0 %6622 }
 0x6dc   : > { %6654 = vst.msk [vmem:[%s8901_s22 + $0x40] sm:$0xf] %vm6648_vm10, %v6623_v12 }
 0x6de   : > { %v6629_v57 = vpop.permute.xlu1 %6628 }
 0x6df   : > { %6657 = vst.msk [vmem:[%s8901_s22 + $0x64] sm:$0xf] %vm6648_vm10, %v6629_v57 }
 0x6e0   : > { %v6631_v13 = vpop.permute.xlu0 %6630 }
 0x6e1   : > { %6658 = vst.msk [vmem:[%s8901_s22 + $0x70] sm:$0xf] %vm6648_vm10, %v6631_v13 }
 0x6e2   : > { %v6633_v27 = vpop.permute.xlu1 %6632 }
 0x6e3   : > { %6659 = vst.msk [vmem:[%s8901_s22 + $0x7c] sm:$0xf] %vm6648_vm10, %v6633_v27 }
 0x6e4   : > { %v6635_v40 = vpop.permute.xlu0 %6634 }
 0x6e5   : > { %6660 = vst.msk [vmem:[%s8901_s22 + $0x88] sm:$0xf] %vm6648_vm10, %v6635_v40 }
 0x6e6 PF: > { %s24_s29 = sadd.s32 1, %s8576_s29  }
 0x6e7   : > { %p21_p4 = scmp.ge.s32.totalorder %s24_s29, 4  }
 0x6e9   :  { %23 = sbr.rel (!%p21_p4) target bundleno = 1 (0x1), region = 114 }

</bundles_post_ra>
